<compile_context>
chip_gen: v6e
topology: v6e:2x2x1
jax: 0.10.0
libtpu: 0.0.40
codegen_flags: <defaults>
</compile_context>

<pallas_src>
import functools

import jax
import jax.numpy as jnp
from jax.experimental import pallas as pl
from jax.experimental.pallas import tpu as pltpu


def _round_up(x, m):
    return (x + m - 1) // m * m


def _deep_gated_mlp_kernel(num_layers, compute_dtype, *refs):
    # refs layout:
    #   x_ref,
    #   [W_i, b_i, Wg_i, bg_i] * num_layers, W_out, b_out,   (inputs)
    #   out_ref, gate_ref_0 .. gate_ref_{L-1}                (outputs)
    n_in = 1 + 4 * num_layers + 2
    x_ref = refs[0]
    params = refs[1:n_in]
    out_ref = refs[n_in]
    gate_refs = refs[n_in + 1 : n_in + 1 + num_layers]

    # Inter-layer activation carried as a traced value (layers unrolled); no
    # store/load round-trip through a VMEM scratch.
    h = x_ref[...]
    for i in range(num_layers):
        w_ref, b_ref, wg_ref, bg_ref = params[4 * i : 4 * i + 4]

        # Linear + ReLU  (MXU matmul, f32 accumulate; bias add / relu in f32).
        pre = jnp.dot(h, w_ref[...], preferred_element_type=jnp.float32) + b_ref[...]
        h_act = jnp.maximum(pre, 0.0).astype(compute_dtype)

        # Gate: sigmoid(Linear(h_act)).  Sigmoid goes to the EUP slot.
        gpre = (
            jnp.dot(h_act, wg_ref[...], preferred_element_type=jnp.float32)
            + bg_ref[...]
        )
        gate = jax.nn.sigmoid(gpre)
        gate_refs[i][...] = gate.astype(gate_refs[i].dtype)

        # Single precision convention: both the gate matmul and the next layer's
        # input derive from the compute_dtype-rounded activation.
        h = (h_act.astype(jnp.float32) * gate).astype(compute_dtype)

    w_out_ref, b_out_ref = params[4 * num_layers], params[4 * num_layers + 1]
    out = (
        jnp.dot(h, w_out_ref[...], preferred_element_type=jnp.float32)
        + b_out_ref[...]
    )
    out_ref[...] = out.astype(out_ref.dtype)


def deep_gated_mlp(
    x,
    layer_params,
    gate_params,
    out_params,
    *,
    num_layers,
    batch_block=512,
    compute_dtype=jnp.bfloat16,
    lane_multiple=128,
    vmem_limit_bytes=None,
):
    """x: (B, input_dim).
    layer_params[i] = (W_i (in,out), b_i (1,out)), gate_params[i] = (Wg_i, bg_i),
    out_params = (W_out (hidden, output_dim), b_out (1, output_dim)).
    Weights are stored pre-transposed to (in_features, out_features).
    Returns (out (B, output_dim), [gate_i (B, hidden)]) in x.dtype.
    """
    assert num_layers >= 1
    B, input_dim = x.shape
    hidden_dim = layer_params[0][0].shape[1]
    output_dim = out_params[0].shape[1]
    result_dtype = x.dtype
    cbytes = jnp.dtype(compute_dtype).itemsize

    # Lane-dense feature padding (multiples of 128) -> unmasked stores, full MXU
    # lanes, aligned DMA.  input_dim (first matmul K) is padded too.
    in_pad = _round_up(input_dim, lane_multiple)
    h_pad = _round_up(hidden_dim, lane_multiple)
    o_pad = _round_up(output_dim, lane_multiple)

    # Batch tiling: sublane multiple depends on dtype packing (8 for f32, 16 for
    # bf16).  Aim for >=2 grid tiles (v7x megacore) with minimal batch padding.
    sub = max(8, 32 // cbytes)
    n_tiles = max(2, -(-B // batch_block)) if B > sub else 1
    tb = max(sub, min(_round_up(batch_block, sub), _round_up(-(-B // n_tiles), sub)))
    b_pad = _round_up(B, tb)
    grid = (b_pad // tb,)

    x_p = x
    if (b_pad, in_pad) != (B, input_dim):
        x_p = jnp.pad(x, ((0, b_pad - B), (0, in_pad - input_dim)))
    x_p = x_p.astype(compute_dtype)

    def pad_w(w, rows, cols):
        w = jnp.pad(w, ((0, rows - w.shape[0]), (0, cols - w.shape[1])))
        return w.astype(compute_dtype)

    def pad_b(b, cols):
        return jnp.pad(b, ((0, 0), (0, cols - b.shape[1]))).astype(jnp.float32)

    # Flat operand list matching the kernel ref ordering.
    operands = [x_p]
    for i in range(num_layers):
        w, b = layer_params[i]
        wg, bg = gate_params[i]
        in_rows = in_pad if i == 0 else h_pad
        operands += [
            pad_w(w, in_rows, h_pad),
            pad_b(b, h_pad),
            pad_w(wg, h_pad, h_pad),
            pad_b(bg, h_pad),
        ]
    operands += [pad_w(out_params[0], h_pad, o_pad), pad_b(out_params[1], o_pad)]

    # VMEM budget components.
    weight_bytes = sum(int(op.size) * op.dtype.itemsize for op in operands[1:])
    x_tile_bytes = 2 * tb * in_pad * cbytes                       # double-buffered
    out_tile_bytes = 2 * tb * o_pad * cbytes                      # double-buffered
    gate_tile_bytes = 2 * num_layers * tb * h_pad * cbytes        # double-buffered

    # Advisory cost estimate (helps XLA schedule the wrapper-side pads/slices).
    flops = 2 * b_pad * (
        in_pad * h_pad
        + (num_layers - 1) * h_pad * h_pad
        + num_layers * h_pad * h_pad
        + h_pad * o_pad
    )
    bytes_accessed = (
        int(x_p.size) * x_p.dtype.itemsize
        + weight_bytes
        + b_pad * o_pad * cbytes
        + num_layers * b_pad * h_pad * cbytes
    )
    cost = pl.CostEstimate(
        flops=flops,
        transcendentals=b_pad * h_pad * num_layers,
        bytes_accessed=bytes_accessed,
    )

    kernel = functools.partial(_deep_gated_mlp_kernel, num_layers, compute_dtype)

    # Kernel outputs are in compute_dtype (halves gate/out HBM writeback and the
    # output VMEM double-buffers on the bf16 path); wrapper casts back.
    out_shapes = [jax.ShapeDtypeStruct((b_pad, o_pad), compute_dtype)] + [
        jax.ShapeDtypeStruct((b_pad, h_pad), compute_dtype) for _ in range(num_layers)
    ]
    out_specs = [pl.BlockSpec((tb, o_pad), lambda i: (i, 0))] + [
        pl.BlockSpec((tb, h_pad), lambda i: (i, 0)) for _ in range(num_layers)
    ]

    def build_call(weight_buffers):
        # x tiled over the batch grid; weights/biases use a constant block index
        # so they stay VMEM-resident across batch tiles.  Single-buffer them when
        # supported (they never change between grid steps).
        in_specs = [pl.BlockSpec((tb, in_pad), lambda i: (i, 0))]
        for op in operands[1:]:
            if weight_buffers == 1:
                in_specs.append(
                    pl.BlockSpec(op.shape, lambda i: (0, 0),
                                 pipeline_mode=pl.Buffered(1))
                )
            else:
                in_specs.append(pl.BlockSpec(op.shape, lambda i: (0, 0)))

        if vmem_limit_bytes is None:
            needed = (
                weight_buffers * weight_bytes
                + x_tile_bytes
                + out_tile_bytes
                + gate_tile_bytes
            )
            limit = min(max(int(needed * 1.3) + (4 << 20), 32 << 20), 128 << 20)
        else:
            limit = vmem_limit_bytes

        return pl.pallas_call(
            kernel,
            out_shape=tuple(out_shapes),
            grid_spec=pltpu.PrefetchScalarGridSpec(
                num_scalar_prefetch=0,
                grid=grid,
                in_specs=in_specs,
                out_specs=tuple(out_specs),
            ),
            compiler_params=pltpu.CompilerParams(
                # Batch tiles are independent -> shard across TensorCores on v7x.
                dimension_semantics=("parallel",),
                vmem_limit_bytes=limit,
            ),
            cost_estimate=cost,
        )

    try:
        results = build_call(1)(*operands)
    except Exception:
        # Fallback for JAX versions where single-buffered pipeline_mode is not
        # supported on the pallas_call pipelining path.
        results = build_call(2)(*operands)

    out = results[0][:B, :output_dim].astype(result_dtype)
    all_gate_vals = [g[:B, :hidden_dim].astype(result_dtype) for g in results[1:]]
    return out, all_gate_vals


def init_params(key, input_dim, hidden_dim, output_dim, num_layers):
    """Parameter init mirroring nn.Linear shapes; weights stored pre-transposed
    to (in_features, out_features)."""

    def linear(key, fan_in, fan_out):
        kw, kb = jax.random.split(key)
        bound = 1.0 / jnp.sqrt(fan_in)
        w = jax.random.uniform(kw, (fan_in, fan_out), jnp.float32, -bound, bound)
        b = jax.random.uniform(kb, (1, fan_out), jnp.float32, -bound, bound)
        return w, b

    keys = jax.random.split(key, 2 * num_layers + 1)
    layer_params, gate_params = [], []
    in_dim = input_dim
    for i in range(num_layers):
        layer_params.append(linear(keys[2 * i], in_dim, hidden_dim))
        gate_params.append(linear(keys[2 * i + 1], hidden_dim, hidden_dim))
        in_dim = hidden_dim
    out_params = linear(keys[-1], hidden_dim, output_dim)
    return layer_params, gate_params, out_params


def reference_forward(x, layer_params, gate_params, out_params, num_layers,
                      activation_dtype=jnp.float32):
    """Pure-JAX reference mirroring the PyTorch forward.  `activation_dtype`
    rounds the inter-layer activation (matches the kernel's convention)."""
    all_gates = []
    h = x
    for i in range(num_layers):
        w, b = layer_params[i]
        wg, bg = gate_params[i]
        h_act = jnp.maximum(h @ w + b, 0.0)
        h_act = h_act.astype(activation_dtype).astype(jnp.float32)
        gate = jax.nn.sigmoid(h_act @ wg + bg)
        all_gates.append(gate)
        h = (h_act * gate).astype(activation_dtype).astype(jnp.float32)
    wo, bo = out_params
    return h @ wo + bo, all_gates


def _quantize_params(layer_params, gate_params, out_params, dtype):
    """Round weights through `dtype` (biases stay f32) to build a matched reference."""
    q = lambda w: w.astype(dtype).astype(jnp.float32)
    lp = [(q(w), b) for w, b in layer_params]
    gp = [(q(w), b) for w, b in gate_params]
    op = (q(out_params[0]), out_params[1])
    return lp, gp, op


if __name__ == "__main__":
    input_dim = 16
    hidden_dim = 32
    output_dim = 8
    num_layers = 2

    key = jax.random.PRNGKey(0)
    kx, kp = jax.random.split(key)
    layer_params, gate_params, out_params = init_params(
        kp, input_dim, hidden_dim, output_dim, num_layers
    )

    # --- 1) f32 compute path, batch=256: exact semantics check (>=2 grid tiles).
    batch = 256
    x = jax.random.normal(kx, (batch, input_dim), jnp.float32)
    out32, gates32 = deep_gated_mlp(
        x, layer_params, gate_params, out_params,
        num_layers=num_layers, compute_dtype=jnp.float32,
    )
    out32 = jax.block_until_ready(out32)
    gates32 = [jax.block_until_ready(g) for g in gates32]

    ref_out, ref_gates = reference_forward(
        x, layer_params, gate_params, out_params, num_layers
    )
    assert jnp.allclose(out32, ref_out, atol=1e-4, rtol=1e-4)
    for g, rg in zip(gates32, ref_gates):
        assert jnp.allclose(g, rg, atol=1e-4, rtol=1e-4)
    assert out32.shape == (batch, output_dim)
    assert len(gates32) == num_layers and gates32[0].shape == (batch, hidden_dim)

    # --- 2) f32 path with an odd batch (exercises batch-tile padding / slicing).
    x_odd = jax.random.normal(jax.random.PRNGKey(1), (52, input_dim), jnp.float32)
    out_odd, gates_odd = deep_gated_mlp(
        x_odd, layer_params, gate_params, out_params,
        num_layers=num_layers, compute_dtype=jnp.float32,
    )
    out_odd = jax.block_until_ready(out_odd)
    ref_out_odd, ref_gates_odd = reference_forward(
        x_odd, layer_params, gate_params, out_params, num_layers
    )
    assert jnp.allclose(out_odd, ref_out_odd, atol=1e-4, rtol=1e-4)
    for g, rg in zip(gates_odd, ref_gates_odd):
        assert jnp.allclose(g, rg, atol=1e-4, rtol=1e-4)

    # --- 3) bf16 weight/activation path (the performance path); compare against a
    #        reference with bf16-rounded params/input and bf16-rounded activations
    #        (same convention as the kernel), loose tolerance for bf16 outputs.
    out16, gates16 = deep_gated_mlp(
        x, layer_params, gate_params, out_params,
        num_layers=num_layers, compute_dtype=jnp.bfloat16,
    )
    out16 = jax.block_until_ready(out16)
    gates16 = [jax.block_until_ready(g) for g in gates16]

    lp_q, gp_q, op_q = _quantize_params(
        layer_params, gate_params, out_params, jnp.bfloat16
    )
    x_q = x.astype(jnp.bfloat16).astype(jnp.float32)
    ref_out_q, ref_gates_q = reference_forward(
        x_q, lp_q, gp_q, op_q, num_layers, activation_dtype=jnp.bfloat16
    )
    assert jnp.allclose(out16, ref_out_q, atol=3e-2, rtol=3e-2)
    for g, rg in zip(gates16, ref_gates_q):
        assert jnp.allclose(g, rg, atol=3e-2, rtol=3e-2)
    assert out16.shape == (batch, output_dim)
    assert len(gates16) == num_layers and gates16[0].shape == (batch, hidden_dim)

    print("KERNEL_OK")
</pallas_src>

<mosaic_0001>
module attributes {stable_mosaic.version = 11 : i64} {
  func.func @_deep_gated_mlp_kernel(%arg0: i32, %arg1: memref<128x128xf32, #tpu.memory_space<vmem>>, %arg2: memref<128x128xf32, #tpu.memory_space<vmem>>, %arg3: memref<1x128xf32, #tpu.memory_space<vmem>>, %arg4: memref<128x128xf32, #tpu.memory_space<vmem>>, %arg5: memref<1x128xf32, #tpu.memory_space<vmem>>, %arg6: memref<128x128xf32, #tpu.memory_space<vmem>>, %arg7: memref<1x128xf32, #tpu.memory_space<vmem>>, %arg8: memref<128x128xf32, #tpu.memory_space<vmem>>, %arg9: memref<1x128xf32, #tpu.memory_space<vmem>>, %arg10: memref<128x128xf32, #tpu.memory_space<vmem>>, %arg11: memref<1x128xf32, #tpu.memory_space<vmem>>, %arg12: memref<128x128xf32, #tpu.memory_space<vmem>>, %arg13: memref<128x128xf32, #tpu.memory_space<vmem>>, %arg14: memref<128x128xf32, #tpu.memory_space<vmem>>) attributes {dimension_semantics = [#tpu.dimension_semantics<parallel>], iteration_bounds = array<i64: 2>, scalar_prefetch = 0 : i64, scratch_operands = 0 : i64, tpu.core_type = #tpu.core_type<tc>, window_params = [{transform_indices = @transform_0, window_bounds = array<i64: 128, 128>}, {pipeline_mode = #tpu.pipeline_mode<synchronous>, transform_indices = @transform_1, window_bounds = array<i64: 128, 128>}, {pipeline_mode = #tpu.pipeline_mode<synchronous>, transform_indices = @transform_2, window_bounds = array<i64: 1, 128>}, {pipeline_mode = #tpu.pipeline_mode<synchronous>, transform_indices = @transform_3, window_bounds = array<i64: 128, 128>}, {pipeline_mode = #tpu.pipeline_mode<synchronous>, transform_indices = @transform_4, window_bounds = array<i64: 1, 128>}, {pipeline_mode = #tpu.pipeline_mode<synchronous>, transform_indices = @transform_5, window_bounds = array<i64: 128, 128>}, {pipeline_mode = #tpu.pipeline_mode<synchronous>, transform_indices = @transform_6, window_bounds = array<i64: 1, 128>}, {pipeline_mode = #tpu.pipeline_mode<synchronous>, transform_indices = @transform_7, window_bounds = array<i64: 128, 128>}, {pipeline_mode = #tpu.pipeline_mode<synchronous>, transform_indices = @transform_8, window_bounds = array<i64: 1, 128>}, {pipeline_mode = #tpu.pipeline_mode<synchronous>, transform_indices = @transform_9, window_bounds = array<i64: 128, 128>}, {pipeline_mode = #tpu.pipeline_mode<synchronous>, transform_indices = @transform_10, window_bounds = array<i64: 1, 128>}, {transform_indices = @transform_11, window_bounds = array<i64: 128, 128>}, {transform_indices = @transform_12, window_bounds = array<i64: 128, 128>}, {transform_indices = @transform_13, window_bounds = array<i64: 128, 128>}]} {
    %c0 = arith.constant 0 : index
    %c0_0 = arith.constant 0 : index
    %0 = vector.load %arg1[%c0, %c0_0] : memref<128x128xf32, #tpu.memory_space<vmem>>, vector<128x128xf32>
    %c0_1 = arith.constant 0 : index
    %c0_2 = arith.constant 0 : index
    %1 = vector.load %arg2[%c0_1, %c0_2] : memref<128x128xf32, #tpu.memory_space<vmem>>, vector<128x128xf32>
    %cst = arith.constant dense<0.000000e+00> : vector<128x128xf32>
    %2 = tpu.matmul %0, %1, %cst {dimension_numbers = #tpu.dot_dimension_numbers<[1], [0], [0], [1], [0, 0, 1, 1], [], []>} : vector<128x128xf32>, vector<128x128xf32>, vector<128x128xf32> -> vector<128x128xf32>
    %c0_3 = arith.constant 0 : index
    %c0_4 = arith.constant 0 : index
    %3 = vector.load %arg3[%c0_3, %c0_4] : memref<1x128xf32, #tpu.memory_space<vmem>>, vector<1x128xf32>
    %4 = vector.broadcast %3 : vector<1x128xf32> to vector<128x128xf32>
    %5 = arith.addf %2, %4 : vector<128x128xf32>
    %cst_5 = arith.constant 0.000000e+00 : f32
    %6 = vector.broadcast %cst_5 : f32 to vector<128x128xf32>
    %7 = arith.maximumf %5, %6 : vector<128x128xf32>
    %c0_6 = arith.constant 0 : index
    %c0_7 = arith.constant 0 : index
    %8 = vector.load %arg4[%c0_6, %c0_7] : memref<128x128xf32, #tpu.memory_space<vmem>>, vector<128x128xf32>
    %cst_8 = arith.constant dense<0.000000e+00> : vector<128x128xf32>
    %9 = tpu.matmul %7, %8, %cst_8 {dimension_numbers = #tpu.dot_dimension_numbers<[1], [0], [0], [1], [0, 0, 1, 1], [], []>} : vector<128x128xf32>, vector<128x128xf32>, vector<128x128xf32> -> vector<128x128xf32>
    %c0_9 = arith.constant 0 : index
    %c0_10 = arith.constant 0 : index
    %10 = vector.load %arg5[%c0_9, %c0_10] : memref<1x128xf32, #tpu.memory_space<vmem>>, vector<1x128xf32>
    %11 = vector.broadcast %10 : vector<1x128xf32> to vector<128x128xf32>
    %12 = arith.addf %9, %11 : vector<128x128xf32>
    %13 = arith.negf %12 : vector<128x128xf32>
    %14 = math.exp %13 : vector<128x128xf32>
    %cst_11 = arith.constant 1.000000e+00 : f32
    %15 = vector.broadcast %cst_11 : f32 to vector<128x128xf32>
    %16 = arith.addf %15, %14 : vector<128x128xf32>
    %17 = arith.divf %15, %16 : vector<128x128xf32>
    %c0_12 = arith.constant 0 : index
    %c0_13 = arith.constant 0 : index
    %18 = vector.load %arg13[%c0_12, %c0_13] : memref<128x128xf32, #tpu.memory_space<vmem>>, vector<128x128xf32>
    tpu.vector_store %arg13[%c0_12, %c0_13], %17 {strides = array<i32>} : memref<128x128xf32, #tpu.memory_space<vmem>>, vector<128x128xf32>,
    %19 = arith.mulf %7, %17 : vector<128x128xf32>
    %c0_14 = arith.constant 0 : index
    %c0_15 = arith.constant 0 : index
    %20 = vector.load %arg6[%c0_14, %c0_15] : memref<128x128xf32, #tpu.memory_space<vmem>>, vector<128x128xf32>
    %cst_16 = arith.constant dense<0.000000e+00> : vector<128x128xf32>
    %21 = tpu.matmul %19, %20, %cst_16 {dimension_numbers = #tpu.dot_dimension_numbers<[1], [0], [0], [1], [0, 0, 1, 1], [], []>} : vector<128x128xf32>, vector<128x128xf32>, vector<128x128xf32> -> vector<128x128xf32>
    %c0_17 = arith.constant 0 : index
    %c0_18 = arith.constant 0 : index
    %22 = vector.load %arg7[%c0_17, %c0_18] : memref<1x128xf32, #tpu.memory_space<vmem>>, vector<1x128xf32>
    %23 = vector.broadcast %22 : vector<1x128xf32> to vector<128x128xf32>
    %24 = arith.addf %21, %23 : vector<128x128xf32>
    %cst_19 = arith.constant 0.000000e+00 : f32
    %25 = vector.broadcast %cst_19 : f32 to vector<128x128xf32>
    %26 = arith.maximumf %24, %25 : vector<128x128xf32>
    %c0_20 = arith.constant 0 : index
    %c0_21 = arith.constant 0 : index
    %27 = vector.load %arg8[%c0_20, %c0_21] : memref<128x128xf32, #tpu.memory_space<vmem>>, vector<128x128xf32>
    %cst_22 = arith.constant dense<0.000000e+00> : vector<128x128xf32>
    %28 = tpu.matmul %26, %27, %cst_22 {dimension_numbers = #tpu.dot_dimension_numbers<[1], [0], [0], [1], [0, 0, 1, 1], [], []>} : vector<128x128xf32>, vector<128x128xf32>, vector<128x128xf32> -> vector<128x128xf32>
    %c0_23 = arith.constant 0 : index
    %c0_24 = arith.constant 0 : index
    %29 = vector.load %arg9[%c0_23, %c0_24] : memref<1x128xf32, #tpu.memory_space<vmem>>, vector<1x128xf32>
    %30 = vector.broadcast %29 : vector<1x128xf32> to vector<128x128xf32>
    %31 = arith.addf %28, %30 : vector<128x128xf32>
    %32 = arith.negf %31 : vector<128x128xf32>
    %33 = math.exp %32 : vector<128x128xf32>
    %cst_25 = arith.constant 1.000000e+00 : f32
    %34 = vector.broadcast %cst_25 : f32 to vector<128x128xf32>
    %35 = arith.addf %34, %33 : vector<128x128xf32>
    %36 = arith.divf %34, %35 : vector<128x128xf32>
    %c0_26 = arith.constant 0 : index
    %c0_27 = arith.constant 0 : index
    %37 = vector.load %arg14[%c0_26, %c0_27] : memref<128x128xf32, #tpu.memory_space<vmem>>, vector<128x128xf32>
    tpu.vector_store %arg14[%c0_26, %c0_27], %36 {strides = array<i32>} : memref<128x128xf32, #tpu.memory_space<vmem>>, vector<128x128xf32>,
    %38 = arith.mulf %26, %36 : vector<128x128xf32>
    %c0_28 = arith.constant 0 : index
    %c0_29 = arith.constant 0 : index
    %39 = vector.load %arg10[%c0_28, %c0_29] : memref<128x128xf32, #tpu.memory_space<vmem>>, vector<128x128xf32>
    %cst_30 = arith.constant dense<0.000000e+00> : vector<128x128xf32>
    %40 = tpu.matmul %38, %39, %cst_30 {dimension_numbers = #tpu.dot_dimension_numbers<[1], [0], [0], [1], [0, 0, 1, 1], [], []>} : vector<128x128xf32>, vector<128x128xf32>, vector<128x128xf32> -> vector<128x128xf32>
    %c0_31 = arith.constant 0 : index
    %c0_32 = arith.constant 0 : index
    %41 = vector.load %arg11[%c0_31, %c0_32] : memref<1x128xf32, #tpu.memory_space<vmem>>, vector<1x128xf32>
    %42 = vector.broadcast %41 : vector<1x128xf32> to vector<128x128xf32>
    %43 = arith.addf %40, %42 : vector<128x128xf32>
    %c0_33 = arith.constant 0 : index
    %c0_34 = arith.constant 0 : index
    %44 = vector.load %arg12[%c0_33, %c0_34] : memref<128x128xf32, #tpu.memory_space<vmem>>, vector<128x128xf32>
    tpu.vector_store %arg12[%c0_33, %c0_34], %43 {strides = array<i32>} : memref<128x128xf32, #tpu.memory_space<vmem>>, vector<128x128xf32>,
    return
  }
  func.func @transform_0(%arg0: i32) -> (i32, i32) {
    %c0_i32 = arith.constant 0 : i32
    %c0_i32_0 = arith.constant 0 : i32
    return %arg0, %c0_i32 : i32, i32
  }
  func.func @transform_1(%arg0: i32) -> (i32, i32) {
    %c0_i32 = arith.constant 0 : i32
    %c0_i32_0 = arith.constant 0 : i32
    %c0_i32_1 = arith.constant 0 : i32
    return %c0_i32, %c0_i32_0 : i32, i32
  }
  func.func @transform_2(%arg0: i32) -> (i32, i32) {
    %c0_i32 = arith.constant 0 : i32
    %c0_i32_0 = arith.constant 0 : i32
    %c0_i32_1 = arith.constant 0 : i32
    return %c0_i32, %c0_i32_0 : i32, i32
  }
  func.func @transform_3(%arg0: i32) -> (i32, i32) {
    %c0_i32 = arith.constant 0 : i32
    %c0_i32_0 = arith.constant 0 : i32
    %c0_i32_1 = arith.constant 0 : i32
    return %c0_i32, %c0_i32_0 : i32, i32
  }
  func.func @transform_4(%arg0: i32) -> (i32, i32) {
    %c0_i32 = arith.constant 0 : i32
    %c0_i32_0 = arith.constant 0 : i32
    %c0_i32_1 = arith.constant 0 : i32
    return %c0_i32, %c0_i32_0 : i32, i32
  }
  func.func @transform_5(%arg0: i32) -> (i32, i32) {
    %c0_i32 = arith.constant 0 : i32
    %c0_i32_0 = arith.constant 0 : i32
    %c0_i32_1 = arith.constant 0 : i32
    return %c0_i32, %c0_i32_0 : i32, i32
  }
  func.func @transform_6(%arg0: i32) -> (i32, i32) {
    %c0_i32 = arith.constant 0 : i32
    %c0_i32_0 = arith.constant 0 : i32
    %c0_i32_1 = arith.constant 0 : i32
    return %c0_i32, %c0_i32_0 : i32, i32
  }
  func.func @transform_7(%arg0: i32) -> (i32, i32) {
    %c0_i32 = arith.constant 0 : i32
    %c0_i32_0 = arith.constant 0 : i32
    %c0_i32_1 = arith.constant 0 : i32
    return %c0_i32, %c0_i32_0 : i32, i32
  }
  func.func @transform_8(%arg0: i32) -> (i32, i32) {
    %c0_i32 = arith.constant 0 : i32
    %c0_i32_0 = arith.constant 0 : i32
    %c0_i32_1 = arith.constant 0 : i32
    return %c0_i32, %c0_i32_0 : i32, i32
  }
  func.func @transform_9(%arg0: i32) -> (i32, i32) {
    %c0_i32 = arith.constant 0 : i32
    %c0_i32_0 = arith.constant 0 : i32
    %c0_i32_1 = arith.constant 0 : i32
    return %c0_i32, %c0_i32_0 : i32, i32
  }
  func.func @transform_10(%arg0: i32) -> (i32, i32) {
    %c0_i32 = arith.constant 0 : i32
    %c0_i32_0 = arith.constant 0 : i32
    %c0_i32_1 = arith.constant 0 : i32
    return %c0_i32, %c0_i32_0 : i32, i32
  }
  func.func @transform_11(%arg0: i32) -> (i32, i32) {
    %c0_i32 = arith.constant 0 : i32
    %c0_i32_0 = arith.constant 0 : i32
    return %arg0, %c0_i32 : i32, i32
  }
  func.func @transform_12(%arg0: i32) -> (i32, i32) {
    %c0_i32 = arith.constant 0 : i32
    %c0_i32_0 = arith.constant 0 : i32
    return %arg0, %c0_i32 : i32, i32
  }
  func.func @transform_13(%arg0: i32) -> (i32, i32) {
    %c0_i32 = arith.constant 0 : i32
    %c0_i32_0 = arith.constant 0 : i32
    return %arg0, %c0_i32 : i32, i32
  }
}

module attributes {stable_mosaic.version = 11 : i64} {
  func.func @_deep_gated_mlp_kernel(%arg0: i32, %arg1: memref<128x128xf32, #tpu.memory_space<vmem>>, %arg2: memref<128x128xf32, #tpu.memory_space<vmem>>, %arg3: memref<1x128xf32, #tpu.memory_space<vmem>>, %arg4: memref<128x128xf32, #tpu.memory_space<vmem>>, %arg5: memref<1x128xf32, #tpu.memory_space<vmem>>, %arg6: memref<128x128xf32, #tpu.memory_space<vmem>>, %arg7: memref<1x128xf32, #tpu.memory_space<vmem>>, %arg8: memref<128x128xf32, #tpu.memory_space<vmem>>, %arg9: memref<1x128xf32, #tpu.memory_space<vmem>>, %arg10: memref<128x128xf32, #tpu.memory_space<vmem>>, %arg11: memref<1x128xf32, #tpu.memory_space<vmem>>, %arg12: memref<128x128xf32, #tpu.memory_space<vmem>>, %arg13: memref<128x128xf32, #tpu.memory_space<vmem>>, %arg14: memref<128x128xf32, #tpu.memory_space<vmem>>) attributes {dimension_semantics = [#tpu.dimension_semantics<parallel>], iteration_bounds = array<i64: 2>, scalar_prefetch = 0 : i64, scratch_operands = 0 : i64, tpu.core_type = #tpu.core_type<tc>, window_params = [{transform_indices = @transform_0, window_bounds = array<i64: 128, 128>}, {pipeline_mode = #tpu.pipeline_mode<synchronous>, transform_indices = @transform_1, window_bounds = array<i64: 128, 128>}, {pipeline_mode = #tpu.pipeline_mode<synchronous>, transform_indices = @transform_2, window_bounds = array<i64: 1, 128>}, {pipeline_mode = #tpu.pipeline_mode<synchronous>, transform_indices = @transform_3, window_bounds = array<i64: 128, 128>}, {pipeline_mode = #tpu.pipeline_mode<synchronous>, transform_indices = @transform_4, window_bounds = array<i64: 1, 128>}, {pipeline_mode = #tpu.pipeline_mode<synchronous>, transform_indices = @transform_5, window_bounds = array<i64: 128, 128>}, {pipeline_mode = #tpu.pipeline_mode<synchronous>, transform_indices = @transform_6, window_bounds = array<i64: 1, 128>}, {pipeline_mode = #tpu.pipeline_mode<synchronous>, transform_indices = @transform_7, window_bounds = array<i64: 128, 128>}, {pipeline_mode = #tpu.pipeline_mode<synchronous>, transform_indices = @transform_8, window_bounds = array<i64: 1, 128>}, {pipeline_mode = #tpu.pipeline_mode<synchronous>, transform_indices = @transform_9, window_bounds = array<i64: 128, 128>}, {pipeline_mode = #tpu.pipeline_mode<synchronous>, transform_indices = @transform_10, window_bounds = array<i64: 1, 128>}, {transform_indices = @transform_11, window_bounds = array<i64: 128, 128>}, {transform_indices = @transform_12, window_bounds = array<i64: 128, 128>}, {transform_indices = @transform_13, window_bounds = array<i64: 128, 128>}]} {
    %c0 = arith.constant 0 : index
    %c0_0 = arith.constant 0 : index
    %0 = vector.load %arg1[%c0, %c0_0] : memref<128x128xf32, #tpu.memory_space<vmem>>, vector<128x128xf32>
    %c0_1 = arith.constant 0 : index
    %c0_2 = arith.constant 0 : index
    %1 = vector.load %arg2[%c0_1, %c0_2] : memref<128x128xf32, #tpu.memory_space<vmem>>, vector<128x128xf32>
    %cst = arith.constant dense<0.000000e+00> : vector<128x128xf32>
    %2 = tpu.matmul %0, %1, %cst {dimension_numbers = #tpu.dot_dimension_numbers<[1], [0], [0], [1], [0, 0, 1, 1], [], []>} : vector<128x128xf32>, vector<128x128xf32>, vector<128x128xf32> -> vector<128x128xf32>
    %c0_3 = arith.constant 0 : index
    %c0_4 = arith.constant 0 : index
    %3 = vector.load %arg3[%c0_3, %c0_4] : memref<1x128xf32, #tpu.memory_space<vmem>>, vector<1x128xf32>
    %4 = vector.broadcast %3 : vector<1x128xf32> to vector<128x128xf32>
    %5 = arith.addf %2, %4 : vector<128x128xf32>
    %cst_5 = arith.constant 0.000000e+00 : f32
    %6 = vector.broadcast %cst_5 : f32 to vector<128x128xf32>
    %7 = arith.maximumf %5, %6 : vector<128x128xf32>
    %c0_6 = arith.constant 0 : index
    %c0_7 = arith.constant 0 : index
    %8 = vector.load %arg4[%c0_6, %c0_7] : memref<128x128xf32, #tpu.memory_space<vmem>>, vector<128x128xf32>
    %cst_8 = arith.constant dense<0.000000e+00> : vector<128x128xf32>
    %9 = tpu.matmul %7, %8, %cst_8 {dimension_numbers = #tpu.dot_dimension_numbers<[1], [0], [0], [1], [0, 0, 1, 1], [], []>} : vector<128x128xf32>, vector<128x128xf32>, vector<128x128xf32> -> vector<128x128xf32>
    %c0_9 = arith.constant 0 : index
    %c0_10 = arith.constant 0 : index
    %10 = vector.load %arg5[%c0_9, %c0_10] : memref<1x128xf32, #tpu.memory_space<vmem>>, vector<1x128xf32>
    %11 = vector.broadcast %10 : vector<1x128xf32> to vector<128x128xf32>
    %12 = arith.addf %9, %11 : vector<128x128xf32>
    %13 = arith.negf %12 : vector<128x128xf32>
    %14 = math.exp %13 : vector<128x128xf32>
    %cst_11 = arith.constant 1.000000e+00 : f32
    %15 = vector.broadcast %cst_11 : f32 to vector<128x128xf32>
    %16 = arith.addf %15, %14 : vector<128x128xf32>
    %17 = arith.divf %15, %16 : vector<128x128xf32>
    %c0_12 = arith.constant 0 : index
    %c0_13 = arith.constant 0 : index
    %18 = vector.load %arg13[%c0_12, %c0_13] : memref<128x128xf32, #tpu.memory_space<vmem>>, vector<128x128xf32>
    tpu.vector_store %arg13[%c0_12, %c0_13], %17 {strides = array<i32>} : memref<128x128xf32, #tpu.memory_space<vmem>>, vector<128x128xf32>,
    %19 = arith.mulf %7, %17 : vector<128x128xf32>
    %c0_14 = arith.constant 0 : index
    %c0_15 = arith.constant 0 : index
    %20 = vector.load %arg6[%c0_14, %c0_15] : memref<128x128xf32, #tpu.memory_space<vmem>>, vector<128x128xf32>
    %cst_16 = arith.constant dense<0.000000e+00> : vector<128x128xf32>
    %21 = tpu.matmul %19, %20, %cst_16 {dimension_numbers = #tpu.dot_dimension_numbers<[1], [0], [0], [1], [0, 0, 1, 1], [], []>} : vector<128x128xf32>, vector<128x128xf32>, vector<128x128xf32> -> vector<128x128xf32>
    %c0_17 = arith.constant 0 : index
    %c0_18 = arith.constant 0 : index
    %22 = vector.load %arg7[%c0_17, %c0_18] : memref<1x128xf32, #tpu.memory_space<vmem>>, vector<1x128xf32>
    %23 = vector.broadcast %22 : vector<1x128xf32> to vector<128x128xf32>
    %24 = arith.addf %21, %23 : vector<128x128xf32>
    %cst_19 = arith.constant 0.000000e+00 : f32
    %25 = vector.broadcast %cst_19 : f32 to vector<128x128xf32>
    %26 = arith.maximumf %24, %25 : vector<128x128xf32>
    %c0_20 = arith.constant 0 : index
    %c0_21 = arith.constant 0 : index
    %27 = vector.load %arg8[%c0_20, %c0_21] : memref<128x128xf32, #tpu.memory_space<vmem>>, vector<128x128xf32>
    %cst_22 = arith.constant dense<0.000000e+00> : vector<128x128xf32>
    %28 = tpu.matmul %26, %27, %cst_22 {dimension_numbers = #tpu.dot_dimension_numbers<[1], [0], [0], [1], [0, 0, 1, 1], [], []>} : vector<128x128xf32>, vector<128x128xf32>, vector<128x128xf32> -> vector<128x128xf32>
    %c0_23 = arith.constant 0 : index
    %c0_24 = arith.constant 0 : index
    %29 = vector.load %arg9[%c0_23, %c0_24] : memref<1x128xf32, #tpu.memory_space<vmem>>, vector<1x128xf32>
    %30 = vector.broadcast %29 : vector<1x128xf32> to vector<128x128xf32>
    %31 = arith.addf %28, %30 : vector<128x128xf32>
    %32 = arith.negf %31 : vector<128x128xf32>
    %33 = math.exp %32 : vector<128x128xf32>
    %cst_25 = arith.constant 1.000000e+00 : f32
    %34 = vector.broadcast %cst_25 : f32 to vector<128x128xf32>
    %35 = arith.addf %34, %33 : vector<128x128xf32>
    %36 = arith.divf %34, %35 : vector<128x128xf32>
    %c0_26 = arith.constant 0 : index
    %c0_27 = arith.constant 0 : index
    %37 = vector.load %arg14[%c0_26, %c0_27] : memref<128x128xf32, #tpu.memory_space<vmem>>, vector<128x128xf32>
    tpu.vector_store %arg14[%c0_26, %c0_27], %36 {strides = array<i32>} : memref<128x128xf32, #tpu.memory_space<vmem>>, vector<128x128xf32>,
    %38 = arith.mulf %26, %36 : vector<128x128xf32>
    %c0_28 = arith.constant 0 : index
    %c0_29 = arith.constant 0 : index
    %39 = vector.load %arg10[%c0_28, %c0_29] : memref<128x128xf32, #tpu.memory_space<vmem>>, vector<128x128xf32>
    %cst_30 = arith.constant dense<0.000000e+00> : vector<128x128xf32>
    %40 = tpu.matmul %38, %39, %cst_30 {dimension_numbers = #tpu.dot_dimension_numbers<[1], [0], [0], [1], [0, 0, 1, 1], [], []>} : vector<128x128xf32>, vector<128x128xf32>, vector<128x128xf32> -> vector<128x128xf32>
    %c0_31 = arith.constant 0 : index
    %c0_32 = arith.constant 0 : index
    %41 = vector.load %arg11[%c0_31, %c0_32] : memref<1x128xf32, #tpu.memory_space<vmem>>, vector<1x128xf32>
    %42 = vector.broadcast %41 : vector<1x128xf32> to vector<128x128xf32>
    %43 = arith.addf %40, %42 : vector<128x128xf32>
    %c0_33 = arith.constant 0 : index
    %c0_34 = arith.constant 0 : index
    %44 = vector.load %arg12[%c0_33, %c0_34] : memref<128x128xf32, #tpu.memory_space<vmem>>, vector<128x128xf32>
    tpu.vector_store %arg12[%c0_33, %c0_34], %43 {strides = array<i32>} : memref<128x128xf32, #tpu.memory_space<vmem>>, vector<128x128xf32>,
    return
  }
  func.func @transform_0(%arg0: i32) -> (i32, i32) {
    %c0_i32 = arith.constant 0 : i32
    %c0_i32_0 = arith.constant 0 : i32
    return %arg0, %c0_i32 : i32, i32
  }
  func.func @transform_1(%arg0: i32) -> (i32, i32) {
    %c0_i32 = arith.constant 0 : i32
    %c0_i32_0 = arith.constant 0 : i32
    %c0_i32_1 = arith.constant 0 : i32
    return %c0_i32, %c0_i32_0 : i32, i32
  }
  func.func @transform_2(%arg0: i32) -> (i32, i32) {
    %c0_i32 = arith.constant 0 : i32
    %c0_i32_0 = arith.constant 0 : i32
    %c0_i32_1 = arith.constant 0 : i32
    return %c0_i32, %c0_i32_0 : i32, i32
  }
  func.func @transform_3(%arg0: i32) -> (i32, i32) {
    %c0_i32 = arith.constant 0 : i32
    %c0_i32_0 = arith.constant 0 : i32
    %c0_i32_1 = arith.constant 0 : i32
    return %c0_i32, %c0_i32_0 : i32, i32
  }
  func.func @transform_4(%arg0: i32) -> (i32, i32) {
    %c0_i32 = arith.constant 0 : i32
    %c0_i32_0 = arith.constant 0 : i32
    %c0_i32_1 = arith.constant 0 : i32
    return %c0_i32, %c0_i32_0 : i32, i32
  }
  func.func @transform_5(%arg0: i32) -> (i32, i32) {
    %c0_i32 = arith.constant 0 : i32
    %c0_i32_0 = arith.constant 0 : i32
    %c0_i32_1 = arith.constant 0 : i32
    return %c0_i32, %c0_i32_0 : i32, i32
  }
  func.func @transform_6(%arg0: i32) -> (i32, i32) {
    %c0_i32 = arith.constant 0 : i32
    %c0_i32_0 = arith.constant 0 : i32
    %c0_i32_1 = arith.constant 0 : i32
    return %c0_i32, %c0_i32_0 : i32, i32
  }
  func.func @transform_7(%arg0: i32) -> (i32, i32) {
    %c0_i32 = arith.constant 0 : i32
    %c0_i32_0 = arith.constant 0 : i32
    %c0_i32_1 = arith.constant 0 : i32
    return %c0_i32, %c0_i32_0 : i32, i32
  }
  func.func @transform_8(%arg0: i32) -> (i32, i32) {
    %c0_i32 = arith.constant 0 : i32
    %c0_i32_0 = arith.constant 0 : i32
    %c0_i32_1 = arith.constant 0 : i32
    return %c0_i32, %c0_i32_0 : i32, i32
  }
  func.func @transform_9(%arg0: i32) -> (i32, i32) {
    %c0_i32 = arith.constant 0 : i32
    %c0_i32_0 = arith.constant 0 : i32
    %c0_i32_1 = arith.constant 0 : i32
    return %c0_i32, %c0_i32_0 : i32, i32
  }
  func.func @transform_10(%arg0: i32) -> (i32, i32) {
    %c0_i32 = arith.constant 0 : i32
    %c0_i32_0 = arith.constant 0 : i32
    %c0_i32_1 = arith.constant 0 : i32
    return %c0_i32, %c0_i32_0 : i32, i32
  }
  func.func @transform_11(%arg0: i32) -> (i32, i32) {
    %c0_i32 = arith.constant 0 : i32
    %c0_i32_0 = arith.constant 0 : i32
    return %arg0, %c0_i32 : i32, i32
  }
  func.func @transform_12(%arg0: i32) -> (i32, i32) {
    %c0_i32 = arith.constant 0 : i32
    %c0_i32_0 = arith.constant 0 : i32
    return %arg0, %c0_i32 : i32, i32
  }
  func.func @transform_13(%arg0: i32) -> (i32, i32) {
    %c0_i32 = arith.constant 0 : i32
    %c0_i32_0 = arith.constant 0 : i32
    return %arg0, %c0_i32 : i32, i32
  }
}

</mosaic_0001>

<bundles_post_ra>
// kernel: tpu_custom_call.1
= control target key start
LH: loop header
LB: loop body
LE: loop exit
PB: predicated region body
PF: predicated region fallthrough
CT: control target
= control target key end

     0   :  { %s3785_s0 = inlined_call_operand.hbm [shape: f32[256,128], index: 0, kind: input, shape index: {}]   ;;  %s3786_s1 = inlined_call_operand.hbm [shape: f32[128,128], index: 1, kind: input, shape index: {}]   ;;  %s3787_s2 = inlined_call_operand.vmem [shape: f32[1,128], index: 2, kind: input, shape index: {}]   ;;  %s3788_s3 = inlined_call_operand.hbm [shape: f32[128,128], index: 3, kind: input, shape index: {}]   ;;  %s3789_s4 = inlined_call_operand.vmem [shape: f32[1,128], index: 4, kind: input, shape index: {}]   ;;  %s3790_s5 = inlined_call_operand.hbm [shape: f32[128,128], index: 5, kind: input, shape index: {}]   ;;  %s3791_s6 = inlined_call_operand.vmem [shape: f32[1,128], index: 6, kind: input, shape index: {}]   ;;  %s3792_s7 = inlined_call_operand.hbm [shape: f32[128,128], index: 7, kind: input, shape index: {}]   ;;  %s3793_s8 = inlined_call_operand.vmem [shape: f32[1,128], index: 8, kind: input, shape index: {}]   ;;  %s3794_s9 = inlined_call_operand.hbm [shape: f32[128,128], index: 9, kind: input, shape index: {}]   ;;  %s3795_s10 = inlined_call_operand.vmem [shape: f32[1,128], index: 10, kind: input, shape index: {}]   ;;  %s3796_s11 = inlined_call_operand.hbm [shape: f32[256,128], index: 11, kind: output, shape index: {0}]   ;;  %s3797_s12 = inlined_call_operand.hbm [shape: f32[256,128], index: 12, kind: output, shape index: {1}]   ;;  %s3798_s13 = inlined_call_operand.hbm [shape: f32[256,128], index: 13, kind: output, shape index: {2}]  }
   0x1   :  { %3807 = sst [smem:[#allocation25_spill]] %s3785_s0 }
   0x2   :  { %3808 = sst [smem:[#allocation26_spill]] %s3786_s1 }
   0x3   :  { %3809 = sst [smem:[#allocation27_spill]] %s3788_s3 }
   0x4   :  { %3810 = sst [smem:[#allocation28_spill]] %s3790_s5 }
   0x5   :  { %3811 = sst [smem:[#allocation29_spill]] %s3792_s7 }
   0x6   :  { %3812 = sst [smem:[#allocation30_spill]] %s3794_s9 }
   0x7   :  { %19 = vsyncpa [#allocation3], 0 }
   0x8   :  { %21 = vsyncpa [#allocation3 + $0x1], 0 }
   0x9   :  { %22 = vsyncpa [#allocation6], 0 }
   0xa   :  { %23 = vsyncpa [#allocation9], 0 }
   0xb   :  { %24 = vsyncpa [#allocation12], 0 }
   0xc   :  { %25 = vsyncpa [#allocation4], 0 }
   0xd   :  { %27 = vsyncpa [#allocation4 + $0x1], 0 }
   0xe   :  { %28 = vsyncpa [#allocation15], 0 }
   0xf   :  { %30 = vsyncpa [#allocation15 + $0x1], 0  ;;  %s3111_s25 = smov 0   ;;  %s3113_s26 = smov 0  }
  0x10   :  { %s3115_s27 = smov 0   ;;  %s3117_s28 = smov 0  }
  0x11 LB: > { %3813 = sst [smem:[#allocation23_spill]] %s3022_s27  ;;  %s3028_s29 = smov [#allocation5]   ;;  %s3026_s28 = sphi %s3117_s28, %s3846_s28   ;;  %s3022_s27 = sphi %s3115_s27, %s3843_s27   ;;  %s3018_s26 = sphi %s3113_s26, %s3845_s26   ;;  %s3014_s25 = sphi %s3111_s25, %s3844_s25  }
  0x12   : > { %s367_s30 = sshll.u32 %s3028_s29, 4  ;;  %s3132_s14 = sadd.s32 4294967295, %s3026_s28   ;;  %s368_s30 = int_to_ptr.vmem [resolvable:$true] %s367_s30 }
  0x13   : > { %p1953_p0 = scmp.ge.s32.totalorder %s3026_s28, 1  ;;  %p3802_p1 = scmp.eq.s32.totalorder %s3132_s14, 0 }
  0x14   : > { %p355_p2 = scmp.lt.s32.totalorder %s3026_s28, 3  ;;  %s3029_s16 = smov [#allocation8]  }
  0x15   : > { %s399_s17 = sshll.u32 %s3029_s16, 4  ;;  %s3030_s19 = smov [#allocation7]   ;;  %s3150_s17 = int_to_ptr.vmem [resolvable:$true] %s399_s17 }
  0x16   : > { %p3137_p3 = pnand %p1953_p0, %p355_p2  ;;  %s383_s20 = sshll.u32 %s3030_s19, 4  ;;  %s3152_s20 = int_to_ptr.vmem [resolvable:$true] %s383_s20 }
  0x17   : > { %s2747_s22 = scalar_lea.vmem %s368_s30, 2048  ;;  %p2755_p11 = scmp.lt.s32.totalorder %s368_s30, %s368_s30 }
  0x18   : > { %s3814_s15 = scalar_select %p3137_p3, 1, 0 }
  0x19   : > { %p2525_p5 = pneg %p3137_p3  ;;  %p2748_p8 = scmp.ne.s32.totalorder %s368_s30, %s2747_s22 }
  0x1a   : > { %p2756_p12 = scmp.lt.s32.totalorder %s2747_s22, %s2747_s22 }
  0x1b   : > { %p3146_p6 = pnand %p2525_p5, %p3802_p1 }
  0x1c   : > { %p2757_p13 = por %p2756_p12, %p2755_p11 }
  0x1d   : > { %p3156_p7 = pneg %p3146_p6 }
  0x1f   : > { %p2750_p9 = pnand %p2748_p8, %p3156_p7 }
  0x21   : > { %p2751_p10 = pneg %p2750_p9 }
  0x23   : > { %p2758_p0 = pnand %p2757_p13, %p2751_p10 }
  0x25   : > { %2761 = shalt.err (!%p2758_p0)
}
  0x26   : > { %s3799_s23 = smov 128   ;;  %s3800_s24 = smov 8  }
  0x27   : > { %s3817_s1 = sld [smem:[#allocation26_spill]]  ;;  %s2773_s19 = scalar_lea.vmem %s3150_s17, 2048 }
  0x28   : > { %p2774_p2 = scmp.ne.s32.totalorder %s3150_s17, %s2773_s19  ;;  %p2781_p9 = scmp.lt.s32.totalorder %s3150_s17, %s3150_s17 }
  0x29   : > { %p2782_p10 = scmp.lt.s32.totalorder %s2773_s19, %s2773_s19 }
  0x2a   : > { %p2776_p5 = pnand %p2774_p2, %p3156_p7 }
  0x2b   : > { %p2783_p11 = por %p2782_p10, %p2781_p9 }
  0x2c   : > { %p2777_p8 = pneg %p2776_p5 }
  0x2d   : > { %2528 = dma.hbm_to_vmem [thread:$0]  (!%p3146_p6), %s3817_s1, 2048, %s368_s30, [#allocation6], %s3799_s23, %s3799_s23, %s3800_s24  }
  0x2e   : > { %p2784_p12 = pnand %p2783_p11, %p2777_p8 }
  0x30   : > { %2787 = shalt.err (!%p2784_p12)
}
  0x31   : > { %s3818_s5 = sld [smem:[#allocation28_spill]]  ;;  %s2799_s30 = scalar_lea.vmem %s3152_s20, 2048 }
  0x32   : > { %p2800_p13 = scmp.ne.s32.totalorder %s3152_s20, %s2799_s30  ;;  %p2807_p5 = scmp.lt.s32.totalorder %s3152_s20, %s3152_s20 }
  0x33   : > { %p2808_p8 = scmp.lt.s32.totalorder %s2799_s30, %s2799_s30 }
  0x34   : > { %p2802_p0 = pnand %p2800_p13, %p3156_p7 }
  0x35   : > { %p2809_p9 = por %p2808_p8, %p2807_p5 }
  0x36   : > { %p2803_p2 = pneg %p2802_p0 }
  0x37   : > { %2534 = dma.hbm_to_vmem [thread:$0]  (!%p3146_p6), %s3818_s5, 2048, %s3150_s17, [#allocation9], %s3799_s23, %s3799_s23, %s3800_s24  }
  0x38   : > { %p2810_p10 = pnand %p2809_p9, %p2803_p2 }
  0x3a   : > { %2813 = shalt.err (!%p2810_p10)
}
  0x3b   : > { %s3819_s3 = sld [smem:[#allocation27_spill]]  ;;  %s3033_s17 = smov [#allocation10]  }
  0x3c   : > { %s415_s22 = sshll.u32 %s3033_s17, 4  ;;  %s3034_s29 = smov [#allocation11]   ;;  %s416_s22 = int_to_ptr.vmem [resolvable:$true] %s415_s22 }
  0x3d   : > { %s431_s1 = sshll.u32 %s3034_s29, 4  ;;  %s2825_s30 = scalar_lea.vmem %s416_s22, 2048  ;;  %s432_s1 = int_to_ptr.vmem [resolvable:$true] %s431_s1 }
  0x3e   : > { %p2826_p11 = scmp.ne.s32.totalorder %s416_s22, %s2825_s30  ;;  %p2833_p0 = scmp.lt.s32.totalorder %s416_s22, %s416_s22 }
  0x3f   : > { %p2834_p2 = scmp.lt.s32.totalorder %s2825_s30, %s2825_s30 }
  0x40   : > { %p2828_p12 = pnand %p2826_p11, %p3156_p7 }
  0x41   : > { %2531 = dma.hbm_to_vmem [thread:$0]  (!%p3146_p6), %s3819_s3, 2048, %s3152_s20, [#allocation6], %s3799_s23, %s3799_s23, %s3800_s24  }
  0x42   : > { %p2829_p13 = pneg %p2828_p12  ;;  %p2835_p5 = por %p2834_p2, %p2833_p0 }
  0x44   : > { %p2836_p8 = pnand %p2835_p5, %p2829_p13 }
  0x46   : > { %2839 = shalt.err (!%p2836_p8)
}
  0x47   : > { %s3820_s7 = sld [smem:[#allocation29_spill]]  ;;  %s2851_s19 = scalar_lea.vmem %s432_s1, 2048 }
  0x48   : > { %p2852_p9 = scmp.ne.s32.totalorder %s432_s1, %s2851_s19  ;;  %p2859_p12 = scmp.lt.s32.totalorder %s432_s1, %s432_s1 }
  0x49   : > { %p2860_p0 = scmp.lt.s32.totalorder %s2851_s19, %s2851_s19 }
  0x4a   : > { %p2854_p10 = pnand %p2852_p9, %p3156_p7 }
  0x4b   : > { %p2861_p13 = por %p2860_p0, %p2859_p12 }
  0x4c   : > { %p2855_p11 = pneg %p2854_p10 }
  0x4d   : > { %2537 = dma.hbm_to_vmem [thread:$0]  (!%p3146_p6), %s3820_s7, 2048, %s416_s22, [#allocation9], %s3799_s23, %s3799_s23, %s3800_s24  }
  0x4e   : > { %p2862_p2 = pnand %p2861_p13, %p2855_p11 }
  0x50   : > { %2865 = shalt.err (!%p2862_p2)
}
  0x51   : > { %s3821_s9 = sld [smem:[#allocation30_spill]]  ;;  %s3801_s18 = sadd.s32 4294967294, %s3026_s28  }
  0x52   : > { %s3222_s21 = sadd.s32 1, %s3026_s28   ;;  %s43_s22 = sadd.s32 1, %s3022_s27 }
  0x53   : > { %s40_s30 = ssub.s32 %s3026_s28, %s3222_s21  ;;  %p50_p7 = scmp.ne.s32.totalorder %s3022_s27, %s3018_s26 }
  0x54   : > { %p41_p5 = scmp.eq.s32.totalorder %s40_s30, 0  ;;  %p51_p8 = scmp.eq.s32.totalorder %s3026_s28, 0 }
  0x55   : > { %p56_p9 = scmp.ne.s32.totalorder %s3018_s26, %s3014_s25  ;;  %p290_p10 = scmp.eq.s32.totalorder %s3132_s14, 1 }
  0x56   : > { %s3234_s20 = scalar_select %p41_p5, %s3022_s27, %s43_s22  }
  0x57   : > { %2540 = dma.hbm_to_vmem [thread:$0]  (!%p3146_p6), %s3821_s9, 2048, %s432_s1, [#allocation12], %s3799_s23, %s3799_s23, %s3800_s24  }
  0x58   : > { %3822 = sst [smem:[#allocation24_spill]] %s3234_s20  ;;  %p52_p11 = por %p51_p8, %p50_p7 }
  0x59   : > { %p3238_p12 = por %p3802_p1, %p56_p9  ;;  %p3242_p6 = por %p290_p10, %p50_p7 }
  0x5a   : > { %p296_p0 = scmp.eq.s32.totalorder %s3801_s18, 1  ;;  %p2560_p13 = scmp.lt.s32.totalorder %s3026_s28, 2 }
  0x5b   : > { %s3823_s16 = scalar_select %p3238_p12, 1, 0 }
  0x5c   : > { %s3824_s1 = scalar_select %p3242_p6, 1, 0 }
  0x5d   : > { %s448_s19 = sand.u32 1, %s3022_s27   ;;  %p3250_p2 = por %p296_p0, %p56_p9 }
  0x5e   : > { %s1960_s29 = sshll.u32 %s448_s19, 7  ;;  %s2021_s22 = sshll.u32 %s3026_s28, 11 }
  0x5f   : > { %s3825_s17 = scalar_select %p3250_p2, 1, 0 }
  0x60   : > { %s3826_s0 = sld [smem:[#allocation25_spill]]  ;;  %s452_s3 = scalar_lea.vmem [#allocation2], %s1960_s29 }
  0x61   : > { %s459_s5 = sshll.u32 %s452_s3, 4  ;;  %p3260_p7 = pnand %p2560_p13, %p52_p11  ;;  %s3264_s5 = int_to_ptr.vmem [resolvable:$true] %s459_s5 }
  0x62   : > { %s3266_s7 = scalar_lea.sflag [#allocation3], %s448_s19 }
  0x63   : > { %p2868_p8 = pneg %p3260_p7 }
  0x66   : > { %s3258_s24 = scalar_lea.hbm %s3826_s0, %s2021_s22  ;;  %s2871_s29 = scalar_lea.hbm %s3826_s0, 4096 }
  0x67   : > { %s2866_s9 = scalar_lea.hbm %s3258_s24, 2048  ;;  %p2872_p11 = scmp.lt.s32.totalorder %s3258_s24, %s3826_s0 }
  0x68   : > { %p2867_p5 = scmp.ne.s32.totalorder %s3258_s24, %s2866_s9  ;;  %p2873_p0 = scmp.lt.s32.totalorder %s2871_s29, %s2866_s9 }
  0x6a   : > { %p2869_p9 = pnand %p2868_p8, %p2867_p5  ;;  %p2874_p13 = por %p2873_p0, %p2872_p11 }
  0x6c   : > { %p2870_p10 = pneg %p2869_p9 }
  0x6e   : > { %p2875_p4 = pnand %p2874_p13, %p2870_p10 }
  0x70   : > { %2878 = shalt.err (!%p2875_p4)
}
  0x71   : > { %s2879_s19 = scalar_lea.vmem %s3264_s5, 2048  ;;  %s3035_s20 = smov [#allocation2]  }
  0x72   : > { %p2880_p1 = scmp.ne.s32.totalorder %s3264_s5, %s2879_s19  ;;  %s2884_s27 = sshll.u32 %s3035_s20, 4  ;;  %s2885_s27 = int_to_ptr.vmem [resolvable:$false] %s2884_s27 }
  0x73   : > { %s2886_s23 = scalar_lea.vmem %s2885_s27, 4096  ;;  %p2887_p9 = scmp.lt.s32.totalorder %s3264_s5, %s2885_s27 }
  0x74   : > { %p2882_p2 = pnand %p2880_p1, %p2868_p8  ;;  %p2888_p6 = scmp.lt.s32.totalorder %s2886_s23, %s2879_s19 }
  0x76   : > { %p2883_p5 = pneg %p2882_p2  ;;  %p2889_p12 = por %p2888_p6, %p2887_p9 }
  0x78   : > { %p2890_p3 = pnand %p2889_p12, %p2883_p5 }
  0x7a   : > { %2893 = shalt.err (!%p2890_p3)
}
  0x7b   : > { %s3828_s9 = smov 8   ;;  %s3829_s22 = smov 128  }
  0x7c   : > { %2544 = dma.hbm_to_vmem [thread:$0]  (!%p3260_p7), %s3258_s24, 2048, %s3264_s5, %s3266_s7, %s3829_s22, %s3829_s22, %s3828_s9  }
  0x7d   : > { %p3830_p1 = scmp.ne.s32.totalorder %s3814_s15, 0 }
  0x7e   : > { %s3293_s20 = sand.u32 (!%p3830_p1), 1, %s3018_s26   ;;  %p3831_p3 = scmp.ne.s32.totalorder (!%p3830_p1), %s3823_s16, 0 }
  0x7f   : > { %471 = sbr.rel (%p3830_p1) target bundleno = 1279 (0x4ff), region = 64  ;;  %s3296_s27 = sshll.u32 (!%p3830_p1), %s3293_s20, 7 }
  0x80   : > { %s474_s18 = scalar_lea.sflag (!%p3830_p1), [#allocation3], %s3293_s20  ;;  %s3300_s29 = scalar_lea.vmem (!%p3830_p1), [#allocation2], %s3296_s27 }
  0x84   : > { %2989 = dma.done.wait (%p3831_p3), %s474_s18, 2048  }
  0x85   : > { %2991 = vsyncadd (%p3831_p3), %s474_s18, 4294965248  ;;  %p3832_p4 = scmp.eq.s32.totalorder %s3132_s14, 0 }
  0x87   : > { %2993 = dma.done.wait (%p3832_p4), [#allocation6], 4096   ;;  %p3833_p12 = pmov %p3832_p4 }
  0x88   : > { %p3834_p6 = pmov %p3832_p4 }
  0x89   : > { %2995 = vsyncadd (%p3833_p12), [#allocation6], 4294963200 }
  0x8a   : > { %2997 = dma.done.wait (%p3834_p6), [#allocation9], 4096   ;;  %p3835_p2 = pmov %p3832_p4 }
  0x8c   : > { %2999 = vsyncadd (%p3835_p2), [#allocation9], 4294963200  ;;  %p3836_p7 = pmov %p3835_p2 }
  0x8d   : > { %p3837_p8 = pmov %p3835_p2 }
  0x8e   : > { %3001 = dma.done.wait (%p3836_p7), [#allocation12], 2048  }
  0x8f   : > { %3003 = vsyncadd (%p3837_p8), [#allocation12], 4294965248  ;;  %v585_v0 = vld [vmem:[#allocation5 + $0x78] sm:$0xff]  ;;  %v584_v1 = vld [vmem:[#allocation5 + $0x70] sm:$0xff]  ;;  %s3439_s16 = scalar_lea.vmem [#allocation14], %s3296_s27  ;;  %s3594_s9 = scalar_lea.vmem [#allocation16], %s3296_s27 }
  0x90   : > { %2185 = vmatprep.subr.mxu0 %v585_v0  ;;  %v583_v2 = vld [vmem:[#allocation5 + $0x68] sm:$0xff]  ;;  %v582_v3 = vld [vmem:[#allocation5 + $0x60] sm:$0xff]  ;;  %v581_v5 = vld [vmem:[#allocation5 + $0x58] sm:$0xff]  ;;  %s1719_s22 = sand.u32 1, %s3132_s14   ;;  %s3646_s18 = sshll.u32 %s3132_s14, 11 }
  0x91   : > { %2186 = vmatpush3.msra.mxu0 %v585_v0  ;;  %v554_v4 = vld [vmem:[%s3300_s29] sm:$0xff]  ;;  %v580_v6 = vld [vmem:[#allocation5 + $0x50] sm:$0xff]  ;;  %v579_v7 = vld [vmem:[#allocation5 + $0x48] sm:$0xff]  ;;  %s3652_s7 = scalar_lea.hbm %s3797_s12, %s3646_s18  ;;  %s1754_s15 = sshll.u32 %s3439_s16, 4  ;;  %s3655_s15 = int_to_ptr.vmem [resolvable:$true] %s1754_s15 }
  0x92   : > { %2187 = vmatprep.subr.mxu0 %v584_v1  ;;  %2217 = vmatprep.mubr.f32.mxu0 %v554_v4  ;;  %v769_v8 = vld [vmem:[#allocation7 + $0x78] sm:$0xff]  ;;  %v768_v9 = vld [vmem:[#allocation7 + $0x70] sm:$0xff]  ;;  %v578_v10 = vld [vmem:[#allocation5 + $0x40] sm:$0xff]  ;;  %s3657_s24 = scalar_lea.sflag [#allocation15], %s1719_s22  ;;  %s2894_s3 = scalar_lea.vmem %s3655_s15, 2048 }
  0x93   : > { %2188 = vmatpush3.msra.mxu0 %v584_v1  ;;  %2241 = vmatprep.subr.mxu1 %v769_v8  ;;  %v767_v11 = vld [vmem:[#allocation7 + $0x68] sm:$0xff]  ;;  %v577_v12 = vld [vmem:[#allocation5 + $0x38] sm:$0xff]  ;;  %v766_v13 = vld [vmem:[#allocation7 + $0x60] sm:$0xff]  ;;  %p2895_p10 = scmp.ne.s32.totalorder %s3655_s15, %s2894_s3  ;;  %p3838_p11 = scmp.ne.s32.totalorder %s3824_s1, 0 }
  0x94   : > { %2189 = vmatprep.subr.mxu0 %v583_v2  ;;  %2242 = vmatpush3.msra.mxu1 %v769_v8  ;;  %v576_v14 = vld [vmem:[#allocation5 + $0x30] sm:$0xff]  ;;  %v765_v15 = vld [vmem:[#allocation7 + $0x58] sm:$0xff]  ;;  %v575_v16 = vld [vmem:[#allocation5 + $0x28] sm:$0xff]  ;;  %s3036_s14 = smov [#allocation14]  }
  0x95   : > { %2190 = vmatpush3.msra.mxu0 %v583_v2  ;;  %2243 = vmatprep.subr.mxu1 %v768_v9  ;;  %v764_v17 = vld [vmem:[#allocation7 + $0x50] sm:$0xff]  ;;  %v574_v18 = vld [vmem:[#allocation5 + $0x20] sm:$0xff]  ;;  %v763_v19 = vld [vmem:[#allocation7 + $0x48] sm:$0xff]  ;;  %p2896_p0 = pnand %p2895_p10, %p3838_p11  ;;  %s2898_s30 = sshll.u32 %s3036_s14, 4  ;;  %s2899_s30 = int_to_ptr.vmem [resolvable:$false] %s2898_s30 }
  0x96   : > { %2191 = vmatprep.subr.mxu0 %v582_v3  ;;  %2244 = vmatpush3.msra.mxu1 %v768_v9  ;;  %v573_v20 = vld [vmem:[#allocation5 + $0x18] sm:$0xff]  ;;  %v762_v21 = vld [vmem:[#allocation7 + $0x40] sm:$0xff]  ;;  %v572_v22 = vld [vmem:[#allocation5 + $0x10] sm:$0xff]  ;;  %s2900_s19 = scalar_lea.vmem %s2899_s30, 4096  ;;  %p2901_p5 = scmp.lt.s32.totalorder %s3655_s15, %s2899_s30 }
  0x97   : > { %2192 = vmatpush3.msra.mxu0 %v582_v3  ;;  %2245 = vmatprep.subr.mxu1 %v767_v11  ;;  %v761_v23 = vld [vmem:[#allocation7 + $0x38] sm:$0xff]  ;;  %v571_v24 = vld [vmem:[#allocation5 + $0x8] sm:$0xff]  ;;  %v760_v25 = vld [vmem:[#allocation7 + $0x30] sm:$0xff]  ;;  %p2897_p13 = pneg %p2896_p0  ;;  %p2902_p9 = scmp.lt.s32.totalorder %s2900_s19, %s2894_s3 }
  0x98   : > { %2193 = vmatprep.subr.mxu0 %v581_v5  ;;  %2246 = vmatpush3.msra.mxu1 %v767_v11  ;;  %v570_v26 = vld [vmem:[#allocation5] sm:$0xff]  ;;  %v759_v27 = vld [vmem:[#allocation7 + $0x28] sm:$0xff]  ;;  %v556_v30 = vld [vmem:[%s3300_s29 + $0x10] sm:$0xff] }
  0x99   : > { %2194 = vmatpush3.msra.mxu0 %v581_v5  ;;  %2247 = vmatprep.subr.mxu1 %v766_v13  ;;  %v555_v28 = vld [vmem:[%s3300_s29 + $0x8] sm:$0xff]  ;;  %v758_v29 = vld [vmem:[#allocation7 + $0x20] sm:$0xff]  ;;  %v557_v31 = vld [vmem:[%s3300_s29 + $0x18] sm:$0xff]  ;;  %p2903_p1 = por %p2902_p9, %p2901_p5 }
  0x9a   : > { %2195 = vmatprep.subr.mxu0 %v580_v6  ;;  %2248 = vmatpush3.msra.mxu1 %v766_v13  ;;  %v558_v32 = vld [vmem:[%s3300_s29 + $0x20] sm:$0xff]  ;;  %v559_v33 = vld [vmem:[%s3300_s29 + $0x28] sm:$0xff]  ;;  %v560_v34 = vld [vmem:[%s3300_s29 + $0x30] sm:$0xff] }
  0x9b   : > { %2196 = vmatpush3.msra.mxu0 %v580_v6  ;;  %2249 = vmatprep.subr.mxu1 %v765_v15  ;;  %v561_v35 = vld [vmem:[%s3300_s29 + $0x38] sm:$0xff]  ;;  %v562_v36 = vld [vmem:[%s3300_s29 + $0x40] sm:$0xff]  ;;  %v563_v37 = vld [vmem:[%s3300_s29 + $0x48] sm:$0xff]  ;;  %p2904_p3 = pnand %p2903_p1, %p2897_p13 }
  0x9c   : > { %2197 = vmatprep.subr.mxu0 %v579_v7  ;;  %2250 = vmatpush3.msra.mxu1 %v765_v15  ;;  %v564_v38 = vld [vmem:[%s3300_s29 + $0x50] sm:$0xff]  ;;  %v565_v39 = vld [vmem:[%s3300_s29 + $0x58] sm:$0xff]  ;;  %v566_v40 = vld [vmem:[%s3300_s29 + $0x60] sm:$0xff] }
  0x9d   : > { %2198 = vmatpush3.msra.mxu0 %v579_v7  ;;  %2251 = vmatprep.subr.mxu1 %v764_v17  ;;  %v567_v41 = vld [vmem:[%s3300_s29 + $0x68] sm:$0xff]  ;;  %v568_v42 = vld [vmem:[%s3300_s29 + $0x70] sm:$0xff]  ;;  %v569_v43 = vld [vmem:[%s3300_s29 + $0x78] sm:$0xff] }
  0x9e   : > { %2199 = vmatprep.subr.mxu0 %v578_v10  ;;  %2252 = vmatpush3.msra.mxu1 %v764_v17  ;;  %v757_v44 = vld [vmem:[#allocation7 + $0x18] sm:$0xff]  ;;  %v756_v45 = vld [vmem:[#allocation7 + $0x10] sm:$0xff]  ;;  %v755_v46 = vld [vmem:[#allocation7 + $0x8] sm:$0xff] }
  0x9f   : > { %2200 = vmatpush3.msra.mxu0 %v578_v10  ;;  %2253 = vmatprep.subr.mxu1 %v763_v19  ;;  %v754_v47 = vld [vmem:[#allocation7] sm:$0xff] }
  0xa0   : > { %2201 = vmatprep.subr.mxu0 %v577_v12  ;;  %2254 = vmatpush3.msra.mxu1 %v763_v19  ;;  %v1973_v48 = vld [vmem:[%s3787_s2] ss:$0 sm:$0xff] }
  0xa1   : > { %2202 = vmatpush3.msra.mxu0 %v577_v12  ;;  %2255 = vmatprep.subr.mxu1 %v762_v21 }
  0xa2   : > { %2203 = vmatprep.subr.mxu0 %v576_v14  ;;  %2256 = vmatpush3.msra.mxu1 %v762_v21 }
  0xa3   : > { %2204 = vmatpush3.msra.mxu0 %v576_v14  ;;  %2257 = vmatprep.subr.mxu1 %v761_v23 }
  0xa4   : > { %2205 = vmatprep.subr.mxu0 %v575_v16  ;;  %2258 = vmatpush3.msra.mxu1 %v761_v23 }
  0xa5   : > { %2206 = vmatpush3.msra.mxu0 %v575_v16  ;;  %2259 = vmatprep.subr.mxu1 %v760_v25 }
  0xa6   : > { %2207 = vmatprep.subr.mxu0 %v574_v18  ;;  %2260 = vmatpush3.msra.mxu1 %v760_v25 }
  0xa7   : > { %2208 = vmatpush3.msra.mxu0 %v574_v18  ;;  %2261 = vmatprep.subr.mxu1 %v759_v27 }
  0xa8   : > { %2209 = vmatprep.subr.mxu0 %v573_v20  ;;  %2262 = vmatpush3.msra.mxu1 %v759_v27 }
  0xa9   : > { %2210 = vmatpush3.msra.mxu0 %v573_v20  ;;  %2263 = vmatprep.subr.mxu1 %v758_v29 }
  0xaa   : > { %2211 = vmatprep.subr.mxu0 %v572_v22  ;;  %2264 = vmatpush3.msra.mxu1 %v758_v29 }
  0xab   : > { %2212 = vmatpush3.msra.mxu0 %v572_v22  ;;  %2265 = vmatprep.subr.mxu1 %v757_v44 }
  0xac   : > { %2213 = vmatprep.subr.mxu0 %v571_v24  ;;  %2266 = vmatpush3.msra.mxu1 %v757_v44  ;;  %v1054_v44 = vld [vmem:[#allocation8 + $0x20] sm:$0xff] }
  0xad   : > { %2214 = vmatpush3.msra.mxu0 %v571_v24  ;;  %2267 = vmatprep.subr.mxu1 %v756_v45 }
  0xae   : > { %2215 = vmatprep.subr.mxu0 %v570_v26  ;;  %2268 = vmatpush3.msra.mxu1 %v756_v45  ;;  %v1053_v45 = vld [vmem:[#allocation8 + $0x18] sm:$0xff] }
  0xaf   : > { %2216 = vmatpush3.msra.mxu0 %v570_v26  ;;  %2269 = vmatprep.subr.mxu1 %v755_v46 }
  0xb0   : > { %2218 = vmatmul.mubr.f32.vlgmr.msra.gmra.mxu0 %v555_v28  ;;  %2270 = vmatpush3.msra.mxu1 %v755_v46  ;;  %v1052_v46 = vld [vmem:[#allocation8 + $0x10] sm:$0xff] }
  0xb1   : > { %2220 = vmatprep.mubr.f32.mxu0 %v556_v30  ;;  %2271 = vmatprep.subr.mxu1 %v754_v47 }
  0xb2   : > { %2272 = vmatpush3.msra.mxu1 %v754_v47  ;;  %v1051_v47 = vld [vmem:[#allocation8 + $0x8] sm:$0xff] }
  0xb4   : > { %2221 = vmatmul.mubr.f32.gmra.mxu0 %v557_v31 }
  0xb5   : > { %2223 = vmatprep.mubr.f32.mxu0 %v558_v32 }
  0xb8   : > { %2224 = vmatmul.mubr.f32.gmra.mxu0 %v559_v33  ;;  %v1065_v33 = vld [vmem:[#allocation8 + $0x78] sm:$0xff] }
  0xb9   : > { %2226 = vmatprep.mubr.f32.mxu0 %v560_v34  ;;  %2297 = vmatprep.subr.mxu0 %v1065_v33  ;;  %v1064_v34 = vld [vmem:[#allocation8 + $0x70] sm:$0xff] }
  0xba   : > { %2298 = vmatpush3.msra.mxu0 %v1065_v33 }
  0xbb   : > { %2299 = vmatprep.subr.mxu0 %v1064_v34 }
  0xbc   : > { %2227 = vmatmul.mubr.f32.gmra.mxu0 %v561_v35  ;;  %v1063_v35 = vld [vmem:[#allocation8 + $0x68] sm:$0xff] }
  0xbd   : > { %2229 = vmatprep.mubr.f32.mxu0 %v562_v36  ;;  %2300 = vmatpush3.msra.mxu0 %v1064_v34  ;;  %v1062_v36 = vld [vmem:[#allocation8 + $0x60] sm:$0xff] }
  0xbe   : > { %2301 = vmatprep.subr.mxu0 %v1063_v35 }
  0xbf   : > { %2302 = vmatpush3.msra.mxu0 %v1063_v35 }
  0xc0   : > { %2230 = vmatmul.mubr.f32.gmra.mxu0 %v563_v37  ;;  %2303 = vmatprep.subr.mxu0 %v1062_v36  ;;  %v1061_v37 = vld [vmem:[#allocation8 + $0x58] sm:$0xff] }
  0xc1   : > { %2232 = vmatprep.mubr.f32.mxu0 %v564_v38  ;;  %2304 = vmatpush3.msra.mxu0 %v1062_v36  ;;  %v1060_v38 = vld [vmem:[#allocation8 + $0x50] sm:$0xff] }
  0xc2   : > { %2305 = vmatprep.subr.mxu0 %v1061_v37 }
  0xc3   : > { %2306 = vmatpush3.msra.mxu0 %v1061_v37 }
  0xc4   : > { %2233 = vmatmul.mubr.f32.gmra.mxu0 %v565_v39  ;;  %2307 = vmatprep.subr.mxu0 %v1060_v38  ;;  %v1059_v39 = vld [vmem:[#allocation8 + $0x48] sm:$0xff] }
  0xc5   : > { %2235 = vmatprep.mubr.f32.mxu0 %v566_v40  ;;  %2308 = vmatpush3.msra.mxu0 %v1060_v38  ;;  %v1058_v40 = vld [vmem:[#allocation8 + $0x40] sm:$0xff] }
  0xc6   : > { %2309 = vmatprep.subr.mxu0 %v1059_v39 }
  0xc7   : > { %2310 = vmatpush3.msra.mxu0 %v1059_v39 }
  0xc8   : > { %2236 = vmatmul.mubr.f32.gmra.mxu0 %v567_v41  ;;  %2311 = vmatprep.subr.mxu0 %v1058_v40  ;;  %v1057_v41 = vld [vmem:[#allocation8 + $0x38] sm:$0xff] }
  0xc9   : > { %2238 = vmatprep.mubr.f32.mxu0 %v568_v42  ;;  %2312 = vmatpush3.msra.mxu0 %v1058_v40  ;;  %v1056_v42 = vld [vmem:[#allocation8 + $0x30] sm:$0xff] }
  0xca   : > { %2313 = vmatprep.subr.mxu0 %v1057_v41 }
  0xcb   : > { %2314 = vmatpush3.msra.mxu0 %v1057_v41 }
  0xcc   : > { %2239 = vmatmul.mubr.f32.gmra.mxu0 %v569_v43  ;;  %2315 = vmatprep.subr.mxu0 %v1056_v42  ;;  %v1055_v43 = vld [vmem:[#allocation8 + $0x28] sm:$0xff] }
  0xcd   : > { %2316 = vmatpush3.msra.mxu0 %v1056_v42 }
  0xce   : > { %2317 = vmatprep.subr.mxu0 %v1055_v43 }
  0xcf   : > { %2318 = vmatpush3.msra.mxu0 %v1055_v43 }
  0xd0   : > { %2319 = vmatprep.subr.mxu0 %v1054_v44 }
  0xd1   : > { %2320 = vmatpush3.msra.mxu0 %v1054_v44 }
  0xd2   : > { %2321 = vmatprep.subr.mxu0 %v1053_v45 }
  0xd3   : > { %2322 = vmatpush3.msra.mxu0 %v1053_v45 }
  0xd4   : > { %2323 = vmatprep.subr.mxu0 %v1052_v46 }
  0xd5   : > { %2324 = vmatpush3.msra.mxu0 %v1052_v46 }
  0xd6   : > { %2325 = vmatprep.subr.mxu0 %v1051_v47 }
  0xd7   : > { %2326 = vmatpush3.msra.mxu0 %v1051_v47 }
 0x170   : > { %v2219_v49 = vpop.f32.mrf.mxu0 }
 0x171   : > { %v3337_v50 = vadd.f32 %v2219_v49, %v1973_v48  ;;  %v1249_v49 = vld [vmem:[#allocation10 + $0x78] sm:$0xff] }
 0x172   : > { %v659_v51 = vpop.f32.mrf.mxu0  ;;  %2353 = vmatprep.subr.mxu1 %v1249_v49 }
 0x173   : > { %v3339_v52 = vadd.f32 %v1973_v48, %v659_v51  ;;  %v739_v55 = vmax.f32 %v3337_v50, 0.0  ;;  %v1248_v51 = vld [vmem:[#allocation10 + $0x70] sm:$0xff] }
 0x174   : > { %v2222_v53 = vpop.f32.mrf.mxu0 }
 0x175   : > { %v738_v54 = vmax.f32 %v3339_v52, 0.0  ;;  %v3343_v56 = vadd.f32 %v2222_v53, %v1973_v48  ;;  %v1247_v53 = vld [vmem:[#allocation10 + $0x68] sm:$0xff] }
 0x176   : > { %v669_v57 = vpop.f32.mrf.mxu0 }
 0x177   : > { %v3345_v58 = vadd.f32 %v1973_v48, %v669_v57  ;;  %2273 = vmatprep.mubr.f32.mxu1 %v738_v54  ;;  %v741_v61 = vmax.f32 %v3343_v56, 0.0  ;;  %v1246_v57 = vld [vmem:[#allocation10 + $0x60] sm:$0xff] }
 0x178   : > { %v2225_v59 = vpop.f32.mrf.mxu0  ;;  %2274 = vmatmul.mubr.f32.vlgmr.msra.gmra.mxu1 %v739_v55 }
 0x179   : > { %v740_v60 = vmax.f32 %v3345_v58, 0.0  ;;  %v3353_v62 = vadd.f32 %v2225_v59, %v1973_v48  ;;  %2354 = vmatpush3.msra.mxu1 %v1249_v49  ;;  %v1245_v59 = vld [vmem:[#allocation10 + $0x58] sm:$0xff] }
 0x17a   : > { %v679_v63 = vpop.f32.mrf.mxu0  ;;  %2355 = vmatprep.subr.mxu1 %v1248_v51 }
 0x17b   : > { %v3355_v0 = vadd.f32 %v1973_v48, %v679_v63  ;;  %2276 = vmatprep.mubr.f32.mxu1 %v740_v60  ;;  %v743_v3 = vmax.f32 %v3353_v62, 0.0  ;;  %2356 = vmatpush3.msra.mxu1 %v1248_v51  ;;  %v1244_v63 = vld [vmem:[#allocation10 + $0x50] sm:$0xff] }
 0x17c   : > { %v2228_v1 = vpop.f32.mrf.mxu0  ;;  %2277 = vmatmul.mubr.f32.gmra.mxu1 %v741_v61  ;;  %2357 = vmatprep.subr.mxu1 %v1247_v53 }
 0x17d   : > { %v742_v2 = vmax.f32 %v3355_v0, 0.0  ;;  %v3363_v4 = vadd.f32 %v2228_v1, %v1973_v48  ;;  %2358 = vmatpush3.msra.mxu1 %v1247_v53  ;;  %v1243_v1 = vld [vmem:[#allocation10 + $0x48] sm:$0xff] }
 0x17e   : > { %v689_v5 = vpop.f32.mrf.mxu0  ;;  %2359 = vmatprep.subr.mxu1 %v1246_v57 }
 0x17f   : > { %v3365_v6 = vadd.f32 %v1973_v48, %v689_v5  ;;  %2279 = vmatprep.mubr.f32.mxu1 %v742_v2  ;;  %v745_v9 = vmax.f32 %v3363_v4, 0.0  ;;  %2360 = vmatpush3.msra.mxu1 %v1246_v57  ;;  %v1242_v5 = vld [vmem:[#allocation10 + $0x40] sm:$0xff] }
 0x180   : > { %v2231_v7 = vpop.f32.mrf.mxu0  ;;  %2280 = vmatmul.mubr.f32.gmra.mxu1 %v743_v3  ;;  %2361 = vmatprep.subr.mxu1 %v1245_v59 }
 0x181   : > { %v744_v8 = vmax.f32 %v3365_v6, 0.0  ;;  %v3373_v10 = vadd.f32 %v2231_v7, %v1973_v48  ;;  %2362 = vmatpush3.msra.mxu1 %v1245_v59  ;;  %v1241_v7 = vld [vmem:[#allocation10 + $0x38] sm:$0xff] }
 0x182   : > { %v699_v11 = vpop.f32.mrf.mxu0  ;;  %2363 = vmatprep.subr.mxu1 %v1244_v63 }
 0x183   : > { %v3375_v12 = vadd.f32 %v1973_v48, %v699_v11  ;;  %2282 = vmatprep.mubr.f32.mxu1 %v744_v8  ;;  %v747_v15 = vmax.f32 %v3373_v10, 0.0  ;;  %2364 = vmatpush3.msra.mxu1 %v1244_v63  ;;  %v1240_v11 = vld [vmem:[#allocation10 + $0x30] sm:$0xff] }
 0x184   : > { %v2234_v13 = vpop.f32.mrf.mxu0  ;;  %2283 = vmatmul.mubr.f32.gmra.mxu1 %v745_v9  ;;  %2365 = vmatprep.subr.mxu1 %v1243_v1 }
 0x185   : > { %v746_v14 = vmax.f32 %v3375_v12, 0.0  ;;  %v3383_v16 = vadd.f32 %v2234_v13, %v1973_v48  ;;  %2366 = vmatpush3.msra.mxu1 %v1243_v1  ;;  %v1239_v13 = vld [vmem:[#allocation10 + $0x28] sm:$0xff] }
 0x186   : > { %v709_v17 = vpop.f32.mrf.mxu0  ;;  %2367 = vmatprep.subr.mxu1 %v1242_v5 }
 0x187   : > { %v3385_v18 = vadd.f32 %v1973_v48, %v709_v17  ;;  %2285 = vmatprep.mubr.f32.mxu1 %v746_v14  ;;  %v749_v21 = vmax.f32 %v3383_v16, 0.0  ;;  %2368 = vmatpush3.msra.mxu1 %v1242_v5  ;;  %v1238_v17 = vld [vmem:[#allocation10 + $0x20] sm:$0xff] }
 0x188   : > { %v2237_v19 = vpop.f32.mrf.mxu0  ;;  %2286 = vmatmul.mubr.f32.gmra.mxu1 %v747_v15  ;;  %2369 = vmatprep.subr.mxu1 %v1241_v7 }
 0x189   : > { %v748_v20 = vmax.f32 %v3385_v18, 0.0  ;;  %v3393_v22 = vadd.f32 %v2237_v19, %v1973_v48  ;;  %2370 = vmatpush3.msra.mxu1 %v1241_v7  ;;  %v1237_v19 = vld [vmem:[#allocation10 + $0x18] sm:$0xff] }
 0x18a   : > { %v719_v23 = vpop.f32.mrf.mxu0  ;;  %2371 = vmatprep.subr.mxu1 %v1240_v11 }
 0x18b   : > { %v3395_v24 = vadd.f32 %v1973_v48, %v719_v23  ;;  %2288 = vmatprep.mubr.f32.mxu1 %v748_v20  ;;  %v751_v27 = vmax.f32 %v3393_v22, 0.0  ;;  %2372 = vmatpush3.msra.mxu1 %v1240_v11  ;;  %v3420_v23 = vld [vmem:[%s3789_s4] ss:$0 sm:$0xff] }
 0x18c   : > { %v2240_v25 = vpop.f32.mrf.mxu0  ;;  %2289 = vmatmul.mubr.f32.gmra.mxu1 %v749_v21  ;;  %2373 = vmatprep.subr.mxu1 %v1239_v13  ;;  %v1234_v22 = vld [vmem:[#allocation10] sm:$0xff] }
 0x18d   : > { %v750_v26 = vmax.f32 %v3395_v24, 0.0  ;;  %v3403_v28 = vadd.f32 %v2240_v25, %v1973_v48  ;;  %2374 = vmatpush3.msra.mxu1 %v1239_v13  ;;  %v1235_v24 = vld [vmem:[#allocation10 + $0x8] sm:$0xff] }
 0x18e   : > { %v729_v29 = vpop.f32.mrf.mxu0  ;;  %2375 = vmatprep.subr.mxu1 %v1238_v17 }
 0x18f   : > { %v3405_v30 = vadd.f32 %v1973_v48, %v729_v29  ;;  %2291 = vmatprep.mubr.f32.mxu1 %v750_v26  ;;  %v753_v32 = vmax.f32 %v3403_v28, 0.0  ;;  %v1050_v48 = vld [vmem:[#allocation8] sm:$0xff]  ;;  %2376 = vmatpush3.msra.mxu1 %v1238_v17 }
 0x190   : > { %2292 = vmatmul.mubr.f32.gmra.mxu1 %v751_v27  ;;  %2327 = vmatprep.subr.mxu0 %v1050_v48 }
 0x191   : > { %v752_v31 = vmax.f32 %v3405_v30, 0.0  ;;  %2328 = vmatpush3.msra.mxu0 %v1050_v48  ;;  %2377 = vmatprep.subr.mxu1 %v1237_v19 }
 0x192   : > { %2378 = vmatpush3.msra.mxu1 %v1237_v19 }
 0x193   : > { %2294 = vmatprep.mubr.f32.mxu1 %v752_v31 }
 0x194   : > { %2295 = vmatmul.mubr.f32.gmra.mxu1 %v753_v32 }
 0x238   : > { %v2275_v25 = vpop.f32.mrf.mxu1 }
 0x239   : > { %v849_v29 = vadd.f32 %v2275_v25, %v3420_v23 }
 0x23a   : > { %v843_v33 = vpop.f32.mrf.mxu1 }
 0x23b   : > { %v1976_v34 = vmul.f32 -1.442695, %v849_v29  ;;  %v844_v35 = vadd.f32 %v3420_v23, %v843_v33 }
 0x23c   : > { %v2278_v36 = vpop.f32.mrf.mxu1 }
 0x23d   : > { %2608 = vpow2.f32 %v1976_v34  ;;  %v1975_v37 = vmul.f32 -1.442695, %v844_v35  ;;  %v859_v38 = vadd.f32 %v2278_v36, %v3420_v23 }
 0x23e   : > { %v853_v39 = vpop.f32.mrf.mxu1 }
 0x23f   : > { %2610 = vpow2.f32 %v1975_v37  ;;  %v1978_v40 = vmul.f32 -1.442695, %v859_v38  ;;  %v854_v41 = vadd.f32 %v3420_v23, %v853_v39 }
 0x240   : > { %v2281_v42 = vpop.f32.mrf.mxu1 }
 0x241   : > { %2612 = vpow2.f32 %v1978_v40  ;;  %v1977_v43 = vmul.f32 -1.442695, %v854_v41  ;;  %v869_v44 = vadd.f32 %v2281_v42, %v3420_v23 }
 0x242   : > { %v863_v45 = vpop.f32.mrf.mxu1 }
 0x243   : > { %2614 = vpow2.f32 %v1977_v43  ;;  %v1980_v46 = vmul.f32 -1.442695, %v869_v44  ;;  %v864_v47 = vadd.f32 %v3420_v23, %v863_v45 }
 0x244   : > { %v2284_v48 = vpop.f32.mrf.mxu1 }
 0x245   : > { %2616 = vpow2.f32 %v1980_v46  ;;  %v1979_v49 = vmul.f32 -1.442695, %v864_v47  ;;  %v879_v51 = vadd.f32 %v2284_v48, %v3420_v23 }
 0x246   : > { %v873_v53 = vpop.f32.mrf.mxu1 }
 0x247   : > { %2618 = vpow2.f32 %v1979_v49  ;;  %v1982_v57 = vmul.f32 -1.442695, %v879_v51  ;;  %v874_v59 = vadd.f32 %v3420_v23, %v873_v53 }
 0x248   : > { %v2287_v63 = vpop.f32.mrf.mxu1 }
 0x249   : > { %2620 = vpow2.f32 %v1982_v57  ;;  %v1981_v1 = vmul.f32 -1.442695, %v874_v59  ;;  %v889_v5 = vadd.f32 %v2287_v63, %v3420_v23 }
 0x24a   : > { %v2609_v7 = vpop.eup %2608  ;;  %v883_v11 = vpop.f32.mrf.mxu1 }
 0x24b   : > { %v971_v13 = vadd.f32 1.0, %v2609_v7  ;;  %2622 = vpow2.f32 %v1981_v1  ;;  %v1984_v17 = vmul.f32 -1.442695, %v889_v5  ;;  %v884_v19 = vadd.f32 %v3420_v23, %v883_v11 }
 0x24c   : > { %v2611_v25 = vpop.eup %2610  ;;  %v2290_v29 = vpop.f32.mrf.mxu1 }
 0x24d   : > { %2624 = vrcp.f32 %v971_v13  ;;  %v970_v33 = vadd.f32 1.0, %v2611_v25  ;;  %v1983_v34 = vmul.f32 -1.442695, %v884_v19  ;;  %v899_v35 = vadd.f32 %v2290_v29, %v3420_v23 }
 0x24e   : > { %v2613_v36 = vpop.eup %2612  ;;  %2626 = vpow2.f32 %v1984_v17  ;;  %v893_v37 = vpop.f32.mrf.mxu1 }
 0x24f   : > { %2628 = vrcp.f32 %v970_v33  ;;  %v973_v38 = vadd.f32 1.0, %v2613_v36  ;;  %v1986_v39 = vmul.f32 -1.442695, %v899_v35  ;;  %v894_v40 = vadd.f32 %v3420_v23, %v893_v37 }
 0x250   : > { %v2615_v41 = vpop.eup %2614  ;;  %2630 = vpow2.f32 %v1983_v34  ;;  %v2293_v42 = vpop.f32.mrf.mxu1 }
 0x251   : > { %2632 = vrcp.f32 %v973_v38  ;;  %v972_v43 = vadd.f32 1.0, %v2615_v41  ;;  %v1985_v44 = vmul.f32 -1.442695, %v894_v40  ;;  %v909_v45 = vadd.f32 %v2293_v42, %v3420_v23 }
 0x252   : > { %v2617_v46 = vpop.eup %2616  ;;  %2634 = vpow2.f32 %v1986_v39  ;;  %v903_v47 = vpop.f32.mrf.mxu1 }
 0x253   : > { %2636 = vrcp.f32 %v972_v43  ;;  %v975_v48 = vadd.f32 1.0, %v2617_v46  ;;  %v1988_v49 = vmul.f32 -1.442695, %v909_v45  ;;  %v904_v51 = vadd.f32 %v3420_v23, %v903_v47 }
 0x254   : > { %v2619_v53 = vpop.eup %2618  ;;  %2638 = vpow2.f32 %v1985_v44  ;;  %v2296_v57 = vpop.f32.mrf.mxu1 }
 0x255   : > { %2640 = vrcp.f32 %v975_v48  ;;  %v974_v59 = vadd.f32 1.0, %v2619_v53  ;;  %v1987_v63 = vmul.f32 -1.442695, %v904_v51  ;;  %v919_v1 = vadd.f32 %v2296_v57, %v3420_v23 }
 0x256   : > { %v2621_v5 = vpop.eup %2620  ;;  %2642 = vpow2.f32 %v1988_v49  ;;  %v913_v7 = vpop.f32.mrf.mxu1 }
 0x257   : > { %2644 = vrcp.f32 %v974_v59  ;;  %v977_v11 = vadd.f32 1.0, %v2621_v5  ;;  %v1990_v13 = vmul.f32 -1.442695, %v919_v1  ;;  %v914_v17 = vadd.f32 %v3420_v23, %v913_v7 }
 0x258   : > { %v2623_v19 = vpop.eup %2622  ;;  %2646 = vpow2.f32 %v1987_v63 }
 0x259   : > { %2648 = vrcp.f32 %v977_v11  ;;  %v976_v25 = vadd.f32 1.0, %v2623_v19  ;;  %v1989_v29 = vmul.f32 -1.442695, %v914_v17 }
 0x25a   : > { %v2625_v33 = vpop.eup %2624  ;;  %2650 = vpow2.f32 %v1990_v13 }
 0x25b   : > { %v2627_v34 = vpop.eup %2626  ;;  %1019 = vst [vmem:[%s3439_s16 + $0x8] sm:$0xff] %v2625_v33  ;;  %2652 = vrcp.f32 %v976_v25  ;;  %v1035_v40 = vmul.f32 %v2625_v33, %v739_v55 }
 0x25c   : > { %v2629_v35 = vpop.eup %2628  ;;  %v979_v36 = vadd.f32 1.0, %v2627_v34  ;;  %2654 = vpow2.f32 %v1989_v29 }
 0x25d   : > { %v2631_v23 = vpop.eup %2630  ;;  %1018 = vst [vmem:[%s3439_s16] sm:$0xff] %v2629_v35  ;;  %v1034_v37 = vmul.f32 %v2629_v35, %v738_v54 }
 0x25e   : > { %v2633_v38 = vpop.eup %2632  ;;  %2656 = vrcp.f32 %v979_v36  ;;  %v978_v39 = vadd.f32 1.0, %v2631_v23 }
 0x25f   : > { %v2635_v41 = vpop.eup %2634  ;;  %1021 = vst [vmem:[%s3439_s16 + $0x18] sm:$0xff] %v2633_v38  ;;  %2329 = vmatprep.mubr.f32.mxu0 %v1034_v37  ;;  %v1037_v50 = vmul.f32 %v2633_v38, %v741_v61 }
 0x260   : > { %v2637_v42 = vpop.eup %2636  ;;  %2658 = vrcp.f32 %v978_v39  ;;  %v981_v43 = vadd.f32 1.0, %v2635_v41  ;;  %2330 = vmatmul.mubr.f32.vlgmr.msra.gmra.mxu0 %v1035_v40 }
 0x261   : > { %v2639_v44 = vpop.eup %2638  ;;  %1020 = vst [vmem:[%s3439_s16 + $0x10] sm:$0xff] %v2637_v42  ;;  %v1036_v52 = vmul.f32 %v2637_v42, %v740_v60 }
 0x262   : > { %v2641_v54 = vpop.eup %2640  ;;  %2660 = vrcp.f32 %v981_v43  ;;  %v980_v45 = vadd.f32 1.0, %v2639_v44 }
 0x263   : > { %v2643_v55 = vpop.eup %2642  ;;  %1023 = vst [vmem:[%s3439_s16 + $0x28] sm:$0xff] %v2641_v54  ;;  %2332 = vmatprep.mubr.f32.mxu0 %v1036_v52  ;;  %v1039_v56 = vmul.f32 %v2641_v54, %v743_v3 }
 0x264   : > { %v2645_v46 = vpop.eup %2644  ;;  %2662 = vrcp.f32 %v980_v45  ;;  %v983_v47 = vadd.f32 1.0, %v2643_v55  ;;  %2333 = vmatmul.mubr.f32.gmra.mxu0 %v1037_v50 }
 0x265   : > { %v2647_v48 = vpop.eup %2646  ;;  %1022 = vst [vmem:[%s3439_s16 + $0x20] sm:$0xff] %v2645_v46  ;;  %v1038_v58 = vmul.f32 %v2645_v46, %v742_v2 }
 0x266   : > { %v2649_v60 = vpop.eup %2648  ;;  %2664 = vrcp.f32 %v983_v47  ;;  %v982_v49 = vadd.f32 1.0, %v2647_v48 }
 0x267   : > { %v2651_v61 = vpop.eup %2650  ;;  %1025 = vst [vmem:[%s3439_s16 + $0x38] sm:$0xff] %v2649_v60  ;;  %2335 = vmatprep.mubr.f32.mxu0 %v1038_v58  ;;  %v1041_v62 = vmul.f32 %v2649_v60, %v745_v9 }
 0x268   : > { %v2653_v51 = vpop.eup %2652  ;;  %2666 = vrcp.f32 %v982_v49  ;;  %v985_v53 = vadd.f32 1.0, %v2651_v61  ;;  %2336 = vmatmul.mubr.f32.gmra.mxu0 %v1039_v56 }
 0x269   : > { %v2655_v57 = vpop.eup %2654  ;;  %1024 = vst [vmem:[%s3439_s16 + $0x30] sm:$0xff] %v2653_v51  ;;  %v1040_v0 = vmul.f32 %v2653_v51, %v744_v8 }
 0x26a   : > { %2668 = vrcp.f32 %v985_v53  ;;  %v984_v2 = vadd.f32 1.0, %v2655_v57 }
 0x26b   : > { %v2657_v3 = vpop.eup %2656  ;;  %2338 = vmatprep.mubr.f32.mxu0 %v1040_v0 }
 0x26c   : > { %1027 = vst [vmem:[%s3439_s16 + $0x48] sm:$0xff] %v2657_v3  ;;  %2670 = vrcp.f32 %v984_v2  ;;  %2339 = vmatmul.mubr.f32.gmra.mxu0 %v1041_v62  ;;  %v1043_v8 = vmul.f32 %v2657_v3, %v747_v15 }
 0x26d   : > { %v2659_v59 = vpop.eup %2658 }
 0x26e   : > { %1026 = vst [vmem:[%s3439_s16 + $0x40] sm:$0xff] %v2659_v59  ;;  %v1042_v63 = vmul.f32 %v2659_v59, %v746_v14 }
 0x26f   : > { %v2661_v6 = vpop.eup %2660 }
 0x270   : > { %1029 = vst [vmem:[%s3439_s16 + $0x58] sm:$0xff] %v2661_v6  ;;  %2341 = vmatprep.mubr.f32.mxu0 %v1042_v63  ;;  %v1045_v12 = vmul.f32 %v2661_v6, %v749_v21  ;;  %v1236_v21 = vld [vmem:[#allocation10 + $0x10] sm:$0xff] }
 0x271   : > { %v2663_v4 = vpop.eup %2662  ;;  %2342 = vmatmul.mubr.f32.gmra.mxu0 %v1043_v8  ;;  %2379 = vmatprep.subr.mxu1 %v1236_v21  ;;  %v1545_v8 = vld [vmem:[#allocation11 + $0x78] sm:$0xff] }
 0x272   : > { %1028 = vst [vmem:[%s3439_s16 + $0x50] sm:$0xff] %v2663_v4  ;;  %v1044_v9 = vmul.f32 %v2663_v4, %v748_v20  ;;  %2380 = vmatpush3.msra.mxu1 %v1236_v21  ;;  %2409 = vmatprep.subr.mxu0 %v1545_v8  ;;  %v1544_v4 = vld [vmem:[#allocation11 + $0x70] sm:$0xff]  ;;  %v1533_v21 = vld [vmem:[#allocation11 + $0x18] sm:$0xff] }
 0x273   : > { %v2665_v1 = vpop.eup %2664  ;;  %2381 = vmatprep.subr.mxu1 %v1235_v24  ;;  %2410 = vmatpush3.msra.mxu0 %v1545_v8 }
 0x274   : > { %1031 = vst [vmem:[%s3439_s16 + $0x68] sm:$0xff] %v2665_v1  ;;  %2344 = vmatprep.mubr.f32.mxu0 %v1044_v9  ;;  %v1047_v5 = vmul.f32 %v2665_v1, %v751_v27  ;;  %2382 = vmatpush3.msra.mxu1 %v1235_v24  ;;  %v1543_v9 = vld [vmem:[#allocation11 + $0x68] sm:$0xff]  ;;  %v1542_v1 = vld [vmem:[#allocation11 + $0x60] sm:$0xff]  ;;  %v1532_v24 = vld [vmem:[#allocation11 + $0x10] sm:$0xff] }
 0x275   : > { %v2667_v14 = vpop.eup %2666  ;;  %2345 = vmatmul.mubr.f32.gmra.mxu0 %v1045_v12  ;;  %2383 = vmatprep.subr.mxu1 %v1234_v22  ;;  %v1541_v12 = vld [vmem:[#allocation11 + $0x58] sm:$0xff] }
 0x276   : > { %1030 = vst [vmem:[%s3439_s16 + $0x60] sm:$0xff] %v2667_v14  ;;  %v1046_v10 = vmul.f32 %v2667_v14, %v750_v26  ;;  %2384 = vmatpush3.msra.mxu1 %v1234_v22  ;;  %v1991_v26 = vld [vmem:[%s3791_s6] ss:$0 sm:$0xff]  ;;  %2411 = vmatprep.subr.mxu0 %v1544_v4  ;;  %v1540_v14 = vld [vmem:[#allocation11 + $0x50] sm:$0xff]  ;;  %v1531_v22 = vld [vmem:[#allocation11 + $0x8] sm:$0xff] }
 0x277   : > { %v2669_v15 = vpop.eup %2668  ;;  %2465 = vmatprep.subr.mxu1 %v1545_v8  ;;  %2412 = vmatpush3.msra.mxu0 %v1544_v4 }
 0x278   : > { %1033 = vst [vmem:[%s3439_s16 + $0x78] sm:$0xff] %v2669_v15  ;;  %2347 = vmatprep.mubr.f32.mxu0 %v1046_v10  ;;  %v1049_v20 = vmul.f32 %v2669_v15, %v753_v32  ;;  %2413 = vmatprep.subr.mxu0 %v1543_v9  ;;  %v1539_v10 = vld [vmem:[#allocation11 + $0x48] sm:$0xff]  ;;  %v1538_v15 = vld [vmem:[#allocation11 + $0x40] sm:$0xff] }
 0x279   : > { %v2671_v18 = vpop.eup %2670  ;;  %2348 = vmatmul.mubr.f32.gmra.mxu0 %v1047_v5  ;;  %v1537_v5 = vld [vmem:[#allocation11 + $0x38] sm:$0xff] }
 0x27a   : > { %1032 = vst [vmem:[%s3439_s16 + $0x70] sm:$0xff] %v2671_v18  ;;  %v1048_v16 = vmul.f32 %v2671_v18, %v752_v31  ;;  %2414 = vmatpush3.msra.mxu0 %v1543_v9  ;;  %v1536_v18 = vld [vmem:[#allocation11 + $0x30] sm:$0xff] }
 0x27b   : > { %2415 = vmatprep.subr.mxu0 %v1542_v1 }
 0x27c   : > { %2350 = vmatprep.mubr.f32.mxu0 %v1048_v16  ;;  %2416 = vmatpush3.msra.mxu0 %v1542_v1  ;;  %v1535_v16 = vld [vmem:[#allocation11 + $0x28] sm:$0xff] }
 0x27d   : > { %2351 = vmatmul.mubr.f32.gmra.mxu0 %v1049_v20  ;;  %2417 = vmatprep.subr.mxu0 %v1541_v12  ;;  %v1534_v20 = vld [vmem:[#allocation11 + $0x20] sm:$0xff] }
 0x27e   : > { %2418 = vmatpush3.msra.mxu0 %v1541_v12 }
 0x27f   : > { %2419 = vmatprep.subr.mxu0 %v1540_v14 }
 0x280   : > { %2420 = vmatpush3.msra.mxu0 %v1540_v14 }
 0x281   : > { %2421 = vmatprep.subr.mxu0 %v1539_v10 }
 0x282   : > { %2422 = vmatpush3.msra.mxu0 %v1539_v10 }
 0x283   : > { %2423 = vmatprep.subr.mxu0 %v1538_v15 }
 0x284   : > { %2424 = vmatpush3.msra.mxu0 %v1538_v15 }
 0x285   : > { %2425 = vmatprep.subr.mxu0 %v1537_v5 }
 0x286   : > { %2426 = vmatpush3.msra.mxu0 %v1537_v5 }
 0x287   : > { %2427 = vmatprep.subr.mxu0 %v1536_v18 }
 0x288   : > { %2428 = vmatpush3.msra.mxu0 %v1536_v18 }
 0x289   : > { %2429 = vmatprep.subr.mxu0 %v1535_v16 }
 0x28a   : > { %2430 = vmatpush3.msra.mxu0 %v1535_v16 }
 0x28b   : > { %2431 = vmatprep.subr.mxu0 %v1534_v20 }
 0x28c   : > { %2432 = vmatpush3.msra.mxu0 %v1534_v20 }
 0x28d   : > { %2433 = vmatprep.subr.mxu0 %v1533_v21 }
 0x28e   : > { %2434 = vmatpush3.msra.mxu0 %v1533_v21 }
 0x28f   : > { %2435 = vmatprep.subr.mxu0 %v1532_v24 }
 0x290   : > { %2436 = vmatpush3.msra.mxu0 %v1532_v24 }
 0x291   : > { %2437 = vmatprep.subr.mxu0 %v1531_v22 }
 0x292   : > { %2438 = vmatpush3.msra.mxu0 %v1531_v22 }
 0x320   : > { %v2331_v27 = vpop.f32.mrf.mxu0 }
 0x321   : > { %v3492_v30 = vadd.f32 %v2331_v27, %v1991_v26  ;;  %v3575_v27 = vld [vmem:[%s3793_s8] ss:$0 sm:$0xff] }
 0x322   : > { %v1139_v28 = vpop.f32.mrf.mxu0 }
 0x323   : > { %v3494_v31 = vadd.f32 %v1991_v26, %v1139_v28  ;;  %v1219_v11 = vmax.f32 %v3492_v30, 0.0 }
 0x324   : > { %v2334_v32 = vpop.f32.mrf.mxu0 }
 0x325   : > { %v1218_v7 = vmax.f32 %v3494_v31, 0.0  ;;  %v3498_v13 = vadd.f32 %v2334_v32, %v1991_v26 }
 0x326   : > { %v1149_v17 = vpop.f32.mrf.mxu0 }
 0x327   : > { %v3500_v19 = vadd.f32 %v1991_v26, %v1149_v17  ;;  %2385 = vmatprep.mubr.f32.mxu1 %v1218_v7  ;;  %v1221_v33 = vmax.f32 %v3498_v13, 0.0 }
 0x328   : > { %v2337_v25 = vpop.f32.mrf.mxu0  ;;  %2386 = vmatmul.mubr.f32.vlgmr.msra.gmra.mxu1 %v1219_v11 }
 0x329   : > { %v1220_v29 = vmax.f32 %v3500_v19, 0.0  ;;  %v3508_v34 = vadd.f32 %v2337_v25, %v1991_v26  ;;  %2481 = vmatpush3.msra.mxu1 %v1545_v8 }
 0x32a   : > { %v1159_v35 = vpop.f32.mrf.mxu0  ;;  %2466 = vmatprep.subr.mxu1 %v1544_v4 }
 0x32b   : > { %v3510_v36 = vadd.f32 %v1991_v26, %v1159_v35  ;;  %2388 = vmatprep.mubr.f32.mxu1 %v1220_v29  ;;  %v1223_v38 = vmax.f32 %v3508_v34, 0.0  ;;  %2482 = vmatpush3.msra.mxu1 %v1544_v4 }
 0x32c   : > { %v2340_v23 = vpop.f32.mrf.mxu0  ;;  %2389 = vmatmul.mubr.f32.gmra.mxu1 %v1221_v33  ;;  %2467 = vmatprep.subr.mxu1 %v1543_v9 }
 0x32d   : > { %v1222_v37 = vmax.f32 %v3510_v36, 0.0  ;;  %v3518_v39 = vadd.f32 %v2340_v23, %v1991_v26  ;;  %2483 = vmatpush3.msra.mxu1 %v1543_v9 }
 0x32e   : > { %v1169_v40 = vpop.f32.mrf.mxu0  ;;  %2468 = vmatprep.subr.mxu1 %v1542_v1 }
 0x32f   : > { %v3520_v41 = vadd.f32 %v1991_v26, %v1169_v40  ;;  %2391 = vmatprep.mubr.f32.mxu1 %v1222_v37  ;;  %v1225_v44 = vmax.f32 %v3518_v39, 0.0  ;;  %2484 = vmatpush3.msra.mxu1 %v1542_v1 }
 0x330   : > { %2392 = vmatmul.mubr.f32.gmra.mxu1 %v1223_v38  ;;  %2469 = vmatprep.subr.mxu1 %v1541_v12 }
 0x331   : > { %v1224_v42 = vmax.f32 %v3520_v41, 0.0  ;;  %v2343_v43 = vpop.f32.mrf.mxu0  ;;  %2485 = vmatpush3.msra.mxu1 %v1541_v12 }
 0x332   : > { %v3528_v52 = vadd.f32 %v2343_v43, %v1991_v26  ;;  %2470 = vmatprep.subr.mxu1 %v1540_v14 }
 0x333   : > { %v1179_v54 = vpop.f32.mrf.mxu0  ;;  %2394 = vmatprep.mubr.f32.mxu1 %v1224_v42  ;;  %2486 = vmatpush3.msra.mxu1 %v1540_v14 }
 0x334   : > { %v3532_v45 = vadd.f32 %v1991_v26, %v1179_v54  ;;  %2395 = vmatmul.mubr.f32.gmra.mxu1 %v1225_v44  ;;  %v1227_v46 = vmax.f32 %v3528_v52, 0.0  ;;  %2471 = vmatprep.subr.mxu1 %v1539_v10 }
 0x335   : > { %v2346_v50 = vpop.f32.mrf.mxu0  ;;  %2487 = vmatpush3.msra.mxu1 %v1539_v10 }
 0x336   : > { %v1226_v55 = vmax.f32 %v3532_v45, 0.0  ;;  %v3538_v47 = vadd.f32 %v2346_v50, %v1991_v26  ;;  %2472 = vmatprep.subr.mxu1 %v1538_v15 }
 0x337   : > { %v1189_v48 = vpop.f32.mrf.mxu0  ;;  %2488 = vmatpush3.msra.mxu1 %v1538_v15 }
 0x338   : > { %v3540_v58 = vadd.f32 %v1991_v26, %v1189_v48  ;;  %2397 = vmatprep.mubr.f32.mxu1 %v1226_v55  ;;  %v1229_v56 = vmax.f32 %v3538_v47, 0.0  ;;  %2473 = vmatprep.subr.mxu1 %v1537_v5 }
 0x339   : > { %v2349_v60 = vpop.f32.mrf.mxu0  ;;  %2398 = vmatmul.mubr.f32.gmra.mxu1 %v1227_v46 }
 0x33a   : > { %v1228_v49 = vmax.f32 %v3540_v58, 0.0  ;;  %v3548_v61 = vadd.f32 %v2349_v60, %v1991_v26  ;;  %2489 = vmatpush3.msra.mxu1 %v1537_v5 }
 0x33b   : > { %v1199_v51 = vpop.f32.mrf.mxu0  ;;  %2474 = vmatprep.subr.mxu1 %v1536_v18 }
 0x33c   : > { %v3550_v53 = vadd.f32 %v1991_v26, %v1199_v51  ;;  %2400 = vmatprep.mubr.f32.mxu1 %v1228_v49  ;;  %v1231_v2 = vmax.f32 %v3548_v61, 0.0  ;;  %2490 = vmatpush3.msra.mxu1 %v1536_v18 }
 0x33d   : > { %v2352_v57 = vpop.f32.mrf.mxu0  ;;  %2401 = vmatmul.mubr.f32.gmra.mxu1 %v1229_v56  ;;  %2475 = vmatprep.subr.mxu1 %v1535_v16 }
 0x33e   : > { %v1230_v0 = vmax.f32 %v3550_v53, 0.0  ;;  %v3558_v62 = vadd.f32 %v2352_v57, %v1991_v26  ;;  %2491 = vmatpush3.msra.mxu1 %v1535_v16 }
 0x33f   : > { %v1209_v3 = vpop.f32.mrf.mxu0  ;;  %2476 = vmatprep.subr.mxu1 %v1534_v20 }
 0x340   : > { %v3560_v59 = vadd.f32 %v1991_v26, %v1209_v3  ;;  %2403 = vmatprep.mubr.f32.mxu1 %v1230_v0  ;;  %v1233_v6 = vmax.f32 %v3558_v62, 0.0  ;;  %2492 = vmatpush3.msra.mxu1 %v1534_v20  ;;  %v1530_v26 = vld [vmem:[#allocation11] sm:$0xff] }
 0x341   : > { %2404 = vmatmul.mubr.f32.gmra.mxu1 %v1231_v2  ;;  %2477 = vmatprep.subr.mxu1 %v1533_v21 }
 0x342   : > { %v1232_v63 = vmax.f32 %v3560_v59, 0.0  ;;  %2493 = vmatpush3.msra.mxu1 %v1533_v21  ;;  %2439 = vmatprep.subr.mxu0 %v1530_v26 }
 0x343   : > { %2478 = vmatprep.subr.mxu1 %v1532_v24  ;;  %2440 = vmatpush3.msra.mxu0 %v1530_v26 }
 0x344   : > { %2406 = vmatprep.mubr.f32.mxu1 %v1232_v63  ;;  %2494 = vmatpush3.msra.mxu1 %v1532_v24 }
 0x345   : > { %2407 = vmatmul.mubr.f32.gmra.mxu1 %v1233_v6  ;;  %2479 = vmatprep.subr.mxu1 %v1531_v22 }
 0x346   : > { %2495 = vmatpush3.msra.mxu1 %v1531_v22 }
 0x347   : > { %2480 = vmatprep.subr.mxu1 %v1530_v26 }
 0x348   : > { %2496 = vmatpush3.msra.mxu1 %v1530_v26 }
 0x3e8   : > { %v2387_v28 = vpop.f32.mrf.mxu1 }
 0x3e9   : > { %v1329_v32 = vadd.f32 %v2387_v28, %v3575_v27 }
 0x3ea   : > { %v1323_v17 = vpop.f32.mrf.mxu1 }
 0x3eb   : > { %v1994_v25 = vmul.f32 -1.442695, %v1329_v32  ;;  %v1324_v35 = vadd.f32 %v3575_v27, %v1323_v17 }
 0x3ec   : > { %v2390_v23 = vpop.f32.mrf.mxu1 }
 0x3ed   : > { %2672 = vpow2.f32 %v1994_v25  ;;  %v1993_v40 = vmul.f32 -1.442695, %v1324_v35  ;;  %v1339_v43 = vadd.f32 %v2390_v23, %v3575_v27 }
 0x3ee   : > { %v1333_v54 = vpop.f32.mrf.mxu1 }
 0x3ef   : > { %2674 = vpow2.f32 %v1993_v40  ;;  %v1996_v50 = vmul.f32 -1.442695, %v1339_v43  ;;  %v1334_v48 = vadd.f32 %v3575_v27, %v1333_v54 }
 0x3f0   : > { %v2393_v60 = vpop.f32.mrf.mxu1 }
 0x3f1   : > { %2676 = vpow2.f32 %v1996_v50  ;;  %v1995_v51 = vmul.f32 -1.442695, %v1334_v48  ;;  %v1349_v57 = vadd.f32 %v2393_v60, %v3575_v27 }
 0x3f2   : > { %v1343_v3 = vpop.f32.mrf.mxu1 }
 0x3f3   : > { %2678 = vpow2.f32 %v1995_v51  ;;  %v1998_v8 = vmul.f32 -1.442695, %v1349_v57  ;;  %v1344_v4 = vadd.f32 %v3575_v27, %v1343_v3 }
 0x3f4   : > { %v2396_v9 = vpop.f32.mrf.mxu1 }
 0x3f5   : > { %2680 = vpow2.f32 %v1998_v8  ;;  %v1997_v1 = vmul.f32 -1.442695, %v1344_v4  ;;  %v1359_v12 = vadd.f32 %v2396_v9, %v3575_v27 }
 0x3f6   : > { %v1353_v14 = vpop.f32.mrf.mxu1 }
 0x3f7   : > { %2682 = vpow2.f32 %v1997_v1  ;;  %v2000_v10 = vmul.f32 -1.442695, %v1359_v12  ;;  %v1354_v15 = vadd.f32 %v3575_v27, %v1353_v14 }
 0x3f9   : > { %2684 = vpow2.f32 %v2000_v10  ;;  %v1999_v5 = vmul.f32 -1.442695, %v1354_v15  ;;  %v2399_v18 = vpop.f32.mrf.mxu1 }
 0x3fa   : > { %v2673_v16 = vpop.eup %2672  ;;  %v1369_v20 = vadd.f32 %v2399_v18, %v3575_v27 }
 0x3fb   : > { %v1451_v21 = vadd.f32 1.0, %v2673_v16  ;;  %2686 = vpow2.f32 %v1999_v5  ;;  %v1363_v24 = vpop.f32.mrf.mxu1 }
 0x3fc   : > { %v2675_v22 = vpop.eup %2674  ;;  %v2002_v26 = vmul.f32 -1.442695, %v1369_v20  ;;  %v1364_v28 = vadd.f32 %v3575_v27, %v1363_v24 }
 0x3fd   : > { %2688 = vrcp.f32 %v1451_v21  ;;  %v1450_v32 = vadd.f32 1.0, %v2675_v22  ;;  %v2402_v17 = vpop.f32.mrf.mxu1 }
 0x3fe   : > { %v2677_v25 = vpop.eup %2676  ;;  %2690 = vpow2.f32 %v2002_v26  ;;  %v2001_v35 = vmul.f32 -1.442695, %v1364_v28  ;;  %v1379_v23 = vadd.f32 %v2402_v17, %v3575_v27 }
 0x3ff   : > { %2692 = vrcp.f32 %v1450_v32  ;;  %v1453_v40 = vadd.f32 1.0, %v2677_v25  ;;  %v1373_v43 = vpop.f32.mrf.mxu1 }
 0x400   : > { %v2679_v54 = vpop.eup %2678  ;;  %2694 = vpow2.f32 %v2001_v35  ;;  %v2004_v50 = vmul.f32 -1.442695, %v1379_v23  ;;  %v1374_v48 = vadd.f32 %v3575_v27, %v1373_v43 }
 0x401   : > { %2696 = vrcp.f32 %v1453_v40  ;;  %v1452_v60 = vadd.f32 1.0, %v2679_v54  ;;  %v2405_v51 = vpop.f32.mrf.mxu1 }
 0x402   : > { %v2681_v57 = vpop.eup %2680  ;;  %2698 = vpow2.f32 %v2004_v50  ;;  %v2003_v3 = vmul.f32 -1.442695, %v1374_v48  ;;  %v1389_v8 = vadd.f32 %v2405_v51, %v3575_v27 }
 0x403   : > { %2700 = vrcp.f32 %v1452_v60  ;;  %v1455_v4 = vadd.f32 1.0, %v2681_v57  ;;  %v1383_v9 = vpop.f32.mrf.mxu1 }
 0x404   : > { %v2683_v1 = vpop.eup %2682  ;;  %2702 = vpow2.f32 %v2003_v3  ;;  %v2006_v12 = vmul.f32 -1.442695, %v1389_v8  ;;  %v1384_v14 = vadd.f32 %v3575_v27, %v1383_v9 }
 0x405   : > { %2704 = vrcp.f32 %v1455_v4  ;;  %v1454_v10 = vadd.f32 1.0, %v2683_v1  ;;  %v2408_v15 = vpop.f32.mrf.mxu1 }
 0x406   : > { %v2685_v5 = vpop.eup %2684  ;;  %2706 = vpow2.f32 %v2006_v12  ;;  %v2005_v18 = vmul.f32 -1.442695, %v1384_v14  ;;  %v1399_v16 = vadd.f32 %v2408_v15, %v3575_v27 }
 0x407   : > { %2708 = vrcp.f32 %v1454_v10  ;;  %v1457_v20 = vadd.f32 1.0, %v2685_v5  ;;  %v1393_v21 = vpop.f32.mrf.mxu1 }
 0x408   : > { %v2687_v24 = vpop.eup %2686  ;;  %2710 = vpow2.f32 %v2005_v18  ;;  %v2008_v22 = vmul.f32 -1.442695, %v1399_v16  ;;  %v1394_v26 = vadd.f32 %v3575_v27, %v1393_v21 }
 0x409   : > { %2712 = vrcp.f32 %v1457_v20  ;;  %v1456_v28 = vadd.f32 1.0, %v2687_v24 }
 0x40a   : > { %v2689_v32 = vpop.eup %2688  ;;  %2714 = vpow2.f32 %v2008_v22  ;;  %v2007_v17 = vmul.f32 -1.442695, %v1394_v26 }
 0x40b   : > { %v2691_v25 = vpop.eup %2690  ;;  %1499 = vst [vmem:[%s3594_s9 + $0x8] sm:$0xff] %v2689_v32  ;;  %2716 = vrcp.f32 %v1456_v28  ;;  %v1515_v50 = vmul.f32 %v2689_v32, %v1219_v11 }
 0x40c   : > { %v2693_v35 = vpop.eup %2692  ;;  %v1459_v23 = vadd.f32 1.0, %v2691_v25  ;;  %2718 = vpow2.f32 %v2007_v17 }
 0x40d   : > { %v2695_v40 = vpop.eup %2694  ;;  %1498 = vst [vmem:[%s3594_s9] sm:$0xff] %v2693_v35  ;;  %v1514_v27 = vmul.f32 %v2693_v35, %v1218_v7 }
 0x40e   : > { %v2697_v43 = vpop.eup %2696  ;;  %2720 = vrcp.f32 %v1459_v23  ;;  %v1458_v54 = vadd.f32 1.0, %v2695_v40 }
 0x40f   : > { %v2699_v48 = vpop.eup %2698  ;;  %1501 = vst [vmem:[%s3594_s9 + $0x18] sm:$0xff] %v2697_v43  ;;  %2441 = vmatprep.mubr.f32.mxu0 %v1514_v27  ;;  %v1517_v30 = vmul.f32 %v2697_v43, %v1221_v33 }
 0x410   : > { %v2701_v60 = vpop.eup %2700  ;;  %2722 = vrcp.f32 %v1458_v54  ;;  %v1461_v51 = vadd.f32 1.0, %v2699_v48  ;;  %2442 = vmatmul.mubr.f32.vlgmr.msra.gmra.mxu0 %v1515_v50 }
 0x411   : > { %v2703_v57 = vpop.eup %2702  ;;  %1500 = vst [vmem:[%s3594_s9 + $0x10] sm:$0xff] %v2701_v60  ;;  %v1516_v31 = vmul.f32 %v2701_v60, %v1220_v29 }
 0x412   : > { %v2705_v7 = vpop.eup %2704  ;;  %2724 = vrcp.f32 %v1461_v51  ;;  %v1460_v3 = vadd.f32 1.0, %v2703_v57 }
 0x413   : > { %v2707_v11 = vpop.eup %2706  ;;  %1503 = vst [vmem:[%s3594_s9 + $0x28] sm:$0xff] %v2705_v7  ;;  %2444 = vmatprep.mubr.f32.mxu0 %v1516_v31  ;;  %v1519_v13 = vmul.f32 %v2705_v7, %v1223_v38 }
 0x414   : > { %v2709_v8 = vpop.eup %2708  ;;  %2726 = vrcp.f32 %v1460_v3  ;;  %v1463_v4 = vadd.f32 1.0, %v2707_v11  ;;  %2445 = vmatmul.mubr.f32.gmra.mxu0 %v1517_v30 }
 0x415   : > { %v2711_v9 = vpop.eup %2710  ;;  %1502 = vst [vmem:[%s3594_s9 + $0x20] sm:$0xff] %v2709_v8  ;;  %v1518_v19 = vmul.f32 %v2709_v8, %v1222_v37 }
 0x416   : > { %v2713_v29 = vpop.eup %2712  ;;  %2728 = vrcp.f32 %v1463_v4  ;;  %v1462_v1 = vadd.f32 1.0, %v2711_v9 }
 0x417   : > { %v2715_v33 = vpop.eup %2714  ;;  %1505 = vst [vmem:[%s3594_s9 + $0x38] sm:$0xff] %v2713_v29  ;;  %2447 = vmatprep.mubr.f32.mxu0 %v1518_v19  ;;  %v1521_v34 = vmul.f32 %v2713_v29, %v1225_v44 }
 0x418   : > { %v2717_v12 = vpop.eup %2716  ;;  %2730 = vrcp.f32 %v1462_v1  ;;  %v1465_v14 = vadd.f32 1.0, %v2715_v33  ;;  %2448 = vmatmul.mubr.f32.gmra.mxu0 %v1519_v13 }
 0x419   : > { %v2719_v10 = vpop.eup %2718  ;;  %1504 = vst [vmem:[%s3594_s9 + $0x30] sm:$0xff] %v2717_v12  ;;  %v1520_v36 = vmul.f32 %v2717_v12, %v1224_v42 }
 0x41a   : > { %2732 = vrcp.f32 %v1465_v14  ;;  %v1464_v37 = vadd.f32 1.0, %v2719_v10 }
 0x41b   : > { %v2721_v38 = vpop.eup %2720  ;;  %2450 = vmatprep.mubr.f32.mxu0 %v1520_v36 }
 0x41c   : > { %1507 = vst [vmem:[%s3594_s9 + $0x48] sm:$0xff] %v2721_v38  ;;  %2734 = vrcp.f32 %v1464_v37  ;;  %2451 = vmatmul.mubr.f32.gmra.mxu0 %v1521_v34  ;;  %v1523_v42 = vmul.f32 %v2721_v38, %v1227_v46 }
 0x41d   : > { %v2723_v15 = vpop.eup %2722 }
 0x41e   : > { %1506 = vst [vmem:[%s3594_s9 + $0x40] sm:$0xff] %v2723_v15  ;;  %v1522_v5 = vmul.f32 %v2723_v15, %v1226_v55 }
 0x41f   : > { %v2725_v41 = vpop.eup %2724 }
 0x420   : > { %1509 = vst [vmem:[%s3594_s9 + $0x58] sm:$0xff] %v2725_v41  ;;  %2453 = vmatprep.mubr.f32.mxu1 %v1522_v5  ;;  %v1525_v45 = vmul.f32 %v2725_v41, %v1229_v56 }
 0x421   : > { %v2727_v39 = vpop.eup %2726  ;;  %2454 = vmatmul.mubr.f32.vlgmr.msra.gmra.mxu1 %v1523_v42 }
 0x422   : > { %1508 = vst [vmem:[%s3594_s9 + $0x50] sm:$0xff] %v2727_v39  ;;  %v1524_v44 = vmul.f32 %v2727_v39, %v1228_v49 }
 0x423   : > { %v2729_v18 = vpop.eup %2728 }
 0x424   : > { %1511 = vst [vmem:[%s3594_s9 + $0x68] sm:$0xff] %v2729_v18  ;;  %2456 = vmatprep.mubr.f32.mxu1 %v1524_v44  ;;  %v1527_v58 = vmul.f32 %v2729_v18, %v1231_v2 }
 0x425   : > { %v2731_v55 = vpop.eup %2730  ;;  %2457 = vmatmul.mubr.f32.gmra.mxu1 %v1525_v45 }
 0x426   : > { %1510 = vst [vmem:[%s3594_s9 + $0x60] sm:$0xff] %v2731_v55  ;;  %v1526_v52 = vmul.f32 %v2731_v55, %v1230_v0 }
 0x427   : > { %v2733_v46 = vpop.eup %2732 }
 0x428   : > { %1513 = vst [vmem:[%s3594_s9 + $0x78] sm:$0xff] %v2733_v46  ;;  %2459 = vmatprep.mubr.f32.mxu1 %v1526_v52  ;;  %v1529_v56 = vmul.f32 %v2733_v46, %v1233_v6 }
 0x429   : > { %v2735_v47 = vpop.eup %2734  ;;  %2460 = vmatmul.mubr.f32.gmra.mxu1 %v1527_v58 }
 0x42a   : > { %1512 = vst [vmem:[%s3594_s9 + $0x70] sm:$0xff] %v2735_v47  ;;  %v1528_v49 = vmul.f32 %v2735_v47, %v1232_v63 }
 0x42c   : > { %2462 = vmatprep.mubr.f32.mxu1 %v1528_v49 }
 0x42d   : > { %2463 = vmatmul.mubr.f32.gmra.mxu1 %v1529_v56 }
 0x42e   : > { %2907 = shalt.err (!%p2904_p3)
}
 0x42f   : > { %s2908_s16 = scalar_lea.hbm %s3652_s7, 2048  ;;  %s2912_s29 = scalar_lea.hbm %s3797_s12, 4096 }
 0x430   : > { %p2909_p4 = scmp.ne.s32.totalorder %s3652_s7, %s2908_s16  ;;  %p2913_p2 = scmp.lt.s32.totalorder %s3652_s7, %s3797_s12 }
 0x431   : > { %p2914_p7 = scmp.lt.s32.totalorder %s2912_s29, %s2908_s16 }
 0x432   : > { %p2910_p12 = pnand %p2909_p4, %p3838_p11 }
 0x433   : > { %p2915_p8 = por %p2914_p7, %p2913_p2 }
 0x434   : > { %p2911_p6 = pneg %p2910_p12 }
 0x436   : > { %p2916_p10 = pnand %p2915_p8, %p2911_p6 }
 0x438   : > { %2919 = shalt.err (!%p2916_p10)
}
 0x439   : > { %s3037_s3 = smov 128   ;;  %s3038_s30 = smov 8  }
 0x43a   : > { %2520 = dma.vmem_to_hbm [thread:$0]  (%p3838_p11), %s3655_s15, 2048, %s3652_s7, %s3657_s24, %s3037_s3, %s3037_s3, %s3038_s30  }
 0x43b   : > { %s3687_s16 = scalar_lea.hbm %s3798_s13, %s3646_s18  ;;  %s1770_s22 = sshll.u32 %s3594_s9, 4  ;;  %s1771_s22 = int_to_ptr.vmem [resolvable:$true] %s1770_s22 }
 0x43c   : > { %s2920_s29 = scalar_lea.vmem %s1771_s22, 2048  ;;  %s3039_s5 = smov [#allocation16]  }
 0x43d   : > { %p2921_p0 = scmp.ne.s32.totalorder %s1771_s22, %s2920_s29  ;;  %s2924_s14 = sshll.u32 %s3039_s5, 4  ;;  %s2925_s14 = int_to_ptr.vmem [resolvable:$false] %s2924_s14 }
 0x43e   : > { %s2926_s0 = scalar_lea.vmem %s2925_s14, 4096  ;;  %p2927_p9 = scmp.lt.s32.totalorder %s1771_s22, %s2925_s14 }
 0x43f   : > { %p2922_p13 = pnand %p2921_p0, %p3838_p11  ;;  %p2928_p1 = scmp.lt.s32.totalorder %s2926_s0, %s2920_s29 }
 0x441   : > { %p2923_p5 = pneg %p2922_p13  ;;  %p2929_p3 = por %p2928_p1, %p2927_p9 }
 0x443   : > { %p2930_p4 = pnand %p2929_p3, %p2923_p5 }
 0x445   : > { %2933 = shalt.err (!%p2930_p4)
}
 0x446   : > { %s2934_s9 = scalar_lea.hbm %s3687_s16, 2048  ;;  %s2938_s19 = scalar_lea.hbm %s3798_s13, 4096 }
 0x447   : > { %p2935_p12 = scmp.ne.s32.totalorder %s3687_s16, %s2934_s9  ;;  %p2939_p7 = scmp.lt.s32.totalorder %s3687_s16, %s3798_s13 }
 0x448   : > { %p2940_p8 = scmp.lt.s32.totalorder %s2938_s19, %s2934_s9 }
 0x449   : > { %p2936_p6 = pnand %p2935_p12, %p3838_p11 }
 0x44a   : > { %p2941_p10 = por %p2940_p8, %p2939_p7 }
 0x44b   : > { %p2937_p2 = pneg %p2936_p6 }
 0x44d   : > { %p2942_p0 = pnand %p2941_p10, %p2937_p2 }
 0x44f   : > { %2945 = shalt.err (!%p2942_p0)
}
 0x450   : > { %2521 = dma.vmem_to_hbm [thread:$0]  (%p3838_p11), %s1771_s22, 2048, %s3687_s16, %s3657_s24, %s3037_s3, %s3037_s3, %s3038_s30  }
 0x451   : > { %v2009_v61 = vld [vmem:[%s3795_s10] ss:$0 sm:$0xff]  ;;  %s3714_s14 = scalar_lea.vmem [#allocation13], %s3296_s27  ;;  %s3736_s22 = scalar_lea.hbm %s3796_s11, %s3646_s18 }
 0x452   : > { %s1738_s27 = sshll.u32 %s3714_s14, 4  ;;  %s1715_s9 = scalar_lea.sflag [#allocation4], %s3293_s20  ;;  %s3738_s27 = int_to_ptr.vmem [resolvable:$true] %s1738_s27 }
 0x453   : > { %s2946_s7 = scalar_lea.vmem %s3738_s27, 2048  ;;  %s3040_s15 = smov [#allocation13]  }
 0x454   : > { %p2947_p13 = scmp.ne.s32.totalorder %s3738_s27, %s2946_s7  ;;  %s2950_s19 = sshll.u32 %s3040_s15, 4  ;;  %s2951_s19 = int_to_ptr.vmem [resolvable:$false] %s2950_s19 }
 0x455   : > { %s2952_s23 = scalar_lea.vmem %s2951_s19, 4096  ;;  %p2953_p1 = scmp.lt.s32.totalorder %s3738_s27, %s2951_s19 }
 0x456   : > { %p2948_p5 = pnand %p2947_p13, %p3838_p11  ;;  %p2954_p3 = scmp.lt.s32.totalorder %s2952_s23, %s2946_s7 }
 0x458   : > { %p2949_p9 = pneg %p2948_p5  ;;  %p2955_p4 = por %p2954_p3, %p2953_p1 }
 0x45a   : > { %p2956_p12 = pnand %p2955_p4, %p2949_p9 }
 0x4d0   : > { %v2443_v53 = vpop.f32.mrf.mxu0 }
 0x4d1   : > { %v1625_v0 = vadd.f32 %v2443_v53, %v2009_v61 }
 0x4d2   : > { %v1619_v2 = vpop.f32.mrf.mxu0 }
 0x4d3   : > { %1699 = vst [vmem:[%s3714_s14 + $0x8] sm:$0xff] %v1625_v0  ;;  %v1620_v62 = vadd.f32 %v2009_v61, %v1619_v2 }
 0x4d4   : > { %v2446_v59 = vpop.f32.mrf.mxu0 }
 0x4d5   : > { %1698 = vst [vmem:[%s3714_s14] sm:$0xff] %v1620_v62  ;;  %v1635_v63 = vadd.f32 %v2446_v59, %v2009_v61 }
 0x4d6   : > { %v1629_v6 = vpop.f32.mrf.mxu0 }
 0x4d7   : > { %1701 = vst [vmem:[%s3714_s14 + $0x18] sm:$0xff] %v1635_v63  ;;  %v1630_v16 = vadd.f32 %v2009_v61, %v1629_v6 }
 0x4d8   : > { %v2449_v20 = vpop.f32.mrf.mxu0 }
 0x4d9   : > { %1700 = vst [vmem:[%s3714_s14 + $0x10] sm:$0xff] %v1630_v16  ;;  %v1645_v21 = vadd.f32 %v2449_v20, %v2009_v61 }
 0x4da   : > { %v1639_v24 = vpop.f32.mrf.mxu0 }
 0x4db   : > { %1703 = vst [vmem:[%s3714_s14 + $0x28] sm:$0xff] %v1645_v21  ;;  %v1640_v22 = vadd.f32 %v2009_v61, %v1639_v24 }
 0x4dc   : > { %v2452_v26 = vpop.f32.mrf.mxu0 }
 0x4dd   : > { %1702 = vst [vmem:[%s3714_s14 + $0x20] sm:$0xff] %v1640_v22  ;;  %v1655_v28 = vadd.f32 %v2452_v26, %v2009_v61 }
 0x4de   : > { %v1649_v32 = vpop.f32.mrf.mxu0 }
 0x4df   : > { %1705 = vst [vmem:[%s3714_s14 + $0x38] sm:$0xff] %v1655_v28  ;;  %v1650_v17 = vadd.f32 %v2009_v61, %v1649_v32 }
 0x4e1   : > { %1704 = vst [vmem:[%s3714_s14 + $0x30] sm:$0xff] %v1650_v17  ;;  %v2455_v25 = vpop.f32.mrf.mxu1 }
 0x4e2   : > { %v1665_v35 = vadd.f32 %v2455_v25, %v2009_v61 }
 0x4e3   : > { %v1659_v23 = vpop.f32.mrf.mxu1 }
 0x4e4   : > { %1707 = vst [vmem:[%s3714_s14 + $0x48] sm:$0xff] %v1665_v35  ;;  %v1660_v40 = vadd.f32 %v2009_v61, %v1659_v23 }
 0x4e5   : > { %v2458_v27 = vpop.f32.mrf.mxu1 }
 0x4e6   : > { %1706 = vst [vmem:[%s3714_s14 + $0x40] sm:$0xff] %v1660_v40  ;;  %v1675_v43 = vadd.f32 %v2458_v27, %v2009_v61 }
 0x4e7   : > { %v1669_v54 = vpop.f32.mrf.mxu1 }
 0x4e8   : > { %1709 = vst [vmem:[%s3714_s14 + $0x58] sm:$0xff] %v1675_v43  ;;  %v1670_v50 = vadd.f32 %v2009_v61, %v1669_v54 }
 0x4e9   : > { %v2461_v48 = vpop.f32.mrf.mxu1 }
 0x4ea   : > { %1708 = vst [vmem:[%s3714_s14 + $0x50] sm:$0xff] %v1670_v50  ;;  %v1685_v60 = vadd.f32 %v2461_v48, %v2009_v61 }
 0x4eb   : > { %v1679_v51 = vpop.f32.mrf.mxu1 }
 0x4ec   : > { %1711 = vst [vmem:[%s3714_s14 + $0x68] sm:$0xff] %v1685_v60  ;;  %v1680_v57 = vadd.f32 %v2009_v61, %v1679_v51 }
 0x4ed   : > { %v2464_v31 = vpop.f32.mrf.mxu1 }
 0x4ee   : > { %1710 = vst [vmem:[%s3714_s14 + $0x60] sm:$0xff] %v1680_v57  ;;  %v1695_v7 = vadd.f32 %v2464_v31, %v2009_v61 }
 0x4ef   : > { %v1689_v3 = vpop.f32.mrf.mxu1 }
 0x4f0   : > { %1713 = vst [vmem:[%s3714_s14 + $0x78] sm:$0xff] %v1695_v7  ;;  %v1690_v30 = vadd.f32 %v2009_v61, %v1689_v3 }
 0x4f2   : > { %1712 = vst [vmem:[%s3714_s14 + $0x70] sm:$0xff] %v1690_v30 }
 0x4f3   : > { %2959 = shalt.err (!%p2956_p12)
}
 0x4f4   : > { %s2960_s18 = scalar_lea.hbm %s3736_s22, 2048  ;;  %s2964_s0 = scalar_lea.hbm %s3796_s11, 4096 }
 0x4f5   : > { %p2961_p6 = scmp.ne.s32.totalorder %s3736_s22, %s2960_s18  ;;  %p2965_p8 = scmp.lt.s32.totalorder %s3736_s22, %s3796_s11 }
 0x4f6   : > { %p2966_p10 = scmp.lt.s32.totalorder %s2964_s0, %s2960_s18 }
 0x4f7   : > { %p2962_p2 = pnand %p2961_p6, %p3838_p11 }
 0x4f8   : > { %p2967_p0 = por %p2966_p10, %p2965_p8 }
 0x4f9   : > { %p2963_p7 = pneg %p2962_p2 }
 0x4fb   : > { %p2968_p13 = pnand %p2967_p0, %p2963_p7 }
 0x4fd   : > { %2971 = shalt.err (!%p2968_p13)
}
 0x4fe   : > { %2519 = dma.vmem_to_hbm [thread:$0]  (%p3838_p11), %s3738_s27, 2048, %s3736_s22, %s1715_s9, %s3037_s3, %s3037_s3, %s3038_s30  }
 0x4ff PF: > { %s1785_s24 = sand.u32 1, %s3014_s25   ;;  %p3839_p5 = scmp.ne.s32.totalorder %s3825_s17, 0 }
 0x500   : > { %p3840_p9 = scmp.ge.s32.totalorder %s3026_s28, 2  ;;  %s1786_s16 = scalar_lea.sflag [#allocation4], %s1785_s24 }
 0x502   : > { %p2546_p1 = pnand %p3840_p9, %p3839_p5 }
 0x504   : > { %p2547_p3 = pneg %p2546_p1 }
 0x506   : > { %3005 = dma.done.wait (%p2547_p3), %s1786_s16, 2048  }
 0x507   : > { %3007 = vsyncadd (%p2547_p3), %s1786_s16, 4294965248  ;;  %s3841_s1 = sadd.s32 4294967294, %s3026_s28  }
 0x508   : > { %s1794_s7 = sand.u32 1, %s3841_s1  }
 0x509   : > { %s1795_s15 = scalar_lea.sflag [#allocation15], %s1794_s7 }
 0x50a   : > { %3009 = dma.done.wait (%p2547_p3), %s1795_s15, 4096  }
 0x50b   : > { %3011 = vsyncadd (%p2547_p3), %s1795_s15, 4294963200  ;;  %s3842_s3 = sld [smem:[#allocation23_spill]]  ;;  %p33_p11 = scmp.ge.s32.totalorder %s3222_s21, 4  }
 0x50c   : > { %s3843_s27 = sld [smem:[#allocation24_spill]]  ;;  %s3844_s25 = smov %s3018_s26 }
 0x50d   : > { %s3846_s28 = smov %s3222_s21  ;;  %35 = sbr.rel (!%p33_p11) target bundleno = 17 (0x11), region = 161 }
 0x511   : > { %s3845_s26 = smov %s3842_s3 }
 0x512   :  { %1809 = vsyncpa [#allocation3], 1 }
 0x513   :  { %1811 = vsyncpa [#allocation3 + $0x1], 1 }
 0x514   :  { %1812 = vsyncpa [#allocation6], 1 }
 0x515   :  { %1813 = vsyncpa [#allocation9], 1 }
 0x516   :  { %1814 = vsyncpa [#allocation12], 1 }
 0x517   :  { %1815 = vsyncpa [#allocation4], 1 }
 0x518   :  { %1817 = vsyncpa [#allocation4 + $0x1], 1 }
 0x519   :  { %1818 = vsyncpa [#allocation15], 1 }
 0x51a   :  { %1820 = vsyncpa [#allocation15 + $0x1], 1 }

// kernel: tpu_custom_call.1
= control target key start
LH: loop header
LB: loop body
LE: loop exit
PB: predicated region body
PF: predicated region fallthrough
CT: control target
= control target key end

     0   :  { %s3785_s0 = inlined_call_operand.hbm [shape: f32[256,128], index: 0, kind: input, shape index: {}]   ;;  %s3786_s1 = inlined_call_operand.hbm [shape: f32[128,128], index: 1, kind: input, shape index: {}]   ;;  %s3787_s2 = inlined_call_operand.vmem [shape: f32[1,128], index: 2, kind: input, shape index: {}]   ;;  %s3788_s3 = inlined_call_operand.hbm [shape: f32[128,128], index: 3, kind: input, shape index: {}]   ;;  %s3789_s4 = inlined_call_operand.vmem [shape: f32[1,128], index: 4, kind: input, shape index: {}]   ;;  %s3790_s5 = inlined_call_operand.hbm [shape: f32[128,128], index: 5, kind: input, shape index: {}]   ;;  %s3791_s6 = inlined_call_operand.vmem [shape: f32[1,128], index: 6, kind: input, shape index: {}]   ;;  %s3792_s7 = inlined_call_operand.hbm [shape: f32[128,128], index: 7, kind: input, shape index: {}]   ;;  %s3793_s8 = inlined_call_operand.vmem [shape: f32[1,128], index: 8, kind: input, shape index: {}]   ;;  %s3794_s9 = inlined_call_operand.hbm [shape: f32[128,128], index: 9, kind: input, shape index: {}]   ;;  %s3795_s10 = inlined_call_operand.vmem [shape: f32[1,128], index: 10, kind: input, shape index: {}]   ;;  %s3796_s11 = inlined_call_operand.hbm [shape: f32[256,128], index: 11, kind: output, shape index: {0}]   ;;  %s3797_s12 = inlined_call_operand.hbm [shape: f32[256,128], index: 12, kind: output, shape index: {1}]   ;;  %s3798_s13 = inlined_call_operand.hbm [shape: f32[256,128], index: 13, kind: output, shape index: {2}]  }
   0x1   :  { %3807 = sst [smem:[#allocation25_spill]] %s3785_s0 }
   0x2   :  { %3808 = sst [smem:[#allocation26_spill]] %s3786_s1 }
   0x3   :  { %3809 = sst [smem:[#allocation27_spill]] %s3788_s3 }
   0x4   :  { %3810 = sst [smem:[#allocation28_spill]] %s3790_s5 }
   0x5   :  { %3811 = sst [smem:[#allocation29_spill]] %s3792_s7 }
   0x6   :  { %3812 = sst [smem:[#allocation30_spill]] %s3794_s9 }
   0x7   :  { %19 = vsyncpa [#allocation3], 0 }
   0x8   :  { %21 = vsyncpa [#allocation3 + $0x1], 0 }
   0x9   :  { %22 = vsyncpa [#allocation6], 0 }
   0xa   :  { %23 = vsyncpa [#allocation9], 0 }
   0xb   :  { %24 = vsyncpa [#allocation12], 0 }
   0xc   :  { %25 = vsyncpa [#allocation4], 0 }
   0xd   :  { %27 = vsyncpa [#allocation4 + $0x1], 0 }
   0xe   :  { %28 = vsyncpa [#allocation15], 0 }
   0xf   :  { %30 = vsyncpa [#allocation15 + $0x1], 0  ;;  %s3111_s25 = smov 0   ;;  %s3113_s26 = smov 0  }
  0x10   :  { %s3115_s27 = smov 0   ;;  %s3117_s28 = smov 0  }
  0x11 LB: > { %3813 = sst [smem:[#allocation23_spill]] %s3022_s27  ;;  %s3028_s29 = smov [#allocation5]   ;;  %s3026_s28 = sphi %s3117_s28, %s3846_s28   ;;  %s3022_s27 = sphi %s3115_s27, %s3843_s27   ;;  %s3018_s26 = sphi %s3113_s26, %s3845_s26   ;;  %s3014_s25 = sphi %s3111_s25, %s3844_s25  }
  0x12   : > { %s367_s30 = sshll.u32 %s3028_s29, 4  ;;  %s3132_s14 = sadd.s32 4294967295, %s3026_s28   ;;  %s368_s30 = int_to_ptr.vmem [resolvable:$true] %s367_s30 }
  0x13   : > { %p1953_p0 = scmp.ge.s32.totalorder %s3026_s28, 1  ;;  %p3802_p1 = scmp.eq.s32.totalorder %s3132_s14, 0 }
  0x14   : > { %p355_p2 = scmp.lt.s32.totalorder %s3026_s28, 3  ;;  %s3029_s16 = smov [#allocation8]  }
  0x15   : > { %s399_s17 = sshll.u32 %s3029_s16, 4  ;;  %s3030_s19 = smov [#allocation7]   ;;  %s3150_s17 = int_to_ptr.vmem [resolvable:$true] %s399_s17 }
  0x16   : > { %p3137_p3 = pnand %p1953_p0, %p355_p2  ;;  %s383_s20 = sshll.u32 %s3030_s19, 4  ;;  %s3152_s20 = int_to_ptr.vmem [resolvable:$true] %s383_s20 }
  0x17   : > { %s2747_s22 = scalar_lea.vmem %s368_s30, 2048  ;;  %p2755_p11 = scmp.lt.s32.totalorder %s368_s30, %s368_s30 }
  0x18   : > { %s3814_s15 = scalar_select %p3137_p3, 1, 0 }
  0x19   : > { %p2525_p5 = pneg %p3137_p3  ;;  %p2748_p8 = scmp.ne.s32.totalorder %s368_s30, %s2747_s22 }
  0x1a   : > { %p2756_p12 = scmp.lt.s32.totalorder %s2747_s22, %s2747_s22 }
  0x1b   : > { %p3146_p6 = pnand %p2525_p5, %p3802_p1 }
  0x1c   : > { %p2757_p13 = por %p2756_p12, %p2755_p11 }
  0x1d   : > { %p3156_p7 = pneg %p3146_p6 }
  0x1f   : > { %p2750_p9 = pnand %p2748_p8, %p3156_p7 }
  0x21   : > { %p2751_p10 = pneg %p2750_p9 }
  0x23   : > { %p2758_p0 = pnand %p2757_p13, %p2751_p10 }
  0x25   : > { %2761 = shalt.err (!%p2758_p0)
}
  0x26   : > { %s3799_s23 = smov 128   ;;  %s3800_s24 = smov 8  }
  0x27   : > { %s3817_s1 = sld [smem:[#allocation26_spill]]  ;;  %s2773_s19 = scalar_lea.vmem %s3150_s17, 2048 }
  0x28   : > { %p2774_p2 = scmp.ne.s32.totalorder %s3150_s17, %s2773_s19  ;;  %p2781_p9 = scmp.lt.s32.totalorder %s3150_s17, %s3150_s17 }
  0x29   : > { %p2782_p10 = scmp.lt.s32.totalorder %s2773_s19, %s2773_s19 }
  0x2a   : > { %p2776_p5 = pnand %p2774_p2, %p3156_p7 }
  0x2b   : > { %p2783_p11 = por %p2782_p10, %p2781_p9 }
  0x2c   : > { %p2777_p8 = pneg %p2776_p5 }
  0x2d   : > { %2528 = dma.hbm_to_vmem [thread:$0]  (!%p3146_p6), %s3817_s1, 2048, %s368_s30, [#allocation6], %s3799_s23, %s3799_s23, %s3800_s24  }
  0x2e   : > { %p2784_p12 = pnand %p2783_p11, %p2777_p8 }
  0x30   : > { %2787 = shalt.err (!%p2784_p12)
}
  0x31   : > { %s3818_s5 = sld [smem:[#allocation28_spill]]  ;;  %s2799_s30 = scalar_lea.vmem %s3152_s20, 2048 }
  0x32   : > { %p2800_p13 = scmp.ne.s32.totalorder %s3152_s20, %s2799_s30  ;;  %p2807_p5 = scmp.lt.s32.totalorder %s3152_s20, %s3152_s20 }
  0x33   : > { %p2808_p8 = scmp.lt.s32.totalorder %s2799_s30, %s2799_s30 }
  0x34   : > { %p2802_p0 = pnand %p2800_p13, %p3156_p7 }
  0x35   : > { %p2809_p9 = por %p2808_p8, %p2807_p5 }
  0x36   : > { %p2803_p2 = pneg %p2802_p0 }
  0x37   : > { %2534 = dma.hbm_to_vmem [thread:$0]  (!%p3146_p6), %s3818_s5, 2048, %s3150_s17, [#allocation9], %s3799_s23, %s3799_s23, %s3800_s24  }
  0x38   : > { %p2810_p10 = pnand %p2809_p9, %p2803_p2 }
  0x3a   : > { %2813 = shalt.err (!%p2810_p10)
}
  0x3b   : > { %s3819_s3 = sld [smem:[#allocation27_spill]]  ;;  %s3033_s17 = smov [#allocation10]  }
  0x3c   : > { %s415_s22 = sshll.u32 %s3033_s17, 4  ;;  %s3034_s29 = smov [#allocation11]   ;;  %s416_s22 = int_to_ptr.vmem [resolvable:$true] %s415_s22 }
  0x3d   : > { %s431_s1 = sshll.u32 %s3034_s29, 4  ;;  %s2825_s30 = scalar_lea.vmem %s416_s22, 2048  ;;  %s432_s1 = int_to_ptr.vmem [resolvable:$true] %s431_s1 }
  0x3e   : > { %p2826_p11 = scmp.ne.s32.totalorder %s416_s22, %s2825_s30  ;;  %p2833_p0 = scmp.lt.s32.totalorder %s416_s22, %s416_s22 }
  0x3f   : > { %p2834_p2 = scmp.lt.s32.totalorder %s2825_s30, %s2825_s30 }
  0x40   : > { %p2828_p12 = pnand %p2826_p11, %p3156_p7 }
  0x41   : > { %2531 = dma.hbm_to_vmem [thread:$0]  (!%p3146_p6), %s3819_s3, 2048, %s3152_s20, [#allocation6], %s3799_s23, %s3799_s23, %s3800_s24  }
  0x42   : > { %p2829_p13 = pneg %p2828_p12  ;;  %p2835_p5 = por %p2834_p2, %p2833_p0 }
  0x44   : > { %p2836_p8 = pnand %p2835_p5, %p2829_p13 }
  0x46   : > { %2839 = shalt.err (!%p2836_p8)
}
  0x47   : > { %s3820_s7 = sld [smem:[#allocation29_spill]]  ;;  %s2851_s19 = scalar_lea.vmem %s432_s1, 2048 }
  0x48   : > { %p2852_p9 = scmp.ne.s32.totalorder %s432_s1, %s2851_s19  ;;  %p2859_p12 = scmp.lt.s32.totalorder %s432_s1, %s432_s1 }
  0x49   : > { %p2860_p0 = scmp.lt.s32.totalorder %s2851_s19, %s2851_s19 }
  0x4a   : > { %p2854_p10 = pnand %p2852_p9, %p3156_p7 }
  0x4b   : > { %p2861_p13 = por %p2860_p0, %p2859_p12 }
  0x4c   : > { %p2855_p11 = pneg %p2854_p10 }
  0x4d   : > { %2537 = dma.hbm_to_vmem [thread:$0]  (!%p3146_p6), %s3820_s7, 2048, %s416_s22, [#allocation9], %s3799_s23, %s3799_s23, %s3800_s24  }
  0x4e   : > { %p2862_p2 = pnand %p2861_p13, %p2855_p11 }
  0x50   : > { %2865 = shalt.err (!%p2862_p2)
}
  0x51   : > { %s3821_s9 = sld [smem:[#allocation30_spill]]  ;;  %s3801_s18 = sadd.s32 4294967294, %s3026_s28  }
  0x52   : > { %s3222_s21 = sadd.s32 1, %s3026_s28   ;;  %s43_s22 = sadd.s32 1, %s3022_s27 }
  0x53   : > { %s40_s30 = ssub.s32 %s3026_s28, %s3222_s21  ;;  %p50_p7 = scmp.ne.s32.totalorder %s3022_s27, %s3018_s26 }
  0x54   : > { %p41_p5 = scmp.eq.s32.totalorder %s40_s30, 0  ;;  %p51_p8 = scmp.eq.s32.totalorder %s3026_s28, 0 }
  0x55   : > { %p56_p9 = scmp.ne.s32.totalorder %s3018_s26, %s3014_s25  ;;  %p290_p10 = scmp.eq.s32.totalorder %s3132_s14, 1 }
  0x56   : > { %s3234_s20 = scalar_select %p41_p5, %s3022_s27, %s43_s22  }
  0x57   : > { %2540 = dma.hbm_to_vmem [thread:$0]  (!%p3146_p6), %s3821_s9, 2048, %s432_s1, [#allocation12], %s3799_s23, %s3799_s23, %s3800_s24  }
  0x58   : > { %3822 = sst [smem:[#allocation24_spill]] %s3234_s20  ;;  %p52_p11 = por %p51_p8, %p50_p7 }
  0x59   : > { %p3238_p12 = por %p3802_p1, %p56_p9  ;;  %p3242_p6 = por %p290_p10, %p50_p7 }
  0x5a   : > { %p296_p0 = scmp.eq.s32.totalorder %s3801_s18, 1  ;;  %p2560_p13 = scmp.lt.s32.totalorder %s3026_s28, 2 }
  0x5b   : > { %s3823_s16 = scalar_select %p3238_p12, 1, 0 }
  0x5c   : > { %s3824_s1 = scalar_select %p3242_p6, 1, 0 }
  0x5d   : > { %s448_s19 = sand.u32 1, %s3022_s27   ;;  %p3250_p2 = por %p296_p0, %p56_p9 }
  0x5e   : > { %s1960_s29 = sshll.u32 %s448_s19, 7  ;;  %s2021_s22 = sshll.u32 %s3026_s28, 11 }
  0x5f   : > { %s3825_s17 = scalar_select %p3250_p2, 1, 0 }
  0x60   : > { %s3826_s0 = sld [smem:[#allocation25_spill]]  ;;  %s452_s3 = scalar_lea.vmem [#allocation2], %s1960_s29 }
  0x61   : > { %s459_s5 = sshll.u32 %s452_s3, 4  ;;  %p3260_p7 = pnand %p2560_p13, %p52_p11  ;;  %s3264_s5 = int_to_ptr.vmem [resolvable:$true] %s459_s5 }
  0x62   : > { %s3266_s7 = scalar_lea.sflag [#allocation3], %s448_s19 }
  0x63   : > { %p2868_p8 = pneg %p3260_p7 }
  0x66   : > { %s3258_s24 = scalar_lea.hbm %s3826_s0, %s2021_s22  ;;  %s2871_s29 = scalar_lea.hbm %s3826_s0, 4096 }
  0x67   : > { %s2866_s9 = scalar_lea.hbm %s3258_s24, 2048  ;;  %p2872_p11 = scmp.lt.s32.totalorder %s3258_s24, %s3826_s0 }
  0x68   : > { %p2867_p5 = scmp.ne.s32.totalorder %s3258_s24, %s2866_s9  ;;  %p2873_p0 = scmp.lt.s32.totalorder %s2871_s29, %s2866_s9 }
  0x6a   : > { %p2869_p9 = pnand %p2868_p8, %p2867_p5  ;;  %p2874_p13 = por %p2873_p0, %p2872_p11 }
  0x6c   : > { %p2870_p10 = pneg %p2869_p9 }
  0x6e   : > { %p2875_p4 = pnand %p2874_p13, %p2870_p10 }
  0x70   : > { %2878 = shalt.err (!%p2875_p4)
}
  0x71   : > { %s2879_s19 = scalar_lea.vmem %s3264_s5, 2048  ;;  %s3035_s20 = smov [#allocation2]  }
  0x72   : > { %p2880_p1 = scmp.ne.s32.totalorder %s3264_s5, %s2879_s19  ;;  %s2884_s27 = sshll.u32 %s3035_s20, 4  ;;  %s2885_s27 = int_to_ptr.vmem [resolvable:$false] %s2884_s27 }
  0x73   : > { %s2886_s23 = scalar_lea.vmem %s2885_s27, 4096  ;;  %p2887_p9 = scmp.lt.s32.totalorder %s3264_s5, %s2885_s27 }
  0x74   : > { %p2882_p2 = pnand %p2880_p1, %p2868_p8  ;;  %p2888_p6 = scmp.lt.s32.totalorder %s2886_s23, %s2879_s19 }
  0x76   : > { %p2883_p5 = pneg %p2882_p2  ;;  %p2889_p12 = por %p2888_p6, %p2887_p9 }
  0x78   : > { %p2890_p3 = pnand %p2889_p12, %p2883_p5 }
  0x7a   : > { %2893 = shalt.err (!%p2890_p3)
}
  0x7b   : > { %s3828_s9 = smov 8   ;;  %s3829_s22 = smov 128  }
  0x7c   : > { %2544 = dma.hbm_to_vmem [thread:$0]  (!%p3260_p7), %s3258_s24, 2048, %s3264_s5, %s3266_s7, %s3829_s22, %s3829_s22, %s3828_s9  }
  0x7d   : > { %p3830_p1 = scmp.ne.s32.totalorder %s3814_s15, 0 }
  0x7e   : > { %s3293_s20 = sand.u32 (!%p3830_p1), 1, %s3018_s26   ;;  %p3831_p3 = scmp.ne.s32.totalorder (!%p3830_p1), %s3823_s16, 0 }
  0x7f   : > { %471 = sbr.rel (%p3830_p1) target bundleno = 1279 (0x4ff), region = 64  ;;  %s3296_s27 = sshll.u32 (!%p3830_p1), %s3293_s20, 7 }
  0x80   : > { %s474_s18 = scalar_lea.sflag (!%p3830_p1), [#allocation3], %s3293_s20  ;;  %s3300_s29 = scalar_lea.vmem (!%p3830_p1), [#allocation2], %s3296_s27 }
  0x84   : > { %2989 = dma.done.wait (%p3831_p3), %s474_s18, 2048  }
  0x85   : > { %2991 = vsyncadd (%p3831_p3), %s474_s18, 4294965248  ;;  %p3832_p4 = scmp.eq.s32.totalorder %s3132_s14, 0 }
  0x87   : > { %2993 = dma.done.wait (%p3832_p4), [#allocation6], 4096   ;;  %p3833_p12 = pmov %p3832_p4 }
  0x88   : > { %p3834_p6 = pmov %p3832_p4 }
  0x89   : > { %2995 = vsyncadd (%p3833_p12), [#allocation6], 4294963200 }
  0x8a   : > { %2997 = dma.done.wait (%p3834_p6), [#allocation9], 4096   ;;  %p3835_p2 = pmov %p3832_p4 }
  0x8c   : > { %2999 = vsyncadd (%p3835_p2), [#allocation9], 4294963200  ;;  %p3836_p7 = pmov %p3835_p2 }
  0x8d   : > { %p3837_p8 = pmov %p3835_p2 }
  0x8e   : > { %3001 = dma.done.wait (%p3836_p7), [#allocation12], 2048  }
  0x8f   : > { %3003 = vsyncadd (%p3837_p8), [#allocation12], 4294965248  ;;  %v585_v0 = vld [vmem:[#allocation5 + $0x78] sm:$0xff]  ;;  %v584_v1 = vld [vmem:[#allocation5 + $0x70] sm:$0xff]  ;;  %s3439_s16 = scalar_lea.vmem [#allocation14], %s3296_s27  ;;  %s3594_s9 = scalar_lea.vmem [#allocation16], %s3296_s27 }
  0x90   : > { %2185 = vmatprep.subr.mxu0 %v585_v0  ;;  %v583_v2 = vld [vmem:[#allocation5 + $0x68] sm:$0xff]  ;;  %v582_v3 = vld [vmem:[#allocation5 + $0x60] sm:$0xff]  ;;  %v581_v5 = vld [vmem:[#allocation5 + $0x58] sm:$0xff]  ;;  %s1719_s22 = sand.u32 1, %s3132_s14   ;;  %s3646_s18 = sshll.u32 %s3132_s14, 11 }
  0x91   : > { %2186 = vmatpush3.msra.mxu0 %v585_v0  ;;  %v554_v4 = vld [vmem:[%s3300_s29] sm:$0xff]  ;;  %v580_v6 = vld [vmem:[#allocation5 + $0x50] sm:$0xff]  ;;  %v579_v7 = vld [vmem:[#allocation5 + $0x48] sm:$0xff]  ;;  %s3652_s7 = scalar_lea.hbm %s3797_s12, %s3646_s18  ;;  %s1754_s15 = sshll.u32 %s3439_s16, 4  ;;  %s3655_s15 = int_to_ptr.vmem [resolvable:$true] %s1754_s15 }
  0x92   : > { %2187 = vmatprep.subr.mxu0 %v584_v1  ;;  %2217 = vmatprep.mubr.f32.mxu0 %v554_v4  ;;  %v769_v8 = vld [vmem:[#allocation7 + $0x78] sm:$0xff]  ;;  %v768_v9 = vld [vmem:[#allocation7 + $0x70] sm:$0xff]  ;;  %v578_v10 = vld [vmem:[#allocation5 + $0x40] sm:$0xff]  ;;  %s3657_s24 = scalar_lea.sflag [#allocation15], %s1719_s22  ;;  %s2894_s3 = scalar_lea.vmem %s3655_s15, 2048 }
  0x93   : > { %2188 = vmatpush3.msra.mxu0 %v584_v1  ;;  %2241 = vmatprep.subr.mxu1 %v769_v8  ;;  %v767_v11 = vld [vmem:[#allocation7 + $0x68] sm:$0xff]  ;;  %v577_v12 = vld [vmem:[#allocation5 + $0x38] sm:$0xff]  ;;  %v766_v13 = vld [vmem:[#allocation7 + $0x60] sm:$0xff]  ;;  %p2895_p10 = scmp.ne.s32.totalorder %s3655_s15, %s2894_s3  ;;  %p3838_p11 = scmp.ne.s32.totalorder %s3824_s1, 0 }
  0x94   : > { %2189 = vmatprep.subr.mxu0 %v583_v2  ;;  %2242 = vmatpush3.msra.mxu1 %v769_v8  ;;  %v576_v14 = vld [vmem:[#allocation5 + $0x30] sm:$0xff]  ;;  %v765_v15 = vld [vmem:[#allocation7 + $0x58] sm:$0xff]  ;;  %v575_v16 = vld [vmem:[#allocation5 + $0x28] sm:$0xff]  ;;  %s3036_s14 = smov [#allocation14]  }
  0x95   : > { %2190 = vmatpush3.msra.mxu0 %v583_v2  ;;  %2243 = vmatprep.subr.mxu1 %v768_v9  ;;  %v764_v17 = vld [vmem:[#allocation7 + $0x50] sm:$0xff]  ;;  %v574_v18 = vld [vmem:[#allocation5 + $0x20] sm:$0xff]  ;;  %v763_v19 = vld [vmem:[#allocation7 + $0x48] sm:$0xff]  ;;  %p2896_p0 = pnand %p2895_p10, %p3838_p11  ;;  %s2898_s30 = sshll.u32 %s3036_s14, 4  ;;  %s2899_s30 = int_to_ptr.vmem [resolvable:$false] %s2898_s30 }
  0x96   : > { %2191 = vmatprep.subr.mxu0 %v582_v3  ;;  %2244 = vmatpush3.msra.mxu1 %v768_v9  ;;  %v573_v20 = vld [vmem:[#allocation5 + $0x18] sm:$0xff]  ;;  %v762_v21 = vld [vmem:[#allocation7 + $0x40] sm:$0xff]  ;;  %v572_v22 = vld [vmem:[#allocation5 + $0x10] sm:$0xff]  ;;  %s2900_s19 = scalar_lea.vmem %s2899_s30, 4096  ;;  %p2901_p5 = scmp.lt.s32.totalorder %s3655_s15, %s2899_s30 }
  0x97   : > { %2192 = vmatpush3.msra.mxu0 %v582_v3  ;;  %2245 = vmatprep.subr.mxu1 %v767_v11  ;;  %v761_v23 = vld [vmem:[#allocation7 + $0x38] sm:$0xff]  ;;  %v571_v24 = vld [vmem:[#allocation5 + $0x8] sm:$0xff]  ;;  %v760_v25 = vld [vmem:[#allocation7 + $0x30] sm:$0xff]  ;;  %p2897_p13 = pneg %p2896_p0  ;;  %p2902_p9 = scmp.lt.s32.totalorder %s2900_s19, %s2894_s3 }
  0x98   : > { %2193 = vmatprep.subr.mxu0 %v581_v5  ;;  %2246 = vmatpush3.msra.mxu1 %v767_v11  ;;  %v570_v26 = vld [vmem:[#allocation5] sm:$0xff]  ;;  %v759_v27 = vld [vmem:[#allocation7 + $0x28] sm:$0xff]  ;;  %v556_v30 = vld [vmem:[%s3300_s29 + $0x10] sm:$0xff] }
  0x99   : > { %2194 = vmatpush3.msra.mxu0 %v581_v5  ;;  %2247 = vmatprep.subr.mxu1 %v766_v13  ;;  %v555_v28 = vld [vmem:[%s3300_s29 + $0x8] sm:$0xff]  ;;  %v758_v29 = vld [vmem:[#allocation7 + $0x20] sm:$0xff]  ;;  %v557_v31 = vld [vmem:[%s3300_s29 + $0x18] sm:$0xff]  ;;  %p2903_p1 = por %p2902_p9, %p2901_p5 }
  0x9a   : > { %2195 = vmatprep.subr.mxu0 %v580_v6  ;;  %2248 = vmatpush3.msra.mxu1 %v766_v13  ;;  %v558_v32 = vld [vmem:[%s3300_s29 + $0x20] sm:$0xff]  ;;  %v559_v33 = vld [vmem:[%s3300_s29 + $0x28] sm:$0xff]  ;;  %v560_v34 = vld [vmem:[%s3300_s29 + $0x30] sm:$0xff] }
  0x9b   : > { %2196 = vmatpush3.msra.mxu0 %v580_v6  ;;  %2249 = vmatprep.subr.mxu1 %v765_v15  ;;  %v561_v35 = vld [vmem:[%s3300_s29 + $0x38] sm:$0xff]  ;;  %v562_v36 = vld [vmem:[%s3300_s29 + $0x40] sm:$0xff]  ;;  %v563_v37 = vld [vmem:[%s3300_s29 + $0x48] sm:$0xff]  ;;  %p2904_p3 = pnand %p2903_p1, %p2897_p13 }
  0x9c   : > { %2197 = vmatprep.subr.mxu0 %v579_v7  ;;  %2250 = vmatpush3.msra.mxu1 %v765_v15  ;;  %v564_v38 = vld [vmem:[%s3300_s29 + $0x50] sm:$0xff]  ;;  %v565_v39 = vld [vmem:[%s3300_s29 + $0x58] sm:$0xff]  ;;  %v566_v40 = vld [vmem:[%s3300_s29 + $0x60] sm:$0xff] }
  0x9d   : > { %2198 = vmatpush3.msra.mxu0 %v579_v7  ;;  %2251 = vmatprep.subr.mxu1 %v764_v17  ;;  %v567_v41 = vld [vmem:[%s3300_s29 + $0x68] sm:$0xff]  ;;  %v568_v42 = vld [vmem:[%s3300_s29 + $0x70] sm:$0xff]  ;;  %v569_v43 = vld [vmem:[%s3300_s29 + $0x78] sm:$0xff] }
  0x9e   : > { %2199 = vmatprep.subr.mxu0 %v578_v10  ;;  %2252 = vmatpush3.msra.mxu1 %v764_v17  ;;  %v757_v44 = vld [vmem:[#allocation7 + $0x18] sm:$0xff]  ;;  %v756_v45 = vld [vmem:[#allocation7 + $0x10] sm:$0xff]  ;;  %v755_v46 = vld [vmem:[#allocation7 + $0x8] sm:$0xff] }
  0x9f   : > { %2200 = vmatpush3.msra.mxu0 %v578_v10  ;;  %2253 = vmatprep.subr.mxu1 %v763_v19  ;;  %v754_v47 = vld [vmem:[#allocation7] sm:$0xff] }
  0xa0   : > { %2201 = vmatprep.subr.mxu0 %v577_v12  ;;  %2254 = vmatpush3.msra.mxu1 %v763_v19  ;;  %v1973_v48 = vld [vmem:[%s3787_s2] ss:$0 sm:$0xff] }
  0xa1   : > { %2202 = vmatpush3.msra.mxu0 %v577_v12  ;;  %2255 = vmatprep.subr.mxu1 %v762_v21 }
  0xa2   : > { %2203 = vmatprep.subr.mxu0 %v576_v14  ;;  %2256 = vmatpush3.msra.mxu1 %v762_v21 }
  0xa3   : > { %2204 = vmatpush3.msra.mxu0 %v576_v14  ;;  %2257 = vmatprep.subr.mxu1 %v761_v23 }
  0xa4   : > { %2205 = vmatprep.subr.mxu0 %v575_v16  ;;  %2258 = vmatpush3.msra.mxu1 %v761_v23 }
  0xa5   : > { %2206 = vmatpush3.msra.mxu0 %v575_v16  ;;  %2259 = vmatprep.subr.mxu1 %v760_v25 }
  0xa6   : > { %2207 = vmatprep.subr.mxu0 %v574_v18  ;;  %2260 = vmatpush3.msra.mxu1 %v760_v25 }
  0xa7   : > { %2208 = vmatpush3.msra.mxu0 %v574_v18  ;;  %2261 = vmatprep.subr.mxu1 %v759_v27 }
  0xa8   : > { %2209 = vmatprep.subr.mxu0 %v573_v20  ;;  %2262 = vmatpush3.msra.mxu1 %v759_v27 }
  0xa9   : > { %2210 = vmatpush3.msra.mxu0 %v573_v20  ;;  %2263 = vmatprep.subr.mxu1 %v758_v29 }
  0xaa   : > { %2211 = vmatprep.subr.mxu0 %v572_v22  ;;  %2264 = vmatpush3.msra.mxu1 %v758_v29 }
  0xab   : > { %2212 = vmatpush3.msra.mxu0 %v572_v22  ;;  %2265 = vmatprep.subr.mxu1 %v757_v44 }
  0xac   : > { %2213 = vmatprep.subr.mxu0 %v571_v24  ;;  %2266 = vmatpush3.msra.mxu1 %v757_v44  ;;  %v1054_v44 = vld [vmem:[#allocation8 + $0x20] sm:$0xff] }
  0xad   : > { %2214 = vmatpush3.msra.mxu0 %v571_v24  ;;  %2267 = vmatprep.subr.mxu1 %v756_v45 }
  0xae   : > { %2215 = vmatprep.subr.mxu0 %v570_v26  ;;  %2268 = vmatpush3.msra.mxu1 %v756_v45  ;;  %v1053_v45 = vld [vmem:[#allocation8 + $0x18] sm:$0xff] }
  0xaf   : > { %2216 = vmatpush3.msra.mxu0 %v570_v26  ;;  %2269 = vmatprep.subr.mxu1 %v755_v46 }
  0xb0   : > { %2218 = vmatmul.mubr.f32.vlgmr.msra.gmra.mxu0 %v555_v28  ;;  %2270 = vmatpush3.msra.mxu1 %v755_v46  ;;  %v1052_v46 = vld [vmem:[#allocation8 + $0x10] sm:$0xff] }
  0xb1   : > { %2220 = vmatprep.mubr.f32.mxu0 %v556_v30  ;;  %2271 = vmatprep.subr.mxu1 %v754_v47 }
  0xb2   : > { %2272 = vmatpush3.msra.mxu1 %v754_v47  ;;  %v1051_v47 = vld [vmem:[#allocation8 + $0x8] sm:$0xff] }
  0xb4   : > { %2221 = vmatmul.mubr.f32.gmra.mxu0 %v557_v31 }
  0xb5   : > { %2223 = vmatprep.mubr.f32.mxu0 %v558_v32 }
  0xb8   : > { %2224 = vmatmul.mubr.f32.gmra.mxu0 %v559_v33  ;;  %v1065_v33 = vld [vmem:[#allocation8 + $0x78] sm:$0xff] }
  0xb9   : > { %2226 = vmatprep.mubr.f32.mxu0 %v560_v34  ;;  %2297 = vmatprep.subr.mxu0 %v1065_v33  ;;  %v1064_v34 = vld [vmem:[#allocation8 + $0x70] sm:$0xff] }
  0xba   : > { %2298 = vmatpush3.msra.mxu0 %v1065_v33 }
  0xbb   : > { %2299 = vmatprep.subr.mxu0 %v1064_v34 }
  0xbc   : > { %2227 = vmatmul.mubr.f32.gmra.mxu0 %v561_v35  ;;  %v1063_v35 = vld [vmem:[#allocation8 + $0x68] sm:$0xff] }
  0xbd   : > { %2229 = vmatprep.mubr.f32.mxu0 %v562_v36  ;;  %2300 = vmatpush3.msra.mxu0 %v1064_v34  ;;  %v1062_v36 = vld [vmem:[#allocation8 + $0x60] sm:$0xff] }
  0xbe   : > { %2301 = vmatprep.subr.mxu0 %v1063_v35 }
  0xbf   : > { %2302 = vmatpush3.msra.mxu0 %v1063_v35 }
  0xc0   : > { %2230 = vmatmul.mubr.f32.gmra.mxu0 %v563_v37  ;;  %2303 = vmatprep.subr.mxu0 %v1062_v36  ;;  %v1061_v37 = vld [vmem:[#allocation8 + $0x58] sm:$0xff] }
  0xc1   : > { %2232 = vmatprep.mubr.f32.mxu0 %v564_v38  ;;  %2304 = vmatpush3.msra.mxu0 %v1062_v36  ;;  %v1060_v38 = vld [vmem:[#allocation8 + $0x50] sm:$0xff] }
  0xc2   : > { %2305 = vmatprep.subr.mxu0 %v1061_v37 }
  0xc3   : > { %2306 = vmatpush3.msra.mxu0 %v1061_v37 }
  0xc4   : > { %2233 = vmatmul.mubr.f32.gmra.mxu0 %v565_v39  ;;  %2307 = vmatprep.subr.mxu0 %v1060_v38  ;;  %v1059_v39 = vld [vmem:[#allocation8 + $0x48] sm:$0xff] }
  0xc5   : > { %2235 = vmatprep.mubr.f32.mxu0 %v566_v40  ;;  %2308 = vmatpush3.msra.mxu0 %v1060_v38  ;;  %v1058_v40 = vld [vmem:[#allocation8 + $0x40] sm:$0xff] }
  0xc6   : > { %2309 = vmatprep.subr.mxu0 %v1059_v39 }
  0xc7   : > { %2310 = vmatpush3.msra.mxu0 %v1059_v39 }
  0xc8   : > { %2236 = vmatmul.mubr.f32.gmra.mxu0 %v567_v41  ;;  %2311 = vmatprep.subr.mxu0 %v1058_v40  ;;  %v1057_v41 = vld [vmem:[#allocation8 + $0x38] sm:$0xff] }
  0xc9   : > { %2238 = vmatprep.mubr.f32.mxu0 %v568_v42  ;;  %2312 = vmatpush3.msra.mxu0 %v1058_v40  ;;  %v1056_v42 = vld [vmem:[#allocation8 + $0x30] sm:$0xff] }
  0xca   : > { %2313 = vmatprep.subr.mxu0 %v1057_v41 }
  0xcb   : > { %2314 = vmatpush3.msra.mxu0 %v1057_v41 }
  0xcc   : > { %2239 = vmatmul.mubr.f32.gmra.mxu0 %v569_v43  ;;  %2315 = vmatprep.subr.mxu0 %v1056_v42  ;;  %v1055_v43 = vld [vmem:[#allocation8 + $0x28] sm:$0xff] }
  0xcd   : > { %2316 = vmatpush3.msra.mxu0 %v1056_v42 }
  0xce   : > { %2317 = vmatprep.subr.mxu0 %v1055_v43 }
  0xcf   : > { %2318 = vmatpush3.msra.mxu0 %v1055_v43 }
  0xd0   : > { %2319 = vmatprep.subr.mxu0 %v1054_v44 }
  0xd1   : > { %2320 = vmatpush3.msra.mxu0 %v1054_v44 }
  0xd2   : > { %2321 = vmatprep.subr.mxu0 %v1053_v45 }
  0xd3   : > { %2322 = vmatpush3.msra.mxu0 %v1053_v45 }
  0xd4   : > { %2323 = vmatprep.subr.mxu0 %v1052_v46 }
  0xd5   : > { %2324 = vmatpush3.msra.mxu0 %v1052_v46 }
  0xd6   : > { %2325 = vmatprep.subr.mxu0 %v1051_v47 }
  0xd7   : > { %2326 = vmatpush3.msra.mxu0 %v1051_v47 }
 0x170   : > { %v2219_v49 = vpop.f32.mrf.mxu0 }
 0x171   : > { %v3337_v50 = vadd.f32 %v2219_v49, %v1973_v48  ;;  %v1249_v49 = vld [vmem:[#allocation10 + $0x78] sm:$0xff] }
 0x172   : > { %v659_v51 = vpop.f32.mrf.mxu0  ;;  %2353 = vmatprep.subr.mxu1 %v1249_v49 }
 0x173   : > { %v3339_v52 = vadd.f32 %v1973_v48, %v659_v51  ;;  %v739_v55 = vmax.f32 %v3337_v50, 0.0  ;;  %v1248_v51 = vld [vmem:[#allocation10 + $0x70] sm:$0xff] }
 0x174   : > { %v2222_v53 = vpop.f32.mrf.mxu0 }
 0x175   : > { %v738_v54 = vmax.f32 %v3339_v52, 0.0  ;;  %v3343_v56 = vadd.f32 %v2222_v53, %v1973_v48  ;;  %v1247_v53 = vld [vmem:[#allocation10 + $0x68] sm:$0xff] }
 0x176   : > { %v669_v57 = vpop.f32.mrf.mxu0 }
 0x177   : > { %v3345_v58 = vadd.f32 %v1973_v48, %v669_v57  ;;  %2273 = vmatprep.mubr.f32.mxu1 %v738_v54  ;;  %v741_v61 = vmax.f32 %v3343_v56, 0.0  ;;  %v1246_v57 = vld [vmem:[#allocation10 + $0x60] sm:$0xff] }
 0x178   : > { %v2225_v59 = vpop.f32.mrf.mxu0  ;;  %2274 = vmatmul.mubr.f32.vlgmr.msra.gmra.mxu1 %v739_v55 }
 0x179   : > { %v740_v60 = vmax.f32 %v3345_v58, 0.0  ;;  %v3353_v62 = vadd.f32 %v2225_v59, %v1973_v48  ;;  %2354 = vmatpush3.msra.mxu1 %v1249_v49  ;;  %v1245_v59 = vld [vmem:[#allocation10 + $0x58] sm:$0xff] }
 0x17a   : > { %v679_v63 = vpop.f32.mrf.mxu0  ;;  %2355 = vmatprep.subr.mxu1 %v1248_v51 }
 0x17b   : > { %v3355_v0 = vadd.f32 %v1973_v48, %v679_v63  ;;  %2276 = vmatprep.mubr.f32.mxu1 %v740_v60  ;;  %v743_v3 = vmax.f32 %v3353_v62, 0.0  ;;  %2356 = vmatpush3.msra.mxu1 %v1248_v51  ;;  %v1244_v63 = vld [vmem:[#allocation10 + $0x50] sm:$0xff] }
 0x17c   : > { %v2228_v1 = vpop.f32.mrf.mxu0  ;;  %2277 = vmatmul.mubr.f32.gmra.mxu1 %v741_v61  ;;  %2357 = vmatprep.subr.mxu1 %v1247_v53 }
 0x17d   : > { %v742_v2 = vmax.f32 %v3355_v0, 0.0  ;;  %v3363_v4 = vadd.f32 %v2228_v1, %v1973_v48  ;;  %2358 = vmatpush3.msra.mxu1 %v1247_v53  ;;  %v1243_v1 = vld [vmem:[#allocation10 + $0x48] sm:$0xff] }
 0x17e   : > { %v689_v5 = vpop.f32.mrf.mxu0  ;;  %2359 = vmatprep.subr.mxu1 %v1246_v57 }
 0x17f   : > { %v3365_v6 = vadd.f32 %v1973_v48, %v689_v5  ;;  %2279 = vmatprep.mubr.f32.mxu1 %v742_v2  ;;  %v745_v9 = vmax.f32 %v3363_v4, 0.0  ;;  %2360 = vmatpush3.msra.mxu1 %v1246_v57  ;;  %v1242_v5 = vld [vmem:[#allocation10 + $0x40] sm:$0xff] }
 0x180   : > { %v2231_v7 = vpop.f32.mrf.mxu0  ;;  %2280 = vmatmul.mubr.f32.gmra.mxu1 %v743_v3  ;;  %2361 = vmatprep.subr.mxu1 %v1245_v59 }
 0x181   : > { %v744_v8 = vmax.f32 %v3365_v6, 0.0  ;;  %v3373_v10 = vadd.f32 %v2231_v7, %v1973_v48  ;;  %2362 = vmatpush3.msra.mxu1 %v1245_v59  ;;  %v1241_v7 = vld [vmem:[#allocation10 + $0x38] sm:$0xff] }
 0x182   : > { %v699_v11 = vpop.f32.mrf.mxu0  ;;  %2363 = vmatprep.subr.mxu1 %v1244_v63 }
 0x183   : > { %v3375_v12 = vadd.f32 %v1973_v48, %v699_v11  ;;  %2282 = vmatprep.mubr.f32.mxu1 %v744_v8  ;;  %v747_v15 = vmax.f32 %v3373_v10, 0.0  ;;  %2364 = vmatpush3.msra.mxu1 %v1244_v63  ;;  %v1240_v11 = vld [vmem:[#allocation10 + $0x30] sm:$0xff] }
 0x184   : > { %v2234_v13 = vpop.f32.mrf.mxu0  ;;  %2283 = vmatmul.mubr.f32.gmra.mxu1 %v745_v9  ;;  %2365 = vmatprep.subr.mxu1 %v1243_v1 }
 0x185   : > { %v746_v14 = vmax.f32 %v3375_v12, 0.0  ;;  %v3383_v16 = vadd.f32 %v2234_v13, %v1973_v48  ;;  %2366 = vmatpush3.msra.mxu1 %v1243_v1  ;;  %v1239_v13 = vld [vmem:[#allocation10 + $0x28] sm:$0xff] }
 0x186   : > { %v709_v17 = vpop.f32.mrf.mxu0  ;;  %2367 = vmatprep.subr.mxu1 %v1242_v5 }
 0x187   : > { %v3385_v18 = vadd.f32 %v1973_v48, %v709_v17  ;;  %2285 = vmatprep.mubr.f32.mxu1 %v746_v14  ;;  %v749_v21 = vmax.f32 %v3383_v16, 0.0  ;;  %2368 = vmatpush3.msra.mxu1 %v1242_v5  ;;  %v1238_v17 = vld [vmem:[#allocation10 + $0x20] sm:$0xff] }
 0x188   : > { %v2237_v19 = vpop.f32.mrf.mxu0  ;;  %2286 = vmatmul.mubr.f32.gmra.mxu1 %v747_v15  ;;  %2369 = vmatprep.subr.mxu1 %v1241_v7 }
 0x189   : > { %v748_v20 = vmax.f32 %v3385_v18, 0.0  ;;  %v3393_v22 = vadd.f32 %v2237_v19, %v1973_v48  ;;  %2370 = vmatpush3.msra.mxu1 %v1241_v7  ;;  %v1237_v19 = vld [vmem:[#allocation10 + $0x18] sm:$0xff] }
 0x18a   : > { %v719_v23 = vpop.f32.mrf.mxu0  ;;  %2371 = vmatprep.subr.mxu1 %v1240_v11 }
 0x18b   : > { %v3395_v24 = vadd.f32 %v1973_v48, %v719_v23  ;;  %2288 = vmatprep.mubr.f32.mxu1 %v748_v20  ;;  %v751_v27 = vmax.f32 %v3393_v22, 0.0  ;;  %2372 = vmatpush3.msra.mxu1 %v1240_v11  ;;  %v3420_v23 = vld [vmem:[%s3789_s4] ss:$0 sm:$0xff] }
 0x18c   : > { %v2240_v25 = vpop.f32.mrf.mxu0  ;;  %2289 = vmatmul.mubr.f32.gmra.mxu1 %v749_v21  ;;  %2373 = vmatprep.subr.mxu1 %v1239_v13  ;;  %v1234_v22 = vld [vmem:[#allocation10] sm:$0xff] }
 0x18d   : > { %v750_v26 = vmax.f32 %v3395_v24, 0.0  ;;  %v3403_v28 = vadd.f32 %v2240_v25, %v1973_v48  ;;  %2374 = vmatpush3.msra.mxu1 %v1239_v13  ;;  %v1235_v24 = vld [vmem:[#allocation10 + $0x8] sm:$0xff] }
 0x18e   : > { %v729_v29 = vpop.f32.mrf.mxu0  ;;  %2375 = vmatprep.subr.mxu1 %v1238_v17 }
 0x18f   : > { %v3405_v30 = vadd.f32 %v1973_v48, %v729_v29  ;;  %2291 = vmatprep.mubr.f32.mxu1 %v750_v26  ;;  %v753_v32 = vmax.f32 %v3403_v28, 0.0  ;;  %v1050_v48 = vld [vmem:[#allocation8] sm:$0xff]  ;;  %2376 = vmatpush3.msra.mxu1 %v1238_v17 }
 0x190   : > { %2292 = vmatmul.mubr.f32.gmra.mxu1 %v751_v27  ;;  %2327 = vmatprep.subr.mxu0 %v1050_v48 }
 0x191   : > { %v752_v31 = vmax.f32 %v3405_v30, 0.0  ;;  %2328 = vmatpush3.msra.mxu0 %v1050_v48  ;;  %2377 = vmatprep.subr.mxu1 %v1237_v19 }
 0x192   : > { %2378 = vmatpush3.msra.mxu1 %v1237_v19 }
 0x193   : > { %2294 = vmatprep.mubr.f32.mxu1 %v752_v31 }
 0x194   : > { %2295 = vmatmul.mubr.f32.gmra.mxu1 %v753_v32 }
 0x238   : > { %v2275_v25 = vpop.f32.mrf.mxu1 }
 0x239   : > { %v849_v29 = vadd.f32 %v2275_v25, %v3420_v23 }
 0x23a   : > { %v843_v33 = vpop.f32.mrf.mxu1 }
 0x23b   : > { %v1976_v34 = vmul.f32 -1.442695, %v849_v29  ;;  %v844_v35 = vadd.f32 %v3420_v23, %v843_v33 }
 0x23c   : > { %v2278_v36 = vpop.f32.mrf.mxu1 }
 0x23d   : > { %2608 = vpow2.f32 %v1976_v34  ;;  %v1975_v37 = vmul.f32 -1.442695, %v844_v35  ;;  %v859_v38 = vadd.f32 %v2278_v36, %v3420_v23 }
 0x23e   : > { %v853_v39 = vpop.f32.mrf.mxu1 }
 0x23f   : > { %2610 = vpow2.f32 %v1975_v37  ;;  %v1978_v40 = vmul.f32 -1.442695, %v859_v38  ;;  %v854_v41 = vadd.f32 %v3420_v23, %v853_v39 }
 0x240   : > { %v2281_v42 = vpop.f32.mrf.mxu1 }
 0x241   : > { %2612 = vpow2.f32 %v1978_v40  ;;  %v1977_v43 = vmul.f32 -1.442695, %v854_v41  ;;  %v869_v44 = vadd.f32 %v2281_v42, %v3420_v23 }
 0x242   : > { %v863_v45 = vpop.f32.mrf.mxu1 }
 0x243   : > { %2614 = vpow2.f32 %v1977_v43  ;;  %v1980_v46 = vmul.f32 -1.442695, %v869_v44  ;;  %v864_v47 = vadd.f32 %v3420_v23, %v863_v45 }
 0x244   : > { %v2284_v48 = vpop.f32.mrf.mxu1 }
 0x245   : > { %2616 = vpow2.f32 %v1980_v46  ;;  %v1979_v49 = vmul.f32 -1.442695, %v864_v47  ;;  %v879_v51 = vadd.f32 %v2284_v48, %v3420_v23 }
 0x246   : > { %v873_v53 = vpop.f32.mrf.mxu1 }
 0x247   : > { %2618 = vpow2.f32 %v1979_v49  ;;  %v1982_v57 = vmul.f32 -1.442695, %v879_v51  ;;  %v874_v59 = vadd.f32 %v3420_v23, %v873_v53 }
 0x248   : > { %v2287_v63 = vpop.f32.mrf.mxu1 }
 0x249   : > { %2620 = vpow2.f32 %v1982_v57  ;;  %v1981_v1 = vmul.f32 -1.442695, %v874_v59  ;;  %v889_v5 = vadd.f32 %v2287_v63, %v3420_v23 }
 0x24a   : > { %v2609_v7 = vpop.eup %2608  ;;  %v883_v11 = vpop.f32.mrf.mxu1 }
 0x24b   : > { %v971_v13 = vadd.f32 1.0, %v2609_v7  ;;  %2622 = vpow2.f32 %v1981_v1  ;;  %v1984_v17 = vmul.f32 -1.442695, %v889_v5  ;;  %v884_v19 = vadd.f32 %v3420_v23, %v883_v11 }
 0x24c   : > { %v2611_v25 = vpop.eup %2610  ;;  %v2290_v29 = vpop.f32.mrf.mxu1 }
 0x24d   : > { %2624 = vrcp.f32 %v971_v13  ;;  %v970_v33 = vadd.f32 1.0, %v2611_v25  ;;  %v1983_v34 = vmul.f32 -1.442695, %v884_v19  ;;  %v899_v35 = vadd.f32 %v2290_v29, %v3420_v23 }
 0x24e   : > { %v2613_v36 = vpop.eup %2612  ;;  %2626 = vpow2.f32 %v1984_v17  ;;  %v893_v37 = vpop.f32.mrf.mxu1 }
 0x24f   : > { %2628 = vrcp.f32 %v970_v33  ;;  %v973_v38 = vadd.f32 1.0, %v2613_v36  ;;  %v1986_v39 = vmul.f32 -1.442695, %v899_v35  ;;  %v894_v40 = vadd.f32 %v3420_v23, %v893_v37 }
 0x250   : > { %v2615_v41 = vpop.eup %2614  ;;  %2630 = vpow2.f32 %v1983_v34  ;;  %v2293_v42 = vpop.f32.mrf.mxu1 }
 0x251   : > { %2632 = vrcp.f32 %v973_v38  ;;  %v972_v43 = vadd.f32 1.0, %v2615_v41  ;;  %v1985_v44 = vmul.f32 -1.442695, %v894_v40  ;;  %v909_v45 = vadd.f32 %v2293_v42, %v3420_v23 }
 0x252   : > { %v2617_v46 = vpop.eup %2616  ;;  %2634 = vpow2.f32 %v1986_v39  ;;  %v903_v47 = vpop.f32.mrf.mxu1 }
 0x253   : > { %2636 = vrcp.f32 %v972_v43  ;;  %v975_v48 = vadd.f32 1.0, %v2617_v46  ;;  %v1988_v49 = vmul.f32 -1.442695, %v909_v45  ;;  %v904_v51 = vadd.f32 %v3420_v23, %v903_v47 }
 0x254   : > { %v2619_v53 = vpop.eup %2618  ;;  %2638 = vpow2.f32 %v1985_v44  ;;  %v2296_v57 = vpop.f32.mrf.mxu1 }
 0x255   : > { %2640 = vrcp.f32 %v975_v48  ;;  %v974_v59 = vadd.f32 1.0, %v2619_v53  ;;  %v1987_v63 = vmul.f32 -1.442695, %v904_v51  ;;  %v919_v1 = vadd.f32 %v2296_v57, %v3420_v23 }
 0x256   : > { %v2621_v5 = vpop.eup %2620  ;;  %2642 = vpow2.f32 %v1988_v49  ;;  %v913_v7 = vpop.f32.mrf.mxu1 }
 0x257   : > { %2644 = vrcp.f32 %v974_v59  ;;  %v977_v11 = vadd.f32 1.0, %v2621_v5  ;;  %v1990_v13 = vmul.f32 -1.442695, %v919_v1  ;;  %v914_v17 = vadd.f32 %v3420_v23, %v913_v7 }
 0x258   : > { %v2623_v19 = vpop.eup %2622  ;;  %2646 = vpow2.f32 %v1987_v63 }
 0x259   : > { %2648 = vrcp.f32 %v977_v11  ;;  %v976_v25 = vadd.f32 1.0, %v2623_v19  ;;  %v1989_v29 = vmul.f32 -1.442695, %v914_v17 }
 0x25a   : > { %v2625_v33 = vpop.eup %2624  ;;  %2650 = vpow2.f32 %v1990_v13 }
 0x25b   : > { %v2627_v34 = vpop.eup %2626  ;;  %1019 = vst [vmem:[%s3439_s16 + $0x8] sm:$0xff] %v2625_v33  ;;  %2652 = vrcp.f32 %v976_v25  ;;  %v1035_v40 = vmul.f32 %v2625_v33, %v739_v55 }
 0x25c   : > { %v2629_v35 = vpop.eup %2628  ;;  %v979_v36 = vadd.f32 1.0, %v2627_v34  ;;  %2654 = vpow2.f32 %v1989_v29 }
 0x25d   : > { %v2631_v23 = vpop.eup %2630  ;;  %1018 = vst [vmem:[%s3439_s16] sm:$0xff] %v2629_v35  ;;  %v1034_v37 = vmul.f32 %v2629_v35, %v738_v54 }
 0x25e   : > { %v2633_v38 = vpop.eup %2632  ;;  %2656 = vrcp.f32 %v979_v36  ;;  %v978_v39 = vadd.f32 1.0, %v2631_v23 }
 0x25f   : > { %v2635_v41 = vpop.eup %2634  ;;  %1021 = vst [vmem:[%s3439_s16 + $0x18] sm:$0xff] %v2633_v38  ;;  %2329 = vmatprep.mubr.f32.mxu0 %v1034_v37  ;;  %v1037_v50 = vmul.f32 %v2633_v38, %v741_v61 }
 0x260   : > { %v2637_v42 = vpop.eup %2636  ;;  %2658 = vrcp.f32 %v978_v39  ;;  %v981_v43 = vadd.f32 1.0, %v2635_v41  ;;  %2330 = vmatmul.mubr.f32.vlgmr.msra.gmra.mxu0 %v1035_v40 }
 0x261   : > { %v2639_v44 = vpop.eup %2638  ;;  %1020 = vst [vmem:[%s3439_s16 + $0x10] sm:$0xff] %v2637_v42  ;;  %v1036_v52 = vmul.f32 %v2637_v42, %v740_v60 }
 0x262   : > { %v2641_v54 = vpop.eup %2640  ;;  %2660 = vrcp.f32 %v981_v43  ;;  %v980_v45 = vadd.f32 1.0, %v2639_v44 }
 0x263   : > { %v2643_v55 = vpop.eup %2642  ;;  %1023 = vst [vmem:[%s3439_s16 + $0x28] sm:$0xff] %v2641_v54  ;;  %2332 = vmatprep.mubr.f32.mxu0 %v1036_v52  ;;  %v1039_v56 = vmul.f32 %v2641_v54, %v743_v3 }
 0x264   : > { %v2645_v46 = vpop.eup %2644  ;;  %2662 = vrcp.f32 %v980_v45  ;;  %v983_v47 = vadd.f32 1.0, %v2643_v55  ;;  %2333 = vmatmul.mubr.f32.gmra.mxu0 %v1037_v50 }
 0x265   : > { %v2647_v48 = vpop.eup %2646  ;;  %1022 = vst [vmem:[%s3439_s16 + $0x20] sm:$0xff] %v2645_v46  ;;  %v1038_v58 = vmul.f32 %v2645_v46, %v742_v2 }
 0x266   : > { %v2649_v60 = vpop.eup %2648  ;;  %2664 = vrcp.f32 %v983_v47  ;;  %v982_v49 = vadd.f32 1.0, %v2647_v48 }
 0x267   : > { %v2651_v61 = vpop.eup %2650  ;;  %1025 = vst [vmem:[%s3439_s16 + $0x38] sm:$0xff] %v2649_v60  ;;  %2335 = vmatprep.mubr.f32.mxu0 %v1038_v58  ;;  %v1041_v62 = vmul.f32 %v2649_v60, %v745_v9 }
 0x268   : > { %v2653_v51 = vpop.eup %2652  ;;  %2666 = vrcp.f32 %v982_v49  ;;  %v985_v53 = vadd.f32 1.0, %v2651_v61  ;;  %2336 = vmatmul.mubr.f32.gmra.mxu0 %v1039_v56 }
 0x269   : > { %v2655_v57 = vpop.eup %2654  ;;  %1024 = vst [vmem:[%s3439_s16 + $0x30] sm:$0xff] %v2653_v51  ;;  %v1040_v0 = vmul.f32 %v2653_v51, %v744_v8 }
 0x26a   : > { %2668 = vrcp.f32 %v985_v53  ;;  %v984_v2 = vadd.f32 1.0, %v2655_v57 }
 0x26b   : > { %v2657_v3 = vpop.eup %2656  ;;  %2338 = vmatprep.mubr.f32.mxu0 %v1040_v0 }
 0x26c   : > { %1027 = vst [vmem:[%s3439_s16 + $0x48] sm:$0xff] %v2657_v3  ;;  %2670 = vrcp.f32 %v984_v2  ;;  %2339 = vmatmul.mubr.f32.gmra.mxu0 %v1041_v62  ;;  %v1043_v8 = vmul.f32 %v2657_v3, %v747_v15 }
 0x26d   : > { %v2659_v59 = vpop.eup %2658 }
 0x26e   : > { %1026 = vst [vmem:[%s3439_s16 + $0x40] sm:$0xff] %v2659_v59  ;;  %v1042_v63 = vmul.f32 %v2659_v59, %v746_v14 }
 0x26f   : > { %v2661_v6 = vpop.eup %2660 }
 0x270   : > { %1029 = vst [vmem:[%s3439_s16 + $0x58] sm:$0xff] %v2661_v6  ;;  %2341 = vmatprep.mubr.f32.mxu0 %v1042_v63  ;;  %v1045_v12 = vmul.f32 %v2661_v6, %v749_v21  ;;  %v1236_v21 = vld [vmem:[#allocation10 + $0x10] sm:$0xff] }
 0x271   : > { %v2663_v4 = vpop.eup %2662  ;;  %2342 = vmatmul.mubr.f32.gmra.mxu0 %v1043_v8  ;;  %2379 = vmatprep.subr.mxu1 %v1236_v21  ;;  %v1545_v8 = vld [vmem:[#allocation11 + $0x78] sm:$0xff] }
 0x272   : > { %1028 = vst [vmem:[%s3439_s16 + $0x50] sm:$0xff] %v2663_v4  ;;  %v1044_v9 = vmul.f32 %v2663_v4, %v748_v20  ;;  %2380 = vmatpush3.msra.mxu1 %v1236_v21  ;;  %2409 = vmatprep.subr.mxu0 %v1545_v8  ;;  %v1544_v4 = vld [vmem:[#allocation11 + $0x70] sm:$0xff]  ;;  %v1533_v21 = vld [vmem:[#allocation11 + $0x18] sm:$0xff] }
 0x273   : > { %v2665_v1 = vpop.eup %2664  ;;  %2381 = vmatprep.subr.mxu1 %v1235_v24  ;;  %2410 = vmatpush3.msra.mxu0 %v1545_v8 }
 0x274   : > { %1031 = vst [vmem:[%s3439_s16 + $0x68] sm:$0xff] %v2665_v1  ;;  %2344 = vmatprep.mubr.f32.mxu0 %v1044_v9  ;;  %v1047_v5 = vmul.f32 %v2665_v1, %v751_v27  ;;  %2382 = vmatpush3.msra.mxu1 %v1235_v24  ;;  %v1543_v9 = vld [vmem:[#allocation11 + $0x68] sm:$0xff]  ;;  %v1542_v1 = vld [vmem:[#allocation11 + $0x60] sm:$0xff]  ;;  %v1532_v24 = vld [vmem:[#allocation11 + $0x10] sm:$0xff] }
 0x275   : > { %v2667_v14 = vpop.eup %2666  ;;  %2345 = vmatmul.mubr.f32.gmra.mxu0 %v1045_v12  ;;  %2383 = vmatprep.subr.mxu1 %v1234_v22  ;;  %v1541_v12 = vld [vmem:[#allocation11 + $0x58] sm:$0xff] }
 0x276   : > { %1030 = vst [vmem:[%s3439_s16 + $0x60] sm:$0xff] %v2667_v14  ;;  %v1046_v10 = vmul.f32 %v2667_v14, %v750_v26  ;;  %2384 = vmatpush3.msra.mxu1 %v1234_v22  ;;  %v1991_v26 = vld [vmem:[%s3791_s6] ss:$0 sm:$0xff]  ;;  %2411 = vmatprep.subr.mxu0 %v1544_v4  ;;  %v1540_v14 = vld [vmem:[#allocation11 + $0x50] sm:$0xff]  ;;  %v1531_v22 = vld [vmem:[#allocation11 + $0x8] sm:$0xff] }
 0x277   : > { %v2669_v15 = vpop.eup %2668  ;;  %2465 = vmatprep.subr.mxu1 %v1545_v8  ;;  %2412 = vmatpush3.msra.mxu0 %v1544_v4 }
 0x278   : > { %1033 = vst [vmem:[%s3439_s16 + $0x78] sm:$0xff] %v2669_v15  ;;  %2347 = vmatprep.mubr.f32.mxu0 %v1046_v10  ;;  %v1049_v20 = vmul.f32 %v2669_v15, %v753_v32  ;;  %2413 = vmatprep.subr.mxu0 %v1543_v9  ;;  %v1539_v10 = vld [vmem:[#allocation11 + $0x48] sm:$0xff]  ;;  %v1538_v15 = vld [vmem:[#allocation11 + $0x40] sm:$0xff] }
 0x279   : > { %v2671_v18 = vpop.eup %2670  ;;  %2348 = vmatmul.mubr.f32.gmra.mxu0 %v1047_v5  ;;  %v1537_v5 = vld [vmem:[#allocation11 + $0x38] sm:$0xff] }
 0x27a   : > { %1032 = vst [vmem:[%s3439_s16 + $0x70] sm:$0xff] %v2671_v18  ;;  %v1048_v16 = vmul.f32 %v2671_v18, %v752_v31  ;;  %2414 = vmatpush3.msra.mxu0 %v1543_v9  ;;  %v1536_v18 = vld [vmem:[#allocation11 + $0x30] sm:$0xff] }
 0x27b   : > { %2415 = vmatprep.subr.mxu0 %v1542_v1 }
 0x27c   : > { %2350 = vmatprep.mubr.f32.mxu0 %v1048_v16  ;;  %2416 = vmatpush3.msra.mxu0 %v1542_v1  ;;  %v1535_v16 = vld [vmem:[#allocation11 + $0x28] sm:$0xff] }
 0x27d   : > { %2351 = vmatmul.mubr.f32.gmra.mxu0 %v1049_v20  ;;  %2417 = vmatprep.subr.mxu0 %v1541_v12  ;;  %v1534_v20 = vld [vmem:[#allocation11 + $0x20] sm:$0xff] }
 0x27e   : > { %2418 = vmatpush3.msra.mxu0 %v1541_v12 }
 0x27f   : > { %2419 = vmatprep.subr.mxu0 %v1540_v14 }
 0x280   : > { %2420 = vmatpush3.msra.mxu0 %v1540_v14 }
 0x281   : > { %2421 = vmatprep.subr.mxu0 %v1539_v10 }
 0x282   : > { %2422 = vmatpush3.msra.mxu0 %v1539_v10 }
 0x283   : > { %2423 = vmatprep.subr.mxu0 %v1538_v15 }
 0x284   : > { %2424 = vmatpush3.msra.mxu0 %v1538_v15 }
 0x285   : > { %2425 = vmatprep.subr.mxu0 %v1537_v5 }
 0x286   : > { %2426 = vmatpush3.msra.mxu0 %v1537_v5 }
 0x287   : > { %2427 = vmatprep.subr.mxu0 %v1536_v18 }
 0x288   : > { %2428 = vmatpush3.msra.mxu0 %v1536_v18 }
 0x289   : > { %2429 = vmatprep.subr.mxu0 %v1535_v16 }
 0x28a   : > { %2430 = vmatpush3.msra.mxu0 %v1535_v16 }
 0x28b   : > { %2431 = vmatprep.subr.mxu0 %v1534_v20 }
 0x28c   : > { %2432 = vmatpush3.msra.mxu0 %v1534_v20 }
 0x28d   : > { %2433 = vmatprep.subr.mxu0 %v1533_v21 }
 0x28e   : > { %2434 = vmatpush3.msra.mxu0 %v1533_v21 }
 0x28f   : > { %2435 = vmatprep.subr.mxu0 %v1532_v24 }
 0x290   : > { %2436 = vmatpush3.msra.mxu0 %v1532_v24 }
 0x291   : > { %2437 = vmatprep.subr.mxu0 %v1531_v22 }
 0x292   : > { %2438 = vmatpush3.msra.mxu0 %v1531_v22 }
 0x320   : > { %v2331_v27 = vpop.f32.mrf.mxu0 }
 0x321   : > { %v3492_v30 = vadd.f32 %v2331_v27, %v1991_v26  ;;  %v3575_v27 = vld [vmem:[%s3793_s8] ss:$0 sm:$0xff] }
 0x322   : > { %v1139_v28 = vpop.f32.mrf.mxu0 }
 0x323   : > { %v3494_v31 = vadd.f32 %v1991_v26, %v1139_v28  ;;  %v1219_v11 = vmax.f32 %v3492_v30, 0.0 }
 0x324   : > { %v2334_v32 = vpop.f32.mrf.mxu0 }
 0x325   : > { %v1218_v7 = vmax.f32 %v3494_v31, 0.0  ;;  %v3498_v13 = vadd.f32 %v2334_v32, %v1991_v26 }
 0x326   : > { %v1149_v17 = vpop.f32.mrf.mxu0 }
 0x327   : > { %v3500_v19 = vadd.f32 %v1991_v26, %v1149_v17  ;;  %2385 = vmatprep.mubr.f32.mxu1 %v1218_v7  ;;  %v1221_v33 = vmax.f32 %v3498_v13, 0.0 }
 0x328   : > { %v2337_v25 = vpop.f32.mrf.mxu0  ;;  %2386 = vmatmul.mubr.f32.vlgmr.msra.gmra.mxu1 %v1219_v11 }
 0x329   : > { %v1220_v29 = vmax.f32 %v3500_v19, 0.0  ;;  %v3508_v34 = vadd.f32 %v2337_v25, %v1991_v26  ;;  %2481 = vmatpush3.msra.mxu1 %v1545_v8 }
 0x32a   : > { %v1159_v35 = vpop.f32.mrf.mxu0  ;;  %2466 = vmatprep.subr.mxu1 %v1544_v4 }
 0x32b   : > { %v3510_v36 = vadd.f32 %v1991_v26, %v1159_v35  ;;  %2388 = vmatprep.mubr.f32.mxu1 %v1220_v29  ;;  %v1223_v38 = vmax.f32 %v3508_v34, 0.0  ;;  %2482 = vmatpush3.msra.mxu1 %v1544_v4 }
 0x32c   : > { %v2340_v23 = vpop.f32.mrf.mxu0  ;;  %2389 = vmatmul.mubr.f32.gmra.mxu1 %v1221_v33  ;;  %2467 = vmatprep.subr.mxu1 %v1543_v9 }
 0x32d   : > { %v1222_v37 = vmax.f32 %v3510_v36, 0.0  ;;  %v3518_v39 = vadd.f32 %v2340_v23, %v1991_v26  ;;  %2483 = vmatpush3.msra.mxu1 %v1543_v9 }
 0x32e   : > { %v1169_v40 = vpop.f32.mrf.mxu0  ;;  %2468 = vmatprep.subr.mxu1 %v1542_v1 }
 0x32f   : > { %v3520_v41 = vadd.f32 %v1991_v26, %v1169_v40  ;;  %2391 = vmatprep.mubr.f32.mxu1 %v1222_v37  ;;  %v1225_v44 = vmax.f32 %v3518_v39, 0.0  ;;  %2484 = vmatpush3.msra.mxu1 %v1542_v1 }
 0x330   : > { %2392 = vmatmul.mubr.f32.gmra.mxu1 %v1223_v38  ;;  %2469 = vmatprep.subr.mxu1 %v1541_v12 }
 0x331   : > { %v1224_v42 = vmax.f32 %v3520_v41, 0.0  ;;  %v2343_v43 = vpop.f32.mrf.mxu0  ;;  %2485 = vmatpush3.msra.mxu1 %v1541_v12 }
 0x332   : > { %v3528_v52 = vadd.f32 %v2343_v43, %v1991_v26  ;;  %2470 = vmatprep.subr.mxu1 %v1540_v14 }
 0x333   : > { %v1179_v54 = vpop.f32.mrf.mxu0  ;;  %2394 = vmatprep.mubr.f32.mxu1 %v1224_v42  ;;  %2486 = vmatpush3.msra.mxu1 %v1540_v14 }
 0x334   : > { %v3532_v45 = vadd.f32 %v1991_v26, %v1179_v54  ;;  %2395 = vmatmul.mubr.f32.gmra.mxu1 %v1225_v44  ;;  %v1227_v46 = vmax.f32 %v3528_v52, 0.0  ;;  %2471 = vmatprep.subr.mxu1 %v1539_v10 }
 0x335   : > { %v2346_v50 = vpop.f32.mrf.mxu0  ;;  %2487 = vmatpush3.msra.mxu1 %v1539_v10 }
 0x336   : > { %v1226_v55 = vmax.f32 %v3532_v45, 0.0  ;;  %v3538_v47 = vadd.f32 %v2346_v50, %v1991_v26  ;;  %2472 = vmatprep.subr.mxu1 %v1538_v15 }
 0x337   : > { %v1189_v48 = vpop.f32.mrf.mxu0  ;;  %2488 = vmatpush3.msra.mxu1 %v1538_v15 }
 0x338   : > { %v3540_v58 = vadd.f32 %v1991_v26, %v1189_v48  ;;  %2397 = vmatprep.mubr.f32.mxu1 %v1226_v55  ;;  %v1229_v56 = vmax.f32 %v3538_v47, 0.0  ;;  %2473 = vmatprep.subr.mxu1 %v1537_v5 }
 0x339   : > { %v2349_v60 = vpop.f32.mrf.mxu0  ;;  %2398 = vmatmul.mubr.f32.gmra.mxu1 %v1227_v46 }
 0x33a   : > { %v1228_v49 = vmax.f32 %v3540_v58, 0.0  ;;  %v3548_v61 = vadd.f32 %v2349_v60, %v1991_v26  ;;  %2489 = vmatpush3.msra.mxu1 %v1537_v5 }
 0x33b   : > { %v1199_v51 = vpop.f32.mrf.mxu0  ;;  %2474 = vmatprep.subr.mxu1 %v1536_v18 }
 0x33c   : > { %v3550_v53 = vadd.f32 %v1991_v26, %v1199_v51  ;;  %2400 = vmatprep.mubr.f32.mxu1 %v1228_v49  ;;  %v1231_v2 = vmax.f32 %v3548_v61, 0.0  ;;  %2490 = vmatpush3.msra.mxu1 %v1536_v18 }
 0x33d   : > { %v2352_v57 = vpop.f32.mrf.mxu0  ;;  %2401 = vmatmul.mubr.f32.gmra.mxu1 %v1229_v56  ;;  %2475 = vmatprep.subr.mxu1 %v1535_v16 }
 0x33e   : > { %v1230_v0 = vmax.f32 %v3550_v53, 0.0  ;;  %v3558_v62 = vadd.f32 %v2352_v57, %v1991_v26  ;;  %2491 = vmatpush3.msra.mxu1 %v1535_v16 }
 0x33f   : > { %v1209_v3 = vpop.f32.mrf.mxu0  ;;  %2476 = vmatprep.subr.mxu1 %v1534_v20 }
 0x340   : > { %v3560_v59 = vadd.f32 %v1991_v26, %v1209_v3  ;;  %2403 = vmatprep.mubr.f32.mxu1 %v1230_v0  ;;  %v1233_v6 = vmax.f32 %v3558_v62, 0.0  ;;  %2492 = vmatpush3.msra.mxu1 %v1534_v20  ;;  %v1530_v26 = vld [vmem:[#allocation11] sm:$0xff] }
 0x341   : > { %2404 = vmatmul.mubr.f32.gmra.mxu1 %v1231_v2  ;;  %2477 = vmatprep.subr.mxu1 %v1533_v21 }
 0x342   : > { %v1232_v63 = vmax.f32 %v3560_v59, 0.0  ;;  %2493 = vmatpush3.msra.mxu1 %v1533_v21  ;;  %2439 = vmatprep.subr.mxu0 %v1530_v26 }
 0x343   : > { %2478 = vmatprep.subr.mxu1 %v1532_v24  ;;  %2440 = vmatpush3.msra.mxu0 %v1530_v26 }
 0x344   : > { %2406 = vmatprep.mubr.f32.mxu1 %v1232_v63  ;;  %2494 = vmatpush3.msra.mxu1 %v1532_v24 }
 0x345   : > { %2407 = vmatmul.mubr.f32.gmra.mxu1 %v1233_v6  ;;  %2479 = vmatprep.subr.mxu1 %v1531_v22 }
 0x346   : > { %2495 = vmatpush3.msra.mxu1 %v1531_v22 }
 0x347   : > { %2480 = vmatprep.subr.mxu1 %v1530_v26 }
 0x348   : > { %2496 = vmatpush3.msra.mxu1 %v1530_v26 }
 0x3e8   : > { %v2387_v28 = vpop.f32.mrf.mxu1 }
 0x3e9   : > { %v1329_v32 = vadd.f32 %v2387_v28, %v3575_v27 }
 0x3ea   : > { %v1323_v17 = vpop.f32.mrf.mxu1 }
 0x3eb   : > { %v1994_v25 = vmul.f32 -1.442695, %v1329_v32  ;;  %v1324_v35 = vadd.f32 %v3575_v27, %v1323_v17 }
 0x3ec   : > { %v2390_v23 = vpop.f32.mrf.mxu1 }
 0x3ed   : > { %2672 = vpow2.f32 %v1994_v25  ;;  %v1993_v40 = vmul.f32 -1.442695, %v1324_v35  ;;  %v1339_v43 = vadd.f32 %v2390_v23, %v3575_v27 }
 0x3ee   : > { %v1333_v54 = vpop.f32.mrf.mxu1 }
 0x3ef   : > { %2674 = vpow2.f32 %v1993_v40  ;;  %v1996_v50 = vmul.f32 -1.442695, %v1339_v43  ;;  %v1334_v48 = vadd.f32 %v3575_v27, %v1333_v54 }
 0x3f0   : > { %v2393_v60 = vpop.f32.mrf.mxu1 }
 0x3f1   : > { %2676 = vpow2.f32 %v1996_v50  ;;  %v1995_v51 = vmul.f32 -1.442695, %v1334_v48  ;;  %v1349_v57 = vadd.f32 %v2393_v60, %v3575_v27 }
 0x3f2   : > { %v1343_v3 = vpop.f32.mrf.mxu1 }
 0x3f3   : > { %2678 = vpow2.f32 %v1995_v51  ;;  %v1998_v8 = vmul.f32 -1.442695, %v1349_v57  ;;  %v1344_v4 = vadd.f32 %v3575_v27, %v1343_v3 }
 0x3f4   : > { %v2396_v9 = vpop.f32.mrf.mxu1 }
 0x3f5   : > { %2680 = vpow2.f32 %v1998_v8  ;;  %v1997_v1 = vmul.f32 -1.442695, %v1344_v4  ;;  %v1359_v12 = vadd.f32 %v2396_v9, %v3575_v27 }
 0x3f6   : > { %v1353_v14 = vpop.f32.mrf.mxu1 }
 0x3f7   : > { %2682 = vpow2.f32 %v1997_v1  ;;  %v2000_v10 = vmul.f32 -1.442695, %v1359_v12  ;;  %v1354_v15 = vadd.f32 %v3575_v27, %v1353_v14 }
 0x3f9   : > { %2684 = vpow2.f32 %v2000_v10  ;;  %v1999_v5 = vmul.f32 -1.442695, %v1354_v15  ;;  %v2399_v18 = vpop.f32.mrf.mxu1 }
 0x3fa   : > { %v2673_v16 = vpop.eup %2672  ;;  %v1369_v20 = vadd.f32 %v2399_v18, %v3575_v27 }
 0x3fb   : > { %v1451_v21 = vadd.f32 1.0, %v2673_v16  ;;  %2686 = vpow2.f32 %v1999_v5  ;;  %v1363_v24 = vpop.f32.mrf.mxu1 }
 0x3fc   : > { %v2675_v22 = vpop.eup %2674  ;;  %v2002_v26 = vmul.f32 -1.442695, %v1369_v20  ;;  %v1364_v28 = vadd.f32 %v3575_v27, %v1363_v24 }
 0x3fd   : > { %2688 = vrcp.f32 %v1451_v21  ;;  %v1450_v32 = vadd.f32 1.0, %v2675_v22  ;;  %v2402_v17 = vpop.f32.mrf.mxu1 }
 0x3fe   : > { %v2677_v25 = vpop.eup %2676  ;;  %2690 = vpow2.f32 %v2002_v26  ;;  %v2001_v35 = vmul.f32 -1.442695, %v1364_v28  ;;  %v1379_v23 = vadd.f32 %v2402_v17, %v3575_v27 }
 0x3ff   : > { %2692 = vrcp.f32 %v1450_v32  ;;  %v1453_v40 = vadd.f32 1.0, %v2677_v25  ;;  %v1373_v43 = vpop.f32.mrf.mxu1 }
 0x400   : > { %v2679_v54 = vpop.eup %2678  ;;  %2694 = vpow2.f32 %v2001_v35  ;;  %v2004_v50 = vmul.f32 -1.442695, %v1379_v23  ;;  %v1374_v48 = vadd.f32 %v3575_v27, %v1373_v43 }
 0x401   : > { %2696 = vrcp.f32 %v1453_v40  ;;  %v1452_v60 = vadd.f32 1.0, %v2679_v54  ;;  %v2405_v51 = vpop.f32.mrf.mxu1 }
 0x402   : > { %v2681_v57 = vpop.eup %2680  ;;  %2698 = vpow2.f32 %v2004_v50  ;;  %v2003_v3 = vmul.f32 -1.442695, %v1374_v48  ;;  %v1389_v8 = vadd.f32 %v2405_v51, %v3575_v27 }
 0x403   : > { %2700 = vrcp.f32 %v1452_v60  ;;  %v1455_v4 = vadd.f32 1.0, %v2681_v57  ;;  %v1383_v9 = vpop.f32.mrf.mxu1 }
 0x404   : > { %v2683_v1 = vpop.eup %2682  ;;  %2702 = vpow2.f32 %v2003_v3  ;;  %v2006_v12 = vmul.f32 -1.442695, %v1389_v8  ;;  %v1384_v14 = vadd.f32 %v3575_v27, %v1383_v9 }
 0x405   : > { %2704 = vrcp.f32 %v1455_v4  ;;  %v1454_v10 = vadd.f32 1.0, %v2683_v1  ;;  %v2408_v15 = vpop.f32.mrf.mxu1 }
 0x406   : > { %v2685_v5 = vpop.eup %2684  ;;  %2706 = vpow2.f32 %v2006_v12  ;;  %v2005_v18 = vmul.f32 -1.442695, %v1384_v14  ;;  %v1399_v16 = vadd.f32 %v2408_v15, %v3575_v27 }
 0x407   : > { %2708 = vrcp.f32 %v1454_v10  ;;  %v1457_v20 = vadd.f32 1.0, %v2685_v5  ;;  %v1393_v21 = vpop.f32.mrf.mxu1 }
 0x408   : > { %v2687_v24 = vpop.eup %2686  ;;  %2710 = vpow2.f32 %v2005_v18  ;;  %v2008_v22 = vmul.f32 -1.442695, %v1399_v16  ;;  %v1394_v26 = vadd.f32 %v3575_v27, %v1393_v21 }
 0x409   : > { %2712 = vrcp.f32 %v1457_v20  ;;  %v1456_v28 = vadd.f32 1.0, %v2687_v24 }
 0x40a   : > { %v2689_v32 = vpop.eup %2688  ;;  %2714 = vpow2.f32 %v2008_v22  ;;  %v2007_v17 = vmul.f32 -1.442695, %v1394_v26 }
 0x40b   : > { %v2691_v25 = vpop.eup %2690  ;;  %1499 = vst [vmem:[%s3594_s9 + $0x8] sm:$0xff] %v2689_v32  ;;  %2716 = vrcp.f32 %v1456_v28  ;;  %v1515_v50 = vmul.f32 %v2689_v32, %v1219_v11 }
 0x40c   : > { %v2693_v35 = vpop.eup %2692  ;;  %v1459_v23 = vadd.f32 1.0, %v2691_v25  ;;  %2718 = vpow2.f32 %v2007_v17 }
 0x40d   : > { %v2695_v40 = vpop.eup %2694  ;;  %1498 = vst [vmem:[%s3594_s9] sm:$0xff] %v2693_v35  ;;  %v1514_v27 = vmul.f32 %v2693_v35, %v1218_v7 }
 0x40e   : > { %v2697_v43 = vpop.eup %2696  ;;  %2720 = vrcp.f32 %v1459_v23  ;;  %v1458_v54 = vadd.f32 1.0, %v2695_v40 }
 0x40f   : > { %v2699_v48 = vpop.eup %2698  ;;  %1501 = vst [vmem:[%s3594_s9 + $0x18] sm:$0xff] %v2697_v43  ;;  %2441 = vmatprep.mubr.f32.mxu0 %v1514_v27  ;;  %v1517_v30 = vmul.f32 %v2697_v43, %v1221_v33 }
 0x410   : > { %v2701_v60 = vpop.eup %2700  ;;  %2722 = vrcp.f32 %v1458_v54  ;;  %v1461_v51 = vadd.f32 1.0, %v2699_v48  ;;  %2442 = vmatmul.mubr.f32.vlgmr.msra.gmra.mxu0 %v1515_v50 }
 0x411   : > { %v2703_v57 = vpop.eup %2702  ;;  %1500 = vst [vmem:[%s3594_s9 + $0x10] sm:$0xff] %v2701_v60  ;;  %v1516_v31 = vmul.f32 %v2701_v60, %v1220_v29 }
 0x412   : > { %v2705_v7 = vpop.eup %2704  ;;  %2724 = vrcp.f32 %v1461_v51  ;;  %v1460_v3 = vadd.f32 1.0, %v2703_v57 }
 0x413   : > { %v2707_v11 = vpop.eup %2706  ;;  %1503 = vst [vmem:[%s3594_s9 + $0x28] sm:$0xff] %v2705_v7  ;;  %2444 = vmatprep.mubr.f32.mxu0 %v1516_v31  ;;  %v1519_v13 = vmul.f32 %v2705_v7, %v1223_v38 }
 0x414   : > { %v2709_v8 = vpop.eup %2708  ;;  %2726 = vrcp.f32 %v1460_v3  ;;  %v1463_v4 = vadd.f32 1.0, %v2707_v11  ;;  %2445 = vmatmul.mubr.f32.gmra.mxu0 %v1517_v30 }
 0x415   : > { %v2711_v9 = vpop.eup %2710  ;;  %1502 = vst [vmem:[%s3594_s9 + $0x20] sm:$0xff] %v2709_v8  ;;  %v1518_v19 = vmul.f32 %v2709_v8, %v1222_v37 }
 0x416   : > { %v2713_v29 = vpop.eup %2712  ;;  %2728 = vrcp.f32 %v1463_v4  ;;  %v1462_v1 = vadd.f32 1.0, %v2711_v9 }
 0x417   : > { %v2715_v33 = vpop.eup %2714  ;;  %1505 = vst [vmem:[%s3594_s9 + $0x38] sm:$0xff] %v2713_v29  ;;  %2447 = vmatprep.mubr.f32.mxu0 %v1518_v19  ;;  %v1521_v34 = vmul.f32 %v2713_v29, %v1225_v44 }
 0x418   : > { %v2717_v12 = vpop.eup %2716  ;;  %2730 = vrcp.f32 %v1462_v1  ;;  %v1465_v14 = vadd.f32 1.0, %v2715_v33  ;;  %2448 = vmatmul.mubr.f32.gmra.mxu0 %v1519_v13 }
 0x419   : > { %v2719_v10 = vpop.eup %2718  ;;  %1504 = vst [vmem:[%s3594_s9 + $0x30] sm:$0xff] %v2717_v12  ;;  %v1520_v36 = vmul.f32 %v2717_v12, %v1224_v42 }
 0x41a   : > { %2732 = vrcp.f32 %v1465_v14  ;;  %v1464_v37 = vadd.f32 1.0, %v2719_v10 }
 0x41b   : > { %v2721_v38 = vpop.eup %2720  ;;  %2450 = vmatprep.mubr.f32.mxu0 %v1520_v36 }
 0x41c   : > { %1507 = vst [vmem:[%s3594_s9 + $0x48] sm:$0xff] %v2721_v38  ;;  %2734 = vrcp.f32 %v1464_v37  ;;  %2451 = vmatmul.mubr.f32.gmra.mxu0 %v1521_v34  ;;  %v1523_v42 = vmul.f32 %v2721_v38, %v1227_v46 }
 0x41d   : > { %v2723_v15 = vpop.eup %2722 }
 0x41e   : > { %1506 = vst [vmem:[%s3594_s9 + $0x40] sm:$0xff] %v2723_v15  ;;  %v1522_v5 = vmul.f32 %v2723_v15, %v1226_v55 }
 0x41f   : > { %v2725_v41 = vpop.eup %2724 }
 0x420   : > { %1509 = vst [vmem:[%s3594_s9 + $0x58] sm:$0xff] %v2725_v41  ;;  %2453 = vmatprep.mubr.f32.mxu1 %v1522_v5  ;;  %v1525_v45 = vmul.f32 %v2725_v41, %v1229_v56 }
 0x421   : > { %v2727_v39 = vpop.eup %2726  ;;  %2454 = vmatmul.mubr.f32.vlgmr.msra.gmra.mxu1 %v1523_v42 }
 0x422   : > { %1508 = vst [vmem:[%s3594_s9 + $0x50] sm:$0xff] %v2727_v39  ;;  %v1524_v44 = vmul.f32 %v2727_v39, %v1228_v49 }
 0x423   : > { %v2729_v18 = vpop.eup %2728 }
 0x424   : > { %1511 = vst [vmem:[%s3594_s9 + $0x68] sm:$0xff] %v2729_v18  ;;  %2456 = vmatprep.mubr.f32.mxu1 %v1524_v44  ;;  %v1527_v58 = vmul.f32 %v2729_v18, %v1231_v2 }
 0x425   : > { %v2731_v55 = vpop.eup %2730  ;;  %2457 = vmatmul.mubr.f32.gmra.mxu1 %v1525_v45 }
 0x426   : > { %1510 = vst [vmem:[%s3594_s9 + $0x60] sm:$0xff] %v2731_v55  ;;  %v1526_v52 = vmul.f32 %v2731_v55, %v1230_v0 }
 0x427   : > { %v2733_v46 = vpop.eup %2732 }
 0x428   : > { %1513 = vst [vmem:[%s3594_s9 + $0x78] sm:$0xff] %v2733_v46  ;;  %2459 = vmatprep.mubr.f32.mxu1 %v1526_v52  ;;  %v1529_v56 = vmul.f32 %v2733_v46, %v1233_v6 }
 0x429   : > { %v2735_v47 = vpop.eup %2734  ;;  %2460 = vmatmul.mubr.f32.gmra.mxu1 %v1527_v58 }
 0x42a   : > { %1512 = vst [vmem:[%s3594_s9 + $0x70] sm:$0xff] %v2735_v47  ;;  %v1528_v49 = vmul.f32 %v2735_v47, %v1232_v63 }
 0x42c   : > { %2462 = vmatprep.mubr.f32.mxu1 %v1528_v49 }
 0x42d   : > { %2463 = vmatmul.mubr.f32.gmra.mxu1 %v1529_v56 }
 0x42e   : > { %2907 = shalt.err (!%p2904_p3)
}
 0x42f   : > { %s2908_s16 = scalar_lea.hbm %s3652_s7, 2048  ;;  %s2912_s29 = scalar_lea.hbm %s3797_s12, 4096 }
 0x430   : > { %p2909_p4 = scmp.ne.s32.totalorder %s3652_s7, %s2908_s16  ;;  %p2913_p2 = scmp.lt.s32.totalorder %s3652_s7, %s3797_s12 }
 0x431   : > { %p2914_p7 = scmp.lt.s32.totalorder %s2912_s29, %s2908_s16 }
 0x432   : > { %p2910_p12 = pnand %p2909_p4, %p3838_p11 }
 0x433   : > { %p2915_p8 = por %p2914_p7, %p2913_p2 }
 0x434   : > { %p2911_p6 = pneg %p2910_p12 }
 0x436   : > { %p2916_p10 = pnand %p2915_p8, %p2911_p6 }
 0x438   : > { %2919 = shalt.err (!%p2916_p10)
}
 0x439   : > { %s3037_s3 = smov 128   ;;  %s3038_s30 = smov 8  }
 0x43a   : > { %2520 = dma.vmem_to_hbm [thread:$0]  (%p3838_p11), %s3655_s15, 2048, %s3652_s7, %s3657_s24, %s3037_s3, %s3037_s3, %s3038_s30  }
 0x43b   : > { %s3687_s16 = scalar_lea.hbm %s3798_s13, %s3646_s18  ;;  %s1770_s22 = sshll.u32 %s3594_s9, 4  ;;  %s1771_s22 = int_to_ptr.vmem [resolvable:$true] %s1770_s22 }
 0x43c   : > { %s2920_s29 = scalar_lea.vmem %s1771_s22, 2048  ;;  %s3039_s5 = smov [#allocation16]  }
 0x43d   : > { %p2921_p0 = scmp.ne.s32.totalorder %s1771_s22, %s2920_s29  ;;  %s2924_s14 = sshll.u32 %s3039_s5, 4  ;;  %s2925_s14 = int_to_ptr.vmem [resolvable:$false] %s2924_s14 }
 0x43e   : > { %s2926_s0 = scalar_lea.vmem %s2925_s14, 4096  ;;  %p2927_p9 = scmp.lt.s32.totalorder %s1771_s22, %s2925_s14 }
 0x43f   : > { %p2922_p13 = pnand %p2921_p0, %p3838_p11  ;;  %p2928_p1 = scmp.lt.s32.totalorder %s2926_s0, %s2920_s29 }
 0x441   : > { %p2923_p5 = pneg %p2922_p13  ;;  %p2929_p3 = por %p2928_p1, %p2927_p9 }
 0x443   : > { %p2930_p4 = pnand %p2929_p3, %p2923_p5 }
 0x445   : > { %2933 = shalt.err (!%p2930_p4)
}
 0x446   : > { %s2934_s9 = scalar_lea.hbm %s3687_s16, 2048  ;;  %s2938_s19 = scalar_lea.hbm %s3798_s13, 4096 }
 0x447   : > { %p2935_p12 = scmp.ne.s32.totalorder %s3687_s16, %s2934_s9  ;;  %p2939_p7 = scmp.lt.s32.totalorder %s3687_s16, %s3798_s13 }
 0x448   : > { %p2940_p8 = scmp.lt.s32.totalorder %s2938_s19, %s2934_s9 }
 0x449   : > { %p2936_p6 = pnand %p2935_p12, %p3838_p11 }
 0x44a   : > { %p2941_p10 = por %p2940_p8, %p2939_p7 }
 0x44b   : > { %p2937_p2 = pneg %p2936_p6 }
 0x44d   : > { %p2942_p0 = pnand %p2941_p10, %p2937_p2 }
 0x44f   : > { %2945 = shalt.err (!%p2942_p0)
}
 0x450   : > { %2521 = dma.vmem_to_hbm [thread:$0]  (%p3838_p11), %s1771_s22, 2048, %s3687_s16, %s3657_s24, %s3037_s3, %s3037_s3, %s3038_s30  }
 0x451   : > { %v2009_v61 = vld [vmem:[%s3795_s10] ss:$0 sm:$0xff]  ;;  %s3714_s14 = scalar_lea.vmem [#allocation13], %s3296_s27  ;;  %s3736_s22 = scalar_lea.hbm %s3796_s11, %s3646_s18 }
 0x452   : > { %s1738_s27 = sshll.u32 %s3714_s14, 4  ;;  %s1715_s9 = scalar_lea.sflag [#allocation4], %s3293_s20  ;;  %s3738_s27 = int_to_ptr.vmem [resolvable:$true] %s1738_s27 }
 0x453   : > { %s2946_s7 = scalar_lea.vmem %s3738_s27, 2048  ;;  %s3040_s15 = smov [#allocation13]  }
 0x454   : > { %p2947_p13 = scmp.ne.s32.totalorder %s3738_s27, %s2946_s7  ;;  %s2950_s19 = sshll.u32 %s3040_s15, 4  ;;  %s2951_s19 = int_to_ptr.vmem [resolvable:$false] %s2950_s19 }
 0x455   : > { %s2952_s23 = scalar_lea.vmem %s2951_s19, 4096  ;;  %p2953_p1 = scmp.lt.s32.totalorder %s3738_s27, %s2951_s19 }
 0x456   : > { %p2948_p5 = pnand %p2947_p13, %p3838_p11  ;;  %p2954_p3 = scmp.lt.s32.totalorder %s2952_s23, %s2946_s7 }
 0x458   : > { %p2949_p9 = pneg %p2948_p5  ;;  %p2955_p4 = por %p2954_p3, %p2953_p1 }
 0x45a   : > { %p2956_p12 = pnand %p2955_p4, %p2949_p9 }
 0x4d0   : > { %v2443_v53 = vpop.f32.mrf.mxu0 }
 0x4d1   : > { %v1625_v0 = vadd.f32 %v2443_v53, %v2009_v61 }
 0x4d2   : > { %v1619_v2 = vpop.f32.mrf.mxu0 }
 0x4d3   : > { %1699 = vst [vmem:[%s3714_s14 + $0x8] sm:$0xff] %v1625_v0  ;;  %v1620_v62 = vadd.f32 %v2009_v61, %v1619_v2 }
 0x4d4   : > { %v2446_v59 = vpop.f32.mrf.mxu0 }
 0x4d5   : > { %1698 = vst [vmem:[%s3714_s14] sm:$0xff] %v1620_v62  ;;  %v1635_v63 = vadd.f32 %v2446_v59, %v2009_v61 }
 0x4d6   : > { %v1629_v6 = vpop.f32.mrf.mxu0 }
 0x4d7   : > { %1701 = vst [vmem:[%s3714_s14 + $0x18] sm:$0xff] %v1635_v63  ;;  %v1630_v16 = vadd.f32 %v2009_v61, %v1629_v6 }
 0x4d8   : > { %v2449_v20 = vpop.f32.mrf.mxu0 }
 0x4d9   : > { %1700 = vst [vmem:[%s3714_s14 + $0x10] sm:$0xff] %v1630_v16  ;;  %v1645_v21 = vadd.f32 %v2449_v20, %v2009_v61 }
 0x4da   : > { %v1639_v24 = vpop.f32.mrf.mxu0 }
 0x4db   : > { %1703 = vst [vmem:[%s3714_s14 + $0x28] sm:$0xff] %v1645_v21  ;;  %v1640_v22 = vadd.f32 %v2009_v61, %v1639_v24 }
 0x4dc   : > { %v2452_v26 = vpop.f32.mrf.mxu0 }
 0x4dd   : > { %1702 = vst [vmem:[%s3714_s14 + $0x20] sm:$0xff] %v1640_v22  ;;  %v1655_v28 = vadd.f32 %v2452_v26, %v2009_v61 }
 0x4de   : > { %v1649_v32 = vpop.f32.mrf.mxu0 }
 0x4df   : > { %1705 = vst [vmem:[%s3714_s14 + $0x38] sm:$0xff] %v1655_v28  ;;  %v1650_v17 = vadd.f32 %v2009_v61, %v1649_v32 }
 0x4e1   : > { %1704 = vst [vmem:[%s3714_s14 + $0x30] sm:$0xff] %v1650_v17  ;;  %v2455_v25 = vpop.f32.mrf.mxu1 }
 0x4e2   : > { %v1665_v35 = vadd.f32 %v2455_v25, %v2009_v61 }
 0x4e3   : > { %v1659_v23 = vpop.f32.mrf.mxu1 }
 0x4e4   : > { %1707 = vst [vmem:[%s3714_s14 + $0x48] sm:$0xff] %v1665_v35  ;;  %v1660_v40 = vadd.f32 %v2009_v61, %v1659_v23 }
 0x4e5   : > { %v2458_v27 = vpop.f32.mrf.mxu1 }
 0x4e6   : > { %1706 = vst [vmem:[%s3714_s14 + $0x40] sm:$0xff] %v1660_v40  ;;  %v1675_v43 = vadd.f32 %v2458_v27, %v2009_v61 }
 0x4e7   : > { %v1669_v54 = vpop.f32.mrf.mxu1 }
 0x4e8   : > { %1709 = vst [vmem:[%s3714_s14 + $0x58] sm:$0xff] %v1675_v43  ;;  %v1670_v50 = vadd.f32 %v2009_v61, %v1669_v54 }
 0x4e9   : > { %v2461_v48 = vpop.f32.mrf.mxu1 }
 0x4ea   : > { %1708 = vst [vmem:[%s3714_s14 + $0x50] sm:$0xff] %v1670_v50  ;;  %v1685_v60 = vadd.f32 %v2461_v48, %v2009_v61 }
 0x4eb   : > { %v1679_v51 = vpop.f32.mrf.mxu1 }
 0x4ec   : > { %1711 = vst [vmem:[%s3714_s14 + $0x68] sm:$0xff] %v1685_v60  ;;  %v1680_v57 = vadd.f32 %v2009_v61, %v1679_v51 }
 0x4ed   : > { %v2464_v31 = vpop.f32.mrf.mxu1 }
 0x4ee   : > { %1710 = vst [vmem:[%s3714_s14 + $0x60] sm:$0xff] %v1680_v57  ;;  %v1695_v7 = vadd.f32 %v2464_v31, %v2009_v61 }
 0x4ef   : > { %v1689_v3 = vpop.f32.mrf.mxu1 }
 0x4f0   : > { %1713 = vst [vmem:[%s3714_s14 + $0x78] sm:$0xff] %v1695_v7  ;;  %v1690_v30 = vadd.f32 %v2009_v61, %v1689_v3 }
 0x4f2   : > { %1712 = vst [vmem:[%s3714_s14 + $0x70] sm:$0xff] %v1690_v30 }
 0x4f3   : > { %2959 = shalt.err (!%p2956_p12)
}
 0x4f4   : > { %s2960_s18 = scalar_lea.hbm %s3736_s22, 2048  ;;  %s2964_s0 = scalar_lea.hbm %s3796_s11, 4096 }
 0x4f5   : > { %p2961_p6 = scmp.ne.s32.totalorder %s3736_s22, %s2960_s18  ;;  %p2965_p8 = scmp.lt.s32.totalorder %s3736_s22, %s3796_s11 }
 0x4f6   : > { %p2966_p10 = scmp.lt.s32.totalorder %s2964_s0, %s2960_s18 }
 0x4f7   : > { %p2962_p2 = pnand %p2961_p6, %p3838_p11 }
 0x4f8   : > { %p2967_p0 = por %p2966_p10, %p2965_p8 }
 0x4f9   : > { %p2963_p7 = pneg %p2962_p2 }
 0x4fb   : > { %p2968_p13 = pnand %p2967_p0, %p2963_p7 }
 0x4fd   : > { %2971 = shalt.err (!%p2968_p13)
}
 0x4fe   : > { %2519 = dma.vmem_to_hbm [thread:$0]  (%p3838_p11), %s3738_s27, 2048, %s3736_s22, %s1715_s9, %s3037_s3, %s3037_s3, %s3038_s30  }
 0x4ff PF: > { %s1785_s24 = sand.u32 1, %s3014_s25   ;;  %p3839_p5 = scmp.ne.s32.totalorder %s3825_s17, 0 }
 0x500   : > { %p3840_p9 = scmp.ge.s32.totalorder %s3026_s28, 2  ;;  %s1786_s16 = scalar_lea.sflag [#allocation4], %s1785_s24 }
 0x502   : > { %p2546_p1 = pnand %p3840_p9, %p3839_p5 }
 0x504   : > { %p2547_p3 = pneg %p2546_p1 }
 0x506   : > { %3005 = dma.done.wait (%p2547_p3), %s1786_s16, 2048  }
 0x507   : > { %3007 = vsyncadd (%p2547_p3), %s1786_s16, 4294965248  ;;  %s3841_s1 = sadd.s32 4294967294, %s3026_s28  }
 0x508   : > { %s1794_s7 = sand.u32 1, %s3841_s1  }
 0x509   : > { %s1795_s15 = scalar_lea.sflag [#allocation15], %s1794_s7 }
 0x50a   : > { %3009 = dma.done.wait (%p2547_p3), %s1795_s15, 4096  }
 0x50b   : > { %3011 = vsyncadd (%p2547_p3), %s1795_s15, 4294963200  ;;  %s3842_s3 = sld [smem:[#allocation23_spill]]  ;;  %p33_p11 = scmp.ge.s32.totalorder %s3222_s21, 4  }
 0x50c   : > { %s3843_s27 = sld [smem:[#allocation24_spill]]  ;;  %s3844_s25 = smov %s3018_s26 }
 0x50d   : > { %s3846_s28 = smov %s3222_s21  ;;  %35 = sbr.rel (!%p33_p11) target bundleno = 17 (0x11), region = 161 }
 0x511   : > { %s3845_s26 = smov %s3842_s3 }
 0x512   :  { %1809 = vsyncpa [#allocation3], 1 }
 0x513   :  { %1811 = vsyncpa [#allocation3 + $0x1], 1 }
 0x514   :  { %1812 = vsyncpa [#allocation6], 1 }
 0x515   :  { %1813 = vsyncpa [#allocation9], 1 }
 0x516   :  { %1814 = vsyncpa [#allocation12], 1 }
 0x517   :  { %1815 = vsyncpa [#allocation4], 1 }
 0x518   :  { %1817 = vsyncpa [#allocation4 + $0x1], 1 }
 0x519   :  { %1818 = vsyncpa [#allocation15], 1 }
 0x51a   :  { %1820 = vsyncpa [#allocation15 + $0x1], 1 }

</bundles_post_ra>
